<compile_context>
chip_gen: v7x
topology: tpu7x:2x2x1
jax: 0.10.0
libtpu: 0.0.40
codegen_flags: <defaults>
</compile_context>

<pallas_src>
import functools
import math

import jax
import jax.numpy as jnp
from jax.experimental import pallas as pl
from jax.experimental.pallas import tpu as pltpu


_TM = 512        # row-tile for all row-wise (linear / LN / MLP) kernels
_LN_EPS = 1e-5   # torch nn.LayerNorm default


def _act(h, act):
    if act == "relu":
        return jnp.maximum(h, 0.0)
    if act == "leaky_relu":
        return jnp.where(h >= 0.0, h, 0.01 * h)  # torch default slope 0.01
    return h


def _row_tile(m):
    return m if m <= _TM else _TM


def _attn_vmem_limit():
    # v5e/v6e: 128 MiB VMEM per core, v7x: 64 MiB.  Leave ~24 MiB headroom so
    # double-buffered edge blocks never push the compiler past the part.
    try:
        cap = int(pltpu.get_tpu_info().vmem_capacity_bytes)
    except Exception:
        cap = 64 * 1024 * 1024
    return int(min(max(cap - 24 * 1024 * 1024, 32 * 1024 * 1024), 96 * 1024 * 1024))


# --------------------- fused [LN] -> linear -> act -> linear kernel ---------

def _fused_mlp_kernel(*refs, act1, act2, has_ln, has_mask, residual, eps):
    refs = list(refs)
    o_ref = refs.pop()               # single output is the last ref
    it = iter(refs)
    x_ref = next(it)
    g_ref = bln_ref = None
    if has_ln:
        g_ref = next(it)
        bln_ref = next(it)
    w1_ref = next(it)
    b1_ref = next(it)
    w2_ref = next(it)
    b2_ref = next(it)
    mask_ref = next(it) if has_mask else None

    # NOTE: on a partial final row tile the LayerNorm runs on out-of-bounds
    # rows; those rows are never written back so garbage there is harmless.
    x = x_ref[...].astype(jnp.float32)
    h = x
    if has_ln:
        mu = jnp.mean(h, axis=-1, keepdims=True)
        hc = h - mu
        var = jnp.mean(hc * hc, axis=-1, keepdims=True)   # biased var (torch LN)
        h = hc * jax.lax.rsqrt(var + eps) * g_ref[...] + bln_ref[...]
    h = _act(jnp.dot(h, w1_ref[...], preferred_element_type=jnp.float32)
             + b1_ref[...], act1)
    h = _act(jnp.dot(h, w2_ref[...], preferred_element_type=jnp.float32)
             + b2_ref[...], act2)
    if has_mask:
        h = h * mask_ref[...]
    if residual:
        h = x + h
    o_ref[...] = h.astype(o_ref.dtype)


def fused_mlp(x, mlp_p, act1, act2, *, ln=None, row_mask=None, residual=False,
              out_dtype=jnp.float32):
    w1, b1 = mlp_p[0]["w"], mlp_p[0]["b"]
    w2, b2 = mlp_p[1]["w"], mlp_p[1]["b"]
    d_in, d_h = w1.shape
    d_out = w2.shape[1]
    lead = x.shape[:-1]
    x2 = x.reshape(-1, d_in)
    m = x2.shape[0]
    tm = _row_tile(m)

    args = [x2]
    in_specs = [pl.BlockSpec((tm, d_in), lambda i: (i, 0))]
    if ln is not None:
        args += [ln["g"], ln["b"]]
        in_specs += [pl.BlockSpec((1, d_in), lambda i: (0, 0)),
                     pl.BlockSpec((1, d_in), lambda i: (0, 0))]
    args += [w1, b1, w2, b2]
    in_specs += [pl.BlockSpec((d_in, d_h), lambda i: (0, 0)),
                 pl.BlockSpec((1, d_h), lambda i: (0, 0)),
                 pl.BlockSpec((d_h, d_out), lambda i: (0, 0)),
                 pl.BlockSpec((1, d_out), lambda i: (0, 0))]
    if row_mask is not None:
        args.append(row_mask.reshape(m, 1))
        in_specs.append(pl.BlockSpec((tm, 1), lambda i: (i, 0)))

    out = pl.pallas_call(
        functools.partial(_fused_mlp_kernel, act1=act1, act2=act2,
                          has_ln=ln is not None, has_mask=row_mask is not None,
                          residual=residual, eps=_LN_EPS),
        grid=(pl.cdiv(m, tm),),
        in_specs=in_specs,
        out_specs=pl.BlockSpec((tm, d_out), lambda i: (i, 0)),
        out_shape=jax.ShapeDtypeStruct((m, d_out), out_dtype),
        compiler_params=pltpu.CompilerParams(dimension_semantics=("parallel",)),
    )(*args)
    return out.reshape(lead + (d_out,))


# ---------- fused LayerNorm(x) + concatenated [Q|K|V|Ni|Nj] projection ------

def _ln_qkv_kernel(x_ref, g_ref, b_ref, w_ref, bias_ref, ln_ref, cat_ref, *, eps):
    x = x_ref[...].astype(jnp.float32)
    mu = jnp.mean(x, axis=-1, keepdims=True)
    xc = x - mu
    var = jnp.mean(xc * xc, axis=-1, keepdims=True)
    xn = xc * jax.lax.rsqrt(var + eps) * g_ref[...] + b_ref[...]
    ln_ref[...] = xn.astype(ln_ref.dtype)
    cat_ref[...] = (jnp.dot(xn, w_ref[...], preferred_element_type=jnp.float32)
                    + bias_ref[...]).astype(cat_ref.dtype)


def ln_qkv(x, ln_p, w_cat, b_cat):
    bs, n, d = x.shape
    d5 = w_cat.shape[1]
    x2 = x.reshape(-1, d)
    m = x2.shape[0]
    tm = _row_tile(m)
    x_ln, cat = pl.pallas_call(
        functools.partial(_ln_qkv_kernel, eps=_LN_EPS),
        grid=(pl.cdiv(m, tm),),
        in_specs=[pl.BlockSpec((tm, d), lambda i: (i, 0)),
                  pl.BlockSpec((1, d), lambda i: (0, 0)),
                  pl.BlockSpec((1, d), lambda i: (0, 0)),
                  pl.BlockSpec((d, d5), lambda i: (0, 0)),
                  pl.BlockSpec((1, d5), lambda i: (0, 0))],
        out_specs=[pl.BlockSpec((tm, d), lambda i: (i, 0)),
                   pl.BlockSpec((tm, d5), lambda i: (i, 0))],
        out_shape=[jax.ShapeDtypeStruct((m, d), jnp.float32),
                   jax.ShapeDtypeStruct((m, d5), jnp.float32)],
        compiler_params=pltpu.CompilerParams(dimension_semantics=("parallel",)),
    )(x2, ln_p["g"], ln_p["b"], w_cat, b_cat)
    return x_ln.reshape(bs, n, d), cat.reshape(bs, n, d5)


# ----------------------------- fused graph attention ------------------------
#
# One kernel per (batch, j-tile):
#   e-path : LN(e) -> E proj -> e_new = Ni + Nj + E -> WOe -> pair mask -> +LN(e)
#   x-path : Att = per-head sum(Q * e_new * K) -> softmax over i -> Att @ V
#            accumulated over j-tiles, then WOx -> node mask -> +LN(x).

def _attn_kernel(mi_ref, mj_ref, ndi_ref, ndj_ref, xln_ref, e_ref,
                 lng_ref, lnb_ref, we_ref, be_ref,
                 woe_w_ref, woe_b_ref, wox_w_ref, wox_b_ref,
                 sel_ref, selT_ref,
                 xo_ref, eo_ref, acc_ref, *, num_heads, d_head, eps):
    jt = pl.program_id(1)
    H = num_heads
    d = H * d_head

    mi = mi_ref[0]                        # (N, 1)   node mask, i rows
    mj = mj_ref[0]                        # (1, tj)  node mask, j tile
    mask2 = mi * mj                       # pair mask rebuilt in-kernel
    mask3 = mask2[:, :, None]

    node_i = ndi_ref[0]                   # (N, 5d)  [Q, K, V, Ni, Nj]
    node_j = ndj_ref[0]                   # (tj, 5d)
    q = node_i[:, 0:d]                    # 1/sqrt(d_head) folded into W_Q
    ni = node_i[:, 3 * d:4 * d]
    k = node_j[:, d:2 * d]
    v = node_j[:, 2 * d:3 * d]
    nj = node_j[:, 4 * d:5 * d]
    n_i = q.shape[0]
    tj = k.shape[0]

    # ---- fused LayerNorm(e) + E projection (raw E block read once from HBM)
    e_raw = e_ref[0].astype(jnp.float32)  # (N, tj, d)
    mu = jnp.mean(e_raw, axis=-1, keepdims=True)
    ec = e_raw - mu
    var = jnp.mean(ec * ec, axis=-1, keepdims=True)
    e_ln = ec * jax.lax.rsqrt(var + eps) * lng_ref[...] + lnb_ref[...]
    el = (jnp.dot(e_ln.reshape(n_i * tj, d), we_ref[...],
                  preferred_element_type=jnp.float32)
          + be_ref[...]).reshape(n_i, tj, d)

    # e_new[i, j, :] = Ni[i] + Nj[j] + E[i, j]   (mask folded into epilogue;
    # the 0/1 row mask commutes with the WOe matmul)
    e_hidden = ni[:, None, :] + nj[None, :, :] + el

    # ---- e-path epilogue: WOe + pair mask + residual onto LN(e), fused
    e_att = (jnp.dot(e_hidden.reshape(n_i * tj, d), woe_w_ref[...],
                     preferred_element_type=jnp.float32)
             + woe_b_ref[...]).reshape(n_i, tj, d)
    eo_ref[0] = (e_ln + e_att * mask3).astype(eo_ref.dtype)

    # ---- attention scores; per-head channel reduce via MXU selection matmul
    w = (q[:, None, :] * e_hidden) * k[None, :, :]                    # (N, tj, d)
    att = jnp.dot(w.reshape(n_i * tj, d), sel_ref[...],
                  preferred_element_type=jnp.float32).reshape(n_i, tj, H)

    att = jnp.where(mask3 > 0.0, att, -1e9)
    # torch.softmax(Att, dim=1): normalize over the i (row) index; j-tiles are
    # therefore independent and Att@V simply accumulates over them.
    att = att - jnp.max(att, axis=0, keepdims=True)
    att = jnp.exp(att)
    # approx reciprocal (EUP) is intentional; use approx=False for bit parity.
    att = att * pl.reciprocal(jnp.sum(att, axis=0, keepdims=True), approx=True)
    att = att * mask3                     # zero masked columns (replaces V mask)

    # ---- Att @ V: broadcast heads to channels on the MXU, contract over j
    att_full = jnp.dot(att.reshape(n_i * tj, H), selT_ref[...],
                       preferred_element_type=jnp.float32).reshape(n_i, tj, d)
    x_part = jnp.sum(att_full * v[None, :, :], axis=1)                # (N, d)

    @pl.when(jt == 0)
    def _():
        acc_ref[...] = x_part             # direct write, no zero + read-add

    @pl.when(jt > 0)
    def _():
        acc_ref[...] = acc_ref[...] + x_part

    @pl.when(jt == pl.num_programs(1) - 1)
    def _():
        # x-path epilogue: WOx + node mask + residual onto LN(x), fused.
        xa = jnp.dot(acc_ref[...], wox_w_ref[...],
                     preferred_element_type=jnp.float32) + wox_b_ref[...]
        xo_ref[0] = (xln_ref[0] + xa * mi).astype(xo_ref.dtype)


def attention(node_cat, x_ln, e_in, node_mask, lne_p, mha, num_heads):
    bs, n, d = x_ln.shape
    d_head = d // num_heads
    H = num_heads

    # j-tiling: pad n to a multiple of 128 for large graphs so the edge blocks
    # stay bounded; padded nodes carry mask 0 so results are unaffected.
    if n <= 128:
        N, tj = n, n
    else:
        tj = 128
        N = ((n + tj - 1) // tj) * tj
    if N != n:
        pad = N - n
        node_cat = jnp.pad(node_cat, ((0, 0), (0, pad), (0, 0)))
        x_ln = jnp.pad(x_ln, ((0, 0), (0, pad), (0, 0)))
        e_in = jnp.pad(e_in, ((0, 0), (0, pad), (0, pad), (0, 0)))
        node_mask = jnp.pad(node_mask, ((0, 0), (0, pad)))
    njt = N // tj

    mi_col = node_mask[..., None]          # (bs, N, 1)
    mj_row = node_mask[:, None, :]         # (bs, 1, N)

    # hoisted head-selection matrices (built once, passed as tiny constants)
    sel = (jnp.arange(d)[:, None] // d_head
           == jnp.arange(H)[None, :]).astype(jnp.float32)             # (d, H)
    selT = (jnp.arange(H)[:, None]
            == jnp.arange(d)[None, :] // d_head).astype(jnp.float32)  # (H, d)

    d5 = 5 * d
    kern = functools.partial(_attn_kernel, num_heads=H, d_head=d_head,
                             eps=_LN_EPS)
    x_out, e_out = pl.pallas_call(
        kern,
        grid=(bs, njt),
        in_specs=[
            pl.BlockSpec((1, N, 1), lambda b, j: (b, 0, 0)),       # node mask (i)
            pl.BlockSpec((1, 1, tj), lambda b, j: (b, 0, j)),      # node mask (j)
            pl.BlockSpec((1, N, d5), lambda b, j: (b, 0, 0)),      # Q|K|V|Ni|Nj (i)
            pl.BlockSpec((1, tj, d5), lambda b, j: (b, j, 0)),     # Q|K|V|Ni|Nj (j)
            pl.BlockSpec((1, N, d), lambda b, j: (b, 0, 0)),       # LN(x) residual
            pl.BlockSpec((1, N, tj, d), lambda b, j: (b, 0, j, 0)),  # raw E block
            pl.BlockSpec((1, d), lambda b, j: (0, 0)),             # LNe gamma
            pl.BlockSpec((1, d), lambda b, j: (0, 0)),             # LNe beta
            pl.BlockSpec((d, d), lambda b, j: (0, 0)),             # W_E
            pl.BlockSpec((1, d), lambda b, j: (0, 0)),             # b_E
            pl.BlockSpec((d, d), lambda b, j: (0, 0)),             # W_WOe
            pl.BlockSpec((1, d), lambda b, j: (0, 0)),             # b_WOe
            pl.BlockSpec((d, d), lambda b, j: (0, 0)),             # W_WOx
            pl.BlockSpec((1, d), lambda b, j: (0, 0)),             # b_WOx
            pl.BlockSpec((d, H), lambda b, j: (0, 0)),             # sel
            pl.BlockSpec((H, d), lambda b, j: (0, 0)),             # selT
        ],
        out_specs=[
            pl.BlockSpec((1, N, d), lambda b, j: (b, 0, 0)),          # x (resident)
            pl.BlockSpec((1, N, tj, d), lambda b, j: (b, 0, j, 0)),   # e
        ],
        out_shape=[jax.ShapeDtypeStruct((bs, N, d), jnp.float32),
                   jax.ShapeDtypeStruct((bs, N, N, d), e_in.dtype)],
        scratch_shapes=[pltpu.VMEM((N, d), jnp.float32)],
        compiler_params=pltpu.CompilerParams(
            dimension_semantics=("parallel", "arbitrary"),
            vmem_limit_bytes=_attn_vmem_limit()),
    )(mi_col, mj_row, node_cat, node_cat, x_ln, e_in,
      lne_p["g"], lne_p["b"], mha["E"]["w"], mha["E"]["b"],
      mha["WOe"]["w"], mha["WOe"]["b"], mha["WOx"]["w"], mha["WOx"]["b"],
      sel, selT)

    if N != n:
        x_out = x_out[:, :n, :]
        e_out = e_out[:, :n, :n, :]
    return x_out, e_out


# ----------------------------- model (glue in JAX) --------------------------

def block_gt(lp, x, e, node_mask, x_rowmask, e_rowmask, num_heads):
    mha = lp["MHA"]
    d = x.shape[-1]
    inv = 1.0 / math.sqrt(float(d // num_heads))
    # concat the five node projections into one (d, 5d) matmul; fold the
    # 1/sqrt(d_head) attention scale into the Q columns.
    w_cat = jnp.concatenate([mha["Q"]["w"] * inv, mha["K"]["w"], mha["V"]["w"],
                             mha["Ni"]["w"], mha["Nj"]["w"]], axis=1)
    b_cat = jnp.concatenate([mha["Q"]["b"] * inv, mha["K"]["b"], mha["V"]["b"],
                             mha["Ni"]["b"], mha["Nj"]["b"]], axis=1)

    x_ln, node_cat = ln_qkv(x, lp["LNx"], w_cat, b_cat)

    # attention kernel fuses: LN(e) + E proj + scores + softmax + Att@V +
    # WOx/WOe output projections + masks + both residuals.
    x, e = attention(node_cat, x_ln, e, node_mask, lp["LNe"], mha, num_heads)

    # x = x + MLPx(LNx2(x)) * mask   (one fused kernel each)
    x = fused_mlp(x, lp["MLPx"], "leaky_relu", "none",
                  ln=lp["LNx2"], row_mask=x_rowmask, residual=True)
    e = fused_mlp(e, lp["MLPe"], "leaky_relu", "none",
                  ln=lp["LNe2"], row_mask=e_rowmask, residual=True,
                  out_dtype=jnp.bfloat16)
    return x, e


def graph_transformer_forward(params, X, E, y, node_mask, cfg):
    bs, n = X.shape[0], X.shape[1]
    out_X, out_E, out_y = cfg["out_X"], cfg["out_E"], cfg["out_y"]
    num_heads = cfg["n_head"]

    x_mask = node_mask[..., None]                               # (bs, n, 1)
    pair_mask = node_mask[:, :, None] * node_mask[:, None, :]   # (bs, n, n)
    x_rowmask = x_mask.reshape(bs * n, 1)
    e_rowmask = pair_mask.reshape(bs * n * n, 1)
    diag_mask = (1.0 - jnp.eye(n, dtype=X.dtype))[None, :, :, None]

    X_to_out = X[..., :out_X]
    E_to_out = E[..., :out_E]
    y_to_out = y[..., :out_y]

    # input MLPs (masks fused; mask commutes with the symmetrization since the
    # pair mask is symmetric).  Edge activations stored bf16 between kernels.
    Eh = fused_mlp(E, params["mlp_in_E"], "relu", "relu", row_mask=e_rowmask,
                   out_dtype=jnp.bfloat16)
    Eh = (0.5 * (Eh + jnp.swapaxes(Eh, 1, 2))).astype(jnp.bfloat16)
    Xh = fused_mlp(X, params["mlp_in_X"], "relu", "relu", row_mask=x_rowmask)
    yh = fused_mlp(y, params["mlp_in_y"], "relu", "relu")

    for lp in params["layers"]:
        Xh, Eh = block_gt(lp, Xh, Eh, node_mask, x_rowmask, e_rowmask, num_heads)

    Xo = fused_mlp(Xh, params["mlp_out_X"], "relu", "none")
    Eo = fused_mlp(Eh, params["mlp_out_E"], "relu", "none")
    yo = fused_mlp(yh, params["mlp_out_y"], "relu", "none")

    Xo = Xo + X_to_out
    Eo = (Eo + E_to_out) * diag_mask
    yo = yo + y_to_out
    Eo = 0.5 * (Eo + jnp.swapaxes(Eo, 1, 2))

    # final PlaceHolder(...).mask(node_mask)
    Xo = Xo * x_mask
    Eo = Eo * pair_mask[..., None]
    return Xo, Eo, yo


# ----------------------------- parameter init -------------------------------

def init_linear(key, d_in, d_out):
    kw, kb = jax.random.split(key)
    bound = 1.0 / math.sqrt(d_in)
    return {
        "w": jax.random.uniform(kw, (d_in, d_out), jnp.float32, -bound, bound),
        "b": jax.random.uniform(kb, (1, d_out), jnp.float32, -bound, bound),
    }


def init_layernorm(d):
    return {"g": jnp.ones((1, d), jnp.float32), "b": jnp.zeros((1, d), jnp.float32)}


def init_params(key, cfg):
    d, dy = cfg["d"], cfg["dy"]
    keys = iter(jax.random.split(key, 512))
    nk = lambda: next(keys)
    params = {
        "mlp_in_X": [init_linear(nk(), cfg["in_X"], cfg["hX"]), init_linear(nk(), cfg["hX"], d)],
        "mlp_in_E": [init_linear(nk(), cfg["in_E"], cfg["hE"]), init_linear(nk(), cfg["hE"], d)],
        "mlp_in_y": [init_linear(nk(), cfg["in_y"], cfg["hy"]), init_linear(nk(), cfg["hy"], dy)],
        "mlp_out_X": [init_linear(nk(), d, cfg["hX"]), init_linear(nk(), cfg["hX"], cfg["out_X"])],
        "mlp_out_E": [init_linear(nk(), d, cfg["hE"]), init_linear(nk(), cfg["hE"], cfg["out_E"])],
        "mlp_out_y": [init_linear(nk(), dy, cfg["hy"]), init_linear(nk(), cfg["hy"], cfg["out_y"])],
        "layers": [],
    }
    for _ in range(cfg["n_layers"]):
        lp = {
            "LNx": init_layernorm(d), "LNe": init_layernorm(d),
            "LNx2": init_layernorm(d), "LNe2": init_layernorm(d),
            "MHA": {
                "Q": init_linear(nk(), d, d), "K": init_linear(nk(), d, d),
                "V": init_linear(nk(), d, d), "E": init_linear(nk(), d, d),
                "Ni": init_linear(nk(), d, d), "Nj": init_linear(nk(), d, d),
                "WOx": init_linear(nk(), d, d), "WOe": init_linear(nk(), d, d),
            },
            "MLPx": [init_linear(nk(), d, 4 * d), init_linear(nk(), 4 * d, d)],
            "MLPe": [init_linear(nk(), d, 4 * d), init_linear(nk(), 4 * d, d)],
        }
        params["layers"].append(lp)
    return params


# ----------------------------------- main ------------------------------------

if __name__ == "__main__":
    cfg = dict(
        n_layers=2,
        in_X=6, in_E=5, in_y=3,          # input_dims
        hX=16, hE=16, hy=16,             # hidden_mlp_dims
        d=32, dy=16, n_head=4,           # hidden_dims (dx = de = 32)
        out_X=6, out_E=5, out_y=3,       # output_dims
    )
    bs, n = 2, 8

    key = jax.random.PRNGKey(0)
    kp, kx, ke, ky = jax.random.split(key, 4)
    params = init_params(kp, cfg)

    X = jax.random.normal(kx, (bs, n, cfg["in_X"]), jnp.float32)
    E = jax.random.normal(ke, (bs, n, n, cfg["in_E"]), jnp.float32)
    E = 0.5 * (E + jnp.swapaxes(E, 1, 2))                 # symmetric edge features
    y = jax.random.normal(ky, (bs, cfg["in_y"]), jnp.float32)
    # batch 0: all 8 nodes valid, batch 1: 5 valid nodes
    node_mask = (jnp.arange(n)[None, :] < jnp.array([[n], [n - 3]])).astype(jnp.float32)

    fwd = jax.jit(lambda p, Xa, Ea, ya, nm: graph_transformer_forward(p, Xa, Ea, ya, nm, cfg))
    Xo, Eo, yo = fwd(params, X, E, y, node_mask)
    jax.block_until_ready((Xo, Eo, yo))

    assert Xo.shape == (bs, n, cfg["out_X"])
    assert Eo.shape == (bs, n, n, cfg["out_E"])
    assert yo.shape == (bs, cfg["out_y"])
    assert bool(jnp.all(jnp.isfinite(Xo))) and bool(jnp.all(jnp.isfinite(Eo))) \
        and bool(jnp.all(jnp.isfinite(yo)))
    print("KERNEL_OK")
</pallas_src>

<mosaic_0001>
module attributes {stable_mosaic.version = 11 : i64} {
  func.func @_fused_mlp_kernel(%arg0: i32, %arg1: memref<128x5xf32, #tpu.memory_space<vmem>>, %arg2: memref<5x16xf32, #tpu.memory_space<vmem>>, %arg3: memref<1x16xf32, #tpu.memory_space<vmem>>, %arg4: memref<16x32xf32, #tpu.memory_space<vmem>>, %arg5: memref<1x32xf32, #tpu.memory_space<vmem>>, %arg6: memref<128x1xf32, #tpu.memory_space<vmem>>, %arg7: memref<128x32xbf16, #tpu.memory_space<vmem>>) attributes {dimension_semantics = [#tpu.dimension_semantics<parallel>], iteration_bounds = array<i64: 1>, scalar_prefetch = 0 : i64, scratch_operands = 0 : i64, tpu.core_type = #tpu.core_type<tc>, window_params = [{transform_indices = @transform_0, window_bounds = array<i64: 128, 5>}, {pipeline_mode = #tpu.pipeline_mode<synchronous>, transform_indices = @transform_1, window_bounds = array<i64: 5, 16>}, {pipeline_mode = #tpu.pipeline_mode<synchronous>, transform_indices = @transform_2, window_bounds = array<i64: 1, 16>}, {pipeline_mode = #tpu.pipeline_mode<synchronous>, transform_indices = @transform_3, window_bounds = array<i64: 16, 32>}, {pipeline_mode = #tpu.pipeline_mode<synchronous>, transform_indices = @transform_4, window_bounds = array<i64: 1, 32>}, {transform_indices = @transform_5, window_bounds = array<i64: 128, 1>}, {transform_indices = @transform_6, window_bounds = array<i64: 128, 32>}]} {
    %c0 = arith.constant 0 : index
    %c0_0 = arith.constant 0 : index
    %0 = vector.load %arg1[%c0, %c0_0] : memref<128x5xf32, #tpu.memory_space<vmem>>, vector<128x5xf32>
    %c0_1 = arith.constant 0 : index
    %c0_2 = arith.constant 0 : index
    %1 = vector.load %arg2[%c0_1, %c0_2] : memref<5x16xf32, #tpu.memory_space<vmem>>, vector<5x16xf32>
    %cst = arith.constant dense<0.000000e+00> : vector<128x16xf32>
    %2 = tpu.matmul %0, %1, %cst {dimension_numbers = #tpu.dot_dimension_numbers<[1], [0], [0], [1], [0, 0, 1, 1], [], []>} : vector<128x5xf32>, vector<5x16xf32>, vector<128x16xf32> -> vector<128x16xf32>
    %c0_3 = arith.constant 0 : index
    %c0_4 = arith.constant 0 : index
    %3 = vector.load %arg3[%c0_3, %c0_4] : memref<1x16xf32, #tpu.memory_space<vmem>>, vector<1x16xf32>
    %4 = vector.broadcast %3 : vector<1x16xf32> to vector<128x16xf32>
    %5 = arith.addf %2, %4 : vector<128x16xf32>
    %cst_5 = arith.constant 0.000000e+00 : f32
    %6 = vector.broadcast %cst_5 : f32 to vector<128x16xf32>
    %7 = arith.maximumf %5, %6 : vector<128x16xf32>
    %c0_6 = arith.constant 0 : index
    %c0_7 = arith.constant 0 : index
    %8 = vector.load %arg4[%c0_6, %c0_7] : memref<16x32xf32, #tpu.memory_space<vmem>>, vector<16x32xf32>
    %cst_8 = arith.constant dense<0.000000e+00> : vector<128x32xf32>
    %9 = tpu.matmul %7, %8, %cst_8 {dimension_numbers = #tpu.dot_dimension_numbers<[1], [0], [0], [1], [0, 0, 1, 1], [], []>} : vector<128x16xf32>, vector<16x32xf32>, vector<128x32xf32> -> vector<128x32xf32>
    %c0_9 = arith.constant 0 : index
    %c0_10 = arith.constant 0 : index
    %10 = vector.load %arg5[%c0_9, %c0_10] : memref<1x32xf32, #tpu.memory_space<vmem>>, vector<1x32xf32>
    %11 = vector.broadcast %10 : vector<1x32xf32> to vector<128x32xf32>
    %12 = arith.addf %9, %11 : vector<128x32xf32>
    %cst_11 = arith.constant 0.000000e+00 : f32
    %13 = vector.broadcast %cst_11 : f32 to vector<128x32xf32>
    %14 = arith.maximumf %12, %13 : vector<128x32xf32>
    %c0_12 = arith.constant 0 : index
    %c0_13 = arith.constant 0 : index
    %15 = vector.load %arg6[%c0_12, %c0_13] : memref<128x1xf32, #tpu.memory_space<vmem>>, vector<128x1xf32>
    %16 = vector.broadcast %15 : vector<128x1xf32> to vector<128x32xf32>
    %17 = arith.mulf %14, %16 : vector<128x32xf32>
    %18 = arith.truncf %17 : vector<128x32xf32> to vector<128x32xbf16>
    %c0_14 = arith.constant 0 : index
    %c0_15 = arith.constant 0 : index
    %19 = vector.load %arg7[%c0_14, %c0_15] : memref<128x32xbf16, #tpu.memory_space<vmem>>, vector<128x32xbf16>
    tpu.vector_store %arg7[%c0_14, %c0_15], %18 {strides = array<i32>} : memref<128x32xbf16, #tpu.memory_space<vmem>>, vector<128x32xbf16>,
    return
  }
  func.func @transform_0(%arg0: i32) -> (i32, i32) {
    %c0_i32 = arith.constant 0 : i32
    %c0_i32_0 = arith.constant 0 : i32
    return %arg0, %c0_i32 : i32, i32
  }
  func.func @transform_1(%arg0: i32) -> (i32, i32) {
    %c0_i32 = arith.constant 0 : i32
    %c0_i32_0 = arith.constant 0 : i32
    %c0_i32_1 = arith.constant 0 : i32
    return %c0_i32, %c0_i32_0 : i32, i32
  }
  func.func @transform_2(%arg0: i32) -> (i32, i32) {
    %c0_i32 = arith.constant 0 : i32
    %c0_i32_0 = arith.constant 0 : i32
    %c0_i32_1 = arith.constant 0 : i32
    return %c0_i32, %c0_i32_0 : i32, i32
  }
  func.func @transform_3(%arg0: i32) -> (i32, i32) {
    %c0_i32 = arith.constant 0 : i32
    %c0_i32_0 = arith.constant 0 : i32
    %c0_i32_1 = arith.constant 0 : i32
    return %c0_i32, %c0_i32_0 : i32, i32
  }
  func.func @transform_4(%arg0: i32) -> (i32, i32) {
    %c0_i32 = arith.constant 0 : i32
    %c0_i32_0 = arith.constant 0 : i32
    %c0_i32_1 = arith.constant 0 : i32
    return %c0_i32, %c0_i32_0 : i32, i32
  }
  func.func @transform_5(%arg0: i32) -> (i32, i32) {
    %c0_i32 = arith.constant 0 : i32
    %c0_i32_0 = arith.constant 0 : i32
    return %arg0, %c0_i32 : i32, i32
  }
  func.func @transform_6(%arg0: i32) -> (i32, i32) {
    %c0_i32 = arith.constant 0 : i32
    %c0_i32_0 = arith.constant 0 : i32
    return %arg0, %c0_i32 : i32, i32
  }
}

module attributes {stable_mosaic.version = 11 : i64} {
  func.func @_fused_mlp_kernel(%arg0: i32, %arg1: memref<16x6xf32, #tpu.memory_space<vmem>>, %arg2: memref<6x16xf32, #tpu.memory_space<vmem>>, %arg3: memref<1x16xf32, #tpu.memory_space<vmem>>, %arg4: memref<16x32xf32, #tpu.memory_space<vmem>>, %arg5: memref<1x32xf32, #tpu.memory_space<vmem>>, %arg6: memref<16x1xf32, #tpu.memory_space<vmem>>, %arg7: memref<16x32xf32, #tpu.memory_space<vmem>>) attributes {dimension_semantics = [#tpu.dimension_semantics<parallel>], iteration_bounds = array<i64: 1>, scalar_prefetch = 0 : i64, scratch_operands = 0 : i64, tpu.core_type = #tpu.core_type<tc>, window_params = [{transform_indices = @transform_0, window_bounds = array<i64: 16, 6>}, {pipeline_mode = #tpu.pipeline_mode<synchronous>, transform_indices = @transform_1, window_bounds = array<i64: 6, 16>}, {pipeline_mode = #tpu.pipeline_mode<synchronous>, transform_indices = @transform_2, window_bounds = array<i64: 1, 16>}, {pipeline_mode = #tpu.pipeline_mode<synchronous>, transform_indices = @transform_3, window_bounds = array<i64: 16, 32>}, {pipeline_mode = #tpu.pipeline_mode<synchronous>, transform_indices = @transform_4, window_bounds = array<i64: 1, 32>}, {transform_indices = @transform_5, window_bounds = array<i64: 16, 1>}, {transform_indices = @transform_6, window_bounds = array<i64: 16, 32>}]} {
    %c0 = arith.constant 0 : index
    %c0_0 = arith.constant 0 : index
    %0 = vector.load %arg1[%c0, %c0_0] : memref<16x6xf32, #tpu.memory_space<vmem>>, vector<16x6xf32>
    %c0_1 = arith.constant 0 : index
    %c0_2 = arith.constant 0 : index
    %1 = vector.load %arg2[%c0_1, %c0_2] : memref<6x16xf32, #tpu.memory_space<vmem>>, vector<6x16xf32>
    %cst = arith.constant dense<0.000000e+00> : vector<16x16xf32>
    %2 = tpu.matmul %0, %1, %cst {dimension_numbers = #tpu.dot_dimension_numbers<[1], [0], [0], [1], [0, 0, 1, 1], [], []>} : vector<16x6xf32>, vector<6x16xf32>, vector<16x16xf32> -> vector<16x16xf32>
    %c0_3 = arith.constant 0 : index
    %c0_4 = arith.constant 0 : index
    %3 = vector.load %arg3[%c0_3, %c0_4] : memref<1x16xf32, #tpu.memory_space<vmem>>, vector<1x16xf32>
    %4 = vector.broadcast %3 : vector<1x16xf32> to vector<16x16xf32>
    %5 = arith.addf %2, %4 : vector<16x16xf32>
    %cst_5 = arith.constant 0.000000e+00 : f32
    %6 = vector.broadcast %cst_5 : f32 to vector<16x16xf32>
    %7 = arith.maximumf %5, %6 : vector<16x16xf32>
    %c0_6 = arith.constant 0 : index
    %c0_7 = arith.constant 0 : index
    %8 = vector.load %arg4[%c0_6, %c0_7] : memref<16x32xf32, #tpu.memory_space<vmem>>, vector<16x32xf32>
    %cst_8 = arith.constant dense<0.000000e+00> : vector<16x32xf32>
    %9 = tpu.matmul %7, %8, %cst_8 {dimension_numbers = #tpu.dot_dimension_numbers<[1], [0], [0], [1], [0, 0, 1, 1], [], []>} : vector<16x16xf32>, vector<16x32xf32>, vector<16x32xf32> -> vector<16x32xf32>
    %c0_9 = arith.constant 0 : index
    %c0_10 = arith.constant 0 : index
    %10 = vector.load %arg5[%c0_9, %c0_10] : memref<1x32xf32, #tpu.memory_space<vmem>>, vector<1x32xf32>
    %11 = vector.broadcast %10 : vector<1x32xf32> to vector<16x32xf32>
    %12 = arith.addf %9, %11 : vector<16x32xf32>
    %cst_11 = arith.constant 0.000000e+00 : f32
    %13 = vector.broadcast %cst_11 : f32 to vector<16x32xf32>
    %14 = arith.maximumf %12, %13 : vector<16x32xf32>
    %c0_12 = arith.constant 0 : index
    %c0_13 = arith.constant 0 : index
    %15 = vector.load %arg6[%c0_12, %c0_13] : memref<16x1xf32, #tpu.memory_space<vmem>>, vector<16x1xf32>
    %16 = vector.broadcast %15 : vector<16x1xf32> to vector<16x32xf32>
    %17 = arith.mulf %14, %16 : vector<16x32xf32>
    %c0_14 = arith.constant 0 : index
    %c0_15 = arith.constant 0 : index
    %18 = vector.load %arg7[%c0_14, %c0_15] : memref<16x32xf32, #tpu.memory_space<vmem>>, vector<16x32xf32>
    tpu.vector_store %arg7[%c0_14, %c0_15], %17 {strides = array<i32>} : memref<16x32xf32, #tpu.memory_space<vmem>>, vector<16x32xf32>,
    return
  }
  func.func @transform_0(%arg0: i32) -> (i32, i32) {
    %c0_i32 = arith.constant 0 : i32
    %c0_i32_0 = arith.constant 0 : i32
    return %arg0, %c0_i32 : i32, i32
  }
  func.func @transform_1(%arg0: i32) -> (i32, i32) {
    %c0_i32 = arith.constant 0 : i32
    %c0_i32_0 = arith.constant 0 : i32
    %c0_i32_1 = arith.constant 0 : i32
    return %c0_i32, %c0_i32_0 : i32, i32
  }
  func.func @transform_2(%arg0: i32) -> (i32, i32) {
    %c0_i32 = arith.constant 0 : i32
    %c0_i32_0 = arith.constant 0 : i32
    %c0_i32_1 = arith.constant 0 : i32
    return %c0_i32, %c0_i32_0 : i32, i32
  }
  func.func @transform_3(%arg0: i32) -> (i32, i32) {
    %c0_i32 = arith.constant 0 : i32
    %c0_i32_0 = arith.constant 0 : i32
    %c0_i32_1 = arith.constant 0 : i32
    return %c0_i32, %c0_i32_0 : i32, i32
  }
  func.func @transform_4(%arg0: i32) -> (i32, i32) {
    %c0_i32 = arith.constant 0 : i32
    %c0_i32_0 = arith.constant 0 : i32
    %c0_i32_1 = arith.constant 0 : i32
    return %c0_i32, %c0_i32_0 : i32, i32
  }
  func.func @transform_5(%arg0: i32) -> (i32, i32) {
    %c0_i32 = arith.constant 0 : i32
    %c0_i32_0 = arith.constant 0 : i32
    return %arg0, %c0_i32 : i32, i32
  }
  func.func @transform_6(%arg0: i32) -> (i32, i32) {
    %c0_i32 = arith.constant 0 : i32
    %c0_i32_0 = arith.constant 0 : i32
    return %arg0, %c0_i32 : i32, i32
  }
}

module attributes {stable_mosaic.version = 11 : i64} {
  func.func @_ln_qkv_kernel(%arg0: i32, %arg1: memref<16x32xf32, #tpu.memory_space<vmem>>, %arg2: memref<1x32xf32, #tpu.memory_space<vmem>>, %arg3: memref<1x32xf32, #tpu.memory_space<vmem>>, %arg4: memref<32x160xf32, #tpu.memory_space<vmem>>, %arg5: memref<1x160xf32, #tpu.memory_space<vmem>>, %arg6: memref<16x32xf32, #tpu.memory_space<vmem>>, %arg7: memref<16x160xf32, #tpu.memory_space<vmem>>) attributes {dimension_semantics = [#tpu.dimension_semantics<parallel>], iteration_bounds = array<i64: 1>, scalar_prefetch = 0 : i64, scratch_operands = 0 : i64, tpu.core_type = #tpu.core_type<tc>, window_params = [{transform_indices = @transform_0, window_bounds = array<i64: 16, 32>}, {pipeline_mode = #tpu.pipeline_mode<synchronous>, transform_indices = @transform_1, window_bounds = array<i64: 1, 32>}, {pipeline_mode = #tpu.pipeline_mode<synchronous>, transform_indices = @transform_2, window_bounds = array<i64: 1, 32>}, {pipeline_mode = #tpu.pipeline_mode<synchronous>, transform_indices = @transform_3, window_bounds = array<i64: 32, 160>}, {pipeline_mode = #tpu.pipeline_mode<synchronous>, transform_indices = @transform_4, window_bounds = array<i64: 1, 160>}, {transform_indices = @transform_5, window_bounds = array<i64: 16, 32>}, {transform_indices = @transform_6, window_bounds = array<i64: 16, 160>}]} {
    %c0 = arith.constant 0 : index
    %c0_0 = arith.constant 0 : index
    %0 = vector.load %arg1[%c0, %c0_0] : memref<16x32xf32, #tpu.memory_space<vmem>>, vector<16x32xf32>
    %cst = arith.constant dense<0.000000e+00> : vector<16xf32>
    %1 = vector.multi_reduction <add>, %0, %cst [1] : vector<16x32xf32> to vector<16xf32>
    %2 = vector.shape_cast %1 : vector<16xf32> to vector<16x1xf32>
    %cst_1 = arith.constant 3.200000e+01 : f32
    %3 = vector.broadcast %cst_1 : f32 to vector<16x1xf32>
    %4 = arith.divf %2, %3 : vector<16x1xf32>
    %5 = vector.broadcast %4 : vector<16x1xf32> to vector<16x32xf32>
    %6 = arith.subf %0, %5 : vector<16x32xf32>
    %7 = arith.mulf %6, %6 : vector<16x32xf32>
    %cst_2 = arith.constant dense<0.000000e+00> : vector<16xf32>
    %8 = vector.multi_reduction <add>, %7, %cst_2 [1] : vector<16x32xf32> to vector<16xf32>
    %9 = vector.shape_cast %8 : vector<16xf32> to vector<16x1xf32>
    %cst_3 = arith.constant 3.200000e+01 : f32
    %10 = vector.broadcast %cst_3 : f32 to vector<16x1xf32>
    %11 = arith.divf %9, %10 : vector<16x1xf32>
    %cst_4 = arith.constant 9.99999974E-6 : f32
    %12 = vector.broadcast %cst_4 : f32 to vector<16x1xf32>
    %13 = arith.addf %11, %12 : vector<16x1xf32>
    %14 = math.rsqrt %13 : vector<16x1xf32>
    %15 = vector.broadcast %14 : vector<16x1xf32> to vector<16x32xf32>
    %16 = arith.mulf %6, %15 : vector<16x32xf32>
    %c0_5 = arith.constant 0 : index
    %c0_6 = arith.constant 0 : index
    %17 = vector.load %arg2[%c0_5, %c0_6] : memref<1x32xf32, #tpu.memory_space<vmem>>, vector<1x32xf32>
    %18 = vector.broadcast %17 : vector<1x32xf32> to vector<16x32xf32>
    %19 = arith.mulf %16, %18 : vector<16x32xf32>
    %c0_7 = arith.constant 0 : index
    %c0_8 = arith.constant 0 : index
    %20 = vector.load %arg3[%c0_7, %c0_8] : memref<1x32xf32, #tpu.memory_space<vmem>>, vector<1x32xf32>
    %21 = vector.broadcast %20 : vector<1x32xf32> to vector<16x32xf32>
    %22 = arith.addf %19, %21 : vector<16x32xf32>
    %c0_9 = arith.constant 0 : index
    %c0_10 = arith.constant 0 : index
    %23 = vector.load %arg6[%c0_9, %c0_10] : memref<16x32xf32, #tpu.memory_space<vmem>>, vector<16x32xf32>
    tpu.vector_store %arg6[%c0_9, %c0_10], %22 {strides = array<i32>} : memref<16x32xf32, #tpu.memory_space<vmem>>, vector<16x32xf32>,
    %c0_11 = arith.constant 0 : index
    %c0_12 = arith.constant 0 : index
    %24 = vector.load %arg4[%c0_11, %c0_12] : memref<32x160xf32, #tpu.memory_space<vmem>>, vector<32x160xf32>
    %cst_13 = arith.constant dense<0.000000e+00> : vector<16x160xf32>
    %25 = tpu.matmul %22, %24, %cst_13 {dimension_numbers = #tpu.dot_dimension_numbers<[1], [0], [0], [1], [0, 0, 1, 1], [], []>} : vector<16x32xf32>, vector<32x160xf32>, vector<16x160xf32> -> vector<16x160xf32>
    %c0_14 = arith.constant 0 : index
    %c0_15 = arith.constant 0 : index
    %26 = vector.load %arg5[%c0_14, %c0_15] : memref<1x160xf32, #tpu.memory_space<vmem>>, vector<1x160xf32>
    %27 = vector.broadcast %26 : vector<1x160xf32> to vector<16x160xf32>
    %28 = arith.addf %25, %27 : vector<16x160xf32>
    %c0_16 = arith.constant 0 : index
    %c0_17 = arith.constant 0 : index
    %29 = vector.load %arg7[%c0_16, %c0_17] : memref<16x160xf32, #tpu.memory_space<vmem>>, vector<16x160xf32>
    tpu.vector_store %arg7[%c0_16, %c0_17], %28 {strides = array<i32>} : memref<16x160xf32, #tpu.memory_space<vmem>>, vector<16x160xf32>,
    return
  }
  func.func @transform_0(%arg0: i32) -> (i32, i32) {
    %c0_i32 = arith.constant 0 : i32
    %c0_i32_0 = arith.constant 0 : i32
    return %arg0, %c0_i32 : i32, i32
  }
  func.func @transform_1(%arg0: i32) -> (i32, i32) {
    %c0_i32 = arith.constant 0 : i32
    %c0_i32_0 = arith.constant 0 : i32
    %c0_i32_1 = arith.constant 0 : i32
    return %c0_i32, %c0_i32_0 : i32, i32
  }
  func.func @transform_2(%arg0: i32) -> (i32, i32) {
    %c0_i32 = arith.constant 0 : i32
    %c0_i32_0 = arith.constant 0 : i32
    %c0_i32_1 = arith.constant 0 : i32
    return %c0_i32, %c0_i32_0 : i32, i32
  }
  func.func @transform_3(%arg0: i32) -> (i32, i32) {
    %c0_i32 = arith.constant 0 : i32
    %c0_i32_0 = arith.constant 0 : i32
    %c0_i32_1 = arith.constant 0 : i32
    return %c0_i32, %c0_i32_0 : i32, i32
  }
  func.func @transform_4(%arg0: i32) -> (i32, i32) {
    %c0_i32 = arith.constant 0 : i32
    %c0_i32_0 = arith.constant 0 : i32
    %c0_i32_1 = arith.constant 0 : i32
    return %c0_i32, %c0_i32_0 : i32, i32
  }
  func.func @transform_5(%arg0: i32) -> (i32, i32) {
    %c0_i32 = arith.constant 0 : i32
    %c0_i32_0 = arith.constant 0 : i32
    return %arg0, %c0_i32 : i32, i32
  }
  func.func @transform_6(%arg0: i32) -> (i32, i32) {
    %c0_i32 = arith.constant 0 : i32
    %c0_i32_0 = arith.constant 0 : i32
    return %arg0, %c0_i32 : i32, i32
  }
}

module attributes {stable_mosaic.version = 11 : i64} {
  func.func @_attn_kernel(%arg0: i32, %arg1: i32, %arg2: memref<1x8x1xf32, #tpu.memory_space<vmem>>, %arg3: memref<1x1x8xf32, #tpu.memory_space<vmem>>, %arg4: memref<1x8x160xf32, #tpu.memory_space<vmem>>, %arg5: memref<1x8x160xf32, #tpu.memory_space<vmem>>, %arg6: memref<1x8x32xf32, #tpu.memory_space<vmem>>, %arg7: memref<1x8x8x32xbf16, #tpu.memory_space<vmem>>, %arg8: memref<1x32xf32, #tpu.memory_space<vmem>>, %arg9: memref<1x32xf32, #tpu.memory_space<vmem>>, %arg10: memref<32x32xf32, #tpu.memory_space<vmem>>, %arg11: memref<1x32xf32, #tpu.memory_space<vmem>>, %arg12: memref<32x32xf32, #tpu.memory_space<vmem>>, %arg13: memref<1x32xf32, #tpu.memory_space<vmem>>, %arg14: memref<32x32xf32, #tpu.memory_space<vmem>>, %arg15: memref<1x32xf32, #tpu.memory_space<vmem>>, %arg16: memref<32x4xf32, #tpu.memory_space<vmem>>, %arg17: memref<4x32xf32, #tpu.memory_space<vmem>>, %arg18: memref<1x8x32xf32, #tpu.memory_space<vmem>>, %arg19: memref<1x8x8x32xbf16, #tpu.memory_space<vmem>>, %arg20: memref<8x32xf32, #tpu.memory_space<vmem>>) attributes {dimension_semantics = [#tpu.dimension_semantics<parallel>, #tpu.dimension_semantics<arbitrary>], iteration_bounds = array<i64: 2, 1>, scalar_prefetch = 0 : i64, scratch_operands = 1 : i64, tpu.core_type = #tpu.core_type<tc>, window_params = [{transform_indices = @transform_0, window_bounds = array<i64: 1, 8, 1>}, {transform_indices = @transform_1, window_bounds = array<i64: 1, 1, 8>}, {transform_indices = @transform_2, window_bounds = array<i64: 1, 8, 160>}, {transform_indices = @transform_3, window_bounds = array<i64: 1, 8, 160>}, {transform_indices = @transform_4, window_bounds = array<i64: 1, 8, 32>}, {transform_indices = @transform_5, window_bounds = array<i64: 1, 8, 8, 32>}, {pipeline_mode = #tpu.pipeline_mode<synchronous>, transform_indices = @transform_6, window_bounds = array<i64: 1, 32>}, {pipeline_mode = #tpu.pipeline_mode<synchronous>, transform_indices = @transform_7, window_bounds = array<i64: 1, 32>}, {pipeline_mode = #tpu.pipeline_mode<synchronous>, transform_indices = @transform_8, window_bounds = array<i64: 32, 32>}, {pipeline_mode = #tpu.pipeline_mode<synchronous>, transform_indices = @transform_9, window_bounds = array<i64: 1, 32>}, {pipeline_mode = #tpu.pipeline_mode<synchronous>, transform_indices = @transform_10, window_bounds = array<i64: 32, 32>}, {pipeline_mode = #tpu.pipeline_mode<synchronous>, transform_indices = @transform_11, window_bounds = array<i64: 1, 32>}, {pipeline_mode = #tpu.pipeline_mode<synchronous>, transform_indices = @transform_12, window_bounds = array<i64: 32, 32>}, {pipeline_mode = #tpu.pipeline_mode<synchronous>, transform_indices = @transform_13, window_bounds = array<i64: 1, 32>}, {pipeline_mode = #tpu.pipeline_mode<synchronous>, transform_indices = @transform_14, window_bounds = array<i64: 32, 4>}, {pipeline_mode = #tpu.pipeline_mode<synchronous>, transform_indices = @transform_15, window_bounds = array<i64: 4, 32>}, {transform_indices = @transform_16, window_bounds = array<i64: 1, 8, 32>}, {transform_indices = @transform_17, window_bounds = array<i64: 1, 8, 8, 32>}]} {
    %c0 = arith.constant 0 : index
    %c0_0 = arith.constant 0 : index
    %c0_1 = arith.constant 0 : index
    %0 = vector.load %arg2[%c0, %c0_0, %c0_1] : memref<1x8x1xf32, #tpu.memory_space<vmem>>, vector<1x8x1xf32>
    %1 = vector.shape_cast %0 : vector<1x8x1xf32> to vector<8x1xf32>
    %c0_2 = arith.constant 0 : index
    %c0_3 = arith.constant 0 : index
    %c0_4 = arith.constant 0 : index
    %2 = vector.load %arg3[%c0_2, %c0_3, %c0_4] : memref<1x1x8xf32, #tpu.memory_space<vmem>>, vector<1x1x8xf32>
    %3 = vector.shape_cast %2 : vector<1x1x8xf32> to vector<1x8xf32>
    %4 = vector.broadcast %1 : vector<8x1xf32> to vector<8x8xf32>
    %5 = vector.broadcast %3 : vector<1x8xf32> to vector<8x8xf32>
    %6 = arith.mulf %4, %5 : vector<8x8xf32>
    %7 = vector.shape_cast %6 : vector<8x8xf32> to vector<8x8x1xf32>
    %c0_5 = arith.constant 0 : index
    %c0_6 = arith.constant 0 : index
    %c0_7 = arith.constant 0 : index
    %8 = vector.load %arg4[%c0_5, %c0_6, %c0_7] : memref<1x8x160xf32, #tpu.memory_space<vmem>>, vector<1x8x160xf32>
    %9 = vector.shape_cast %8 : vector<1x8x160xf32> to vector<8x160xf32>
    %c0_8 = arith.constant 0 : index
    %c0_9 = arith.constant 0 : index
    %c0_10 = arith.constant 0 : index
    %10 = vector.load %arg5[%c0_8, %c0_9, %c0_10] : memref<1x8x160xf32, #tpu.memory_space<vmem>>, vector<1x8x160xf32>
    %11 = vector.shape_cast %10 : vector<1x8x160xf32> to vector<8x160xf32>
    %12 = vector.extract_strided_slice %9 {offsets = [0, 0], sizes = [8, 32], strides = [1, 1]} : vector<8x160xf32> to vector<8x32xf32>
    %13 = vector.extract_strided_slice %9 {offsets = [0, 96], sizes = [8, 32], strides = [1, 1]} : vector<8x160xf32> to vector<8x32xf32>
    %14 = vector.extract_strided_slice %11 {offsets = [0, 32], sizes = [8, 32], strides = [1, 1]} : vector<8x160xf32> to vector<8x32xf32>
    %15 = vector.extract_strided_slice %11 {offsets = [0, 64], sizes = [8, 32], strides = [1, 1]} : vector<8x160xf32> to vector<8x32xf32>
    %16 = vector.extract_strided_slice %11 {offsets = [0, 128], sizes = [8, 32], strides = [1, 1]} : vector<8x160xf32> to vector<8x32xf32>
    %c0_11 = arith.constant 0 : index
    %c0_12 = arith.constant 0 : index
    %c0_13 = arith.constant 0 : index
    %c0_14 = arith.constant 0 : index
    %17 = vector.load %arg7[%c0_11, %c0_12, %c0_13, %c0_14] : memref<1x8x8x32xbf16, #tpu.memory_space<vmem>>, vector<1x8x8x32xbf16>
    %18 = vector.shape_cast %17 : vector<1x8x8x32xbf16> to vector<8x8x32xbf16>
    %19 = arith.extf %18 : vector<8x8x32xbf16> to vector<8x8x32xf32>
    %cst = arith.constant dense<0.000000e+00> : vector<8x8xf32>
    %20 = vector.multi_reduction <add>, %19, %cst [2] : vector<8x8x32xf32> to vector<8x8xf32>
    %21 = vector.shape_cast %20 : vector<8x8xf32> to vector<8x8x1xf32>
    %cst_15 = arith.constant 3.200000e+01 : f32
    %22 = vector.broadcast %cst_15 : f32 to vector<8x8x1xf32>
    %23 = arith.divf %21, %22 : vector<8x8x1xf32>
    %24 = vector.broadcast %23 : vector<8x8x1xf32> to vector<8x8x32xf32>
    %25 = arith.subf %19, %24 : vector<8x8x32xf32>
    %26 = arith.mulf %25, %25 : vector<8x8x32xf32>
    %cst_16 = arith.constant dense<0.000000e+00> : vector<8x8xf32>
    %27 = vector.multi_reduction <add>, %26, %cst_16 [2] : vector<8x8x32xf32> to vector<8x8xf32>
    %28 = vector.shape_cast %27 : vector<8x8xf32> to vector<8x8x1xf32>
    %cst_17 = arith.constant 3.200000e+01 : f32
    %29 = vector.broadcast %cst_17 : f32 to vector<8x8x1xf32>
    %30 = arith.divf %28, %29 : vector<8x8x1xf32>
    %cst_18 = arith.constant 9.99999974E-6 : f32
    %31 = vector.broadcast %cst_18 : f32 to vector<8x8x1xf32>
    %32 = arith.addf %30, %31 : vector<8x8x1xf32>
    %33 = math.rsqrt %32 : vector<8x8x1xf32>
    %34 = vector.broadcast %33 : vector<8x8x1xf32> to vector<8x8x32xf32>
    %35 = arith.mulf %25, %34 : vector<8x8x32xf32>
    %c0_19 = arith.constant 0 : index
    %c0_20 = arith.constant 0 : index
    %36 = vector.load %arg8[%c0_19, %c0_20] : memref<1x32xf32, #tpu.memory_space<vmem>>, vector<1x32xf32>
    %37 = vector.shape_cast %36 : vector<1x32xf32> to vector<1x1x32xf32>
    %38 = vector.broadcast %37 : vector<1x1x32xf32> to vector<8x8x32xf32>
    %39 = arith.mulf %35, %38 : vector<8x8x32xf32>
    %c0_21 = arith.constant 0 : index
    %c0_22 = arith.constant 0 : index
    %40 = vector.load %arg9[%c0_21, %c0_22] : memref<1x32xf32, #tpu.memory_space<vmem>>, vector<1x32xf32>
    %41 = vector.shape_cast %40 : vector<1x32xf32> to vector<1x1x32xf32>
    %42 = vector.broadcast %41 : vector<1x1x32xf32> to vector<8x8x32xf32>
    %43 = arith.addf %39, %42 : vector<8x8x32xf32>
    %44 = vector.shape_cast %43 : vector<8x8x32xf32> to vector<64x32xf32>
    %c0_23 = arith.constant 0 : index
    %c0_24 = arith.constant 0 : index
    %45 = vector.load %arg10[%c0_23, %c0_24] : memref<32x32xf32, #tpu.memory_space<vmem>>, vector<32x32xf32>
    %cst_25 = arith.constant dense<0.000000e+00> : vector<64x32xf32>
    %46 = tpu.matmul %44, %45, %cst_25 {dimension_numbers = #tpu.dot_dimension_numbers<[1], [0], [0], [1], [0, 0, 1, 1], [], []>} : vector<64x32xf32>, vector<32x32xf32>, vector<64x32xf32> -> vector<64x32xf32>
    %c0_26 = arith.constant 0 : index
    %c0_27 = arith.constant 0 : index
    %47 = vector.load %arg11[%c0_26, %c0_27] : memref<1x32xf32, #tpu.memory_space<vmem>>, vector<1x32xf32>
    %48 = vector.broadcast %47 : vector<1x32xf32> to vector<64x32xf32>
    %49 = arith.addf %46, %48 : vector<64x32xf32>
    %50 = vector.shape_cast %49 : vector<64x32xf32> to vector<8x8x32xf32>
    %51 = vector.shape_cast %13 : vector<8x32xf32> to vector<8x1x32xf32>
    %52 = vector.shape_cast %16 : vector<8x32xf32> to vector<1x8x32xf32>
    %53 = vector.broadcast %51 : vector<8x1x32xf32> to vector<8x8x32xf32>
    %54 = vector.broadcast %52 : vector<1x8x32xf32> to vector<8x8x32xf32>
    %55 = arith.addf %53, %54 : vector<8x8x32xf32>
    %56 = arith.addf %55, %50 : vector<8x8x32xf32>
    %57 = vector.shape_cast %56 : vector<8x8x32xf32> to vector<64x32xf32>
    %c0_28 = arith.constant 0 : index
    %c0_29 = arith.constant 0 : index
    %58 = vector.load %arg12[%c0_28, %c0_29] : memref<32x32xf32, #tpu.memory_space<vmem>>, vector<32x32xf32>
    %cst_30 = arith.constant dense<0.000000e+00> : vector<64x32xf32>
    %59 = tpu.matmul %57, %58, %cst_30 {dimension_numbers = #tpu.dot_dimension_numbers<[1], [0], [0], [1], [0, 0, 1, 1], [], []>} : vector<64x32xf32>, vector<32x32xf32>, vector<64x32xf32> -> vector<64x32xf32>
    %c0_31 = arith.constant 0 : index
    %c0_32 = arith.constant 0 : index
    %60 = vector.load %arg13[%c0_31, %c0_32] : memref<1x32xf32, #tpu.memory_space<vmem>>, vector<1x32xf32>
    %61 = vector.broadcast %60 : vector<1x32xf32> to vector<64x32xf32>
    %62 = arith.addf %59, %61 : vector<64x32xf32>
    %63 = vector.shape_cast %62 : vector<64x32xf32> to vector<8x8x32xf32>
    %64 = vector.broadcast %7 : vector<8x8x1xf32> to vector<8x8x32xf32>
    %65 = arith.mulf %63, %64 : vector<8x8x32xf32>
    %66 = arith.addf %43, %65 : vector<8x8x32xf32>
    %67 = arith.truncf %66 : vector<8x8x32xf32> to vector<8x8x32xbf16>
    %c0_33 = arith.constant 0 : index
    %c0_34 = arith.constant 0 : index
    %c0_35 = arith.constant 0 : index
    %c0_36 = arith.constant 0 : index
    %68 = vector.load %arg19[%c0_33, %c0_34, %c0_35, %c0_36] : memref<1x8x8x32xbf16, #tpu.memory_space<vmem>>, vector<1x8x8x32xbf16>
    %69 = vector.shape_cast %68 : vector<1x8x8x32xbf16> to vector<8x8x32xbf16>
    %70 = vector.shape_cast %67 : vector<8x8x32xbf16> to vector<1x8x8x32xbf16>
    tpu.vector_store %arg19[%c0_33, %c0_34, %c0_35, %c0_36], %70 {strides = array<i32>} : memref<1x8x8x32xbf16, #tpu.memory_space<vmem>>, vector<1x8x8x32xbf16>,
    %71 = vector.shape_cast %12 : vector<8x32xf32> to vector<8x1x32xf32>
    %72 = vector.broadcast %71 : vector<8x1x32xf32> to vector<8x8x32xf32>
    %73 = arith.mulf %72, %56 : vector<8x8x32xf32>
    %74 = vector.shape_cast %14 : vector<8x32xf32> to vector<1x8x32xf32>
    %75 = vector.broadcast %74 : vector<1x8x32xf32> to vector<8x8x32xf32>
    %76 = arith.mulf %73, %75 : vector<8x8x32xf32>
    %77 = vector.shape_cast %76 : vector<8x8x32xf32> to vector<64x32xf32>
    %c0_37 = arith.constant 0 : index
    %c0_38 = arith.constant 0 : index
    %78 = vector.load %arg16[%c0_37, %c0_38] : memref<32x4xf32, #tpu.memory_space<vmem>>, vector<32x4xf32>
    %cst_39 = arith.constant dense<0.000000e+00> : vector<64x4xf32>
    %79 = tpu.matmul %77, %78, %cst_39 {dimension_numbers = #tpu.dot_dimension_numbers<[1], [0], [0], [1], [0, 0, 1, 1], [], []>} : vector<64x32xf32>, vector<32x4xf32>, vector<64x4xf32> -> vector<64x4xf32>
    %80 = vector.shape_cast %79 : vector<64x4xf32> to vector<8x8x4xf32>
    %cst_40 = arith.constant 0.000000e+00 : f32
    %81 = vector.broadcast %cst_40 : f32 to vector<8x8x1xf32>
    %82 = arith.cmpf ogt, %7, %81 : vector<8x8x1xf32>
    %cst_41 = arith.constant -1.000000e+09 : f32
    %83 = vector.shape_cast %82 : vector<8x8x1xi1> to vector<8x8x1xi1>
    %84 = vector.broadcast %83 : vector<8x8x1xi1> to vector<8x8x4xi1>
    %85 = vector.broadcast %cst_41 : f32 to vector<8x8x4xf32>
    %86 = arith.select %84, %80, %85 : vector<8x8x4xi1>, vector<8x8x4xf32>
    %cst_42 = arith.constant dense<0xFF800000> : vector<8x4xf32>
    %87 = vector.multi_reduction <maximumf>, %86, %cst_42 [0] : vector<8x8x4xf32> to vector<8x4xf32>
    %88 = vector.shape_cast %87 : vector<8x4xf32> to vector<1x8x4xf32>
    %89 = vector.broadcast %88 : vector<1x8x4xf32> to vector<8x8x4xf32>
    %90 = arith.subf %86, %89 : vector<8x8x4xf32>
    %91 = math.exp %90 : vector<8x8x4xf32>
    %cst_43 = arith.constant dense<0.000000e+00> : vector<8x4xf32>
    %92 = vector.multi_reduction <add>, %91, %cst_43 [0] : vector<8x8x4xf32> to vector<8x4xf32>
    %93 = vector.shape_cast %92 : vector<8x4xf32> to vector<1x8x4xf32>
    %94 = tpu.reciprocal %93 {approx = true} : vector<1x8x4xf32> -> vector<1x8x4xf32>
    %95 = vector.broadcast %94 : vector<1x8x4xf32> to vector<8x8x4xf32>
    %96 = arith.mulf %91, %95 : vector<8x8x4xf32>
    %97 = vector.broadcast %7 : vector<8x8x1xf32> to vector<8x8x4xf32>
    %98 = arith.mulf %96, %97 : vector<8x8x4xf32>
    %99 = vector.shape_cast %98 : vector<8x8x4xf32> to vector<64x4xf32>
    %c0_44 = arith.constant 0 : index
    %c0_45 = arith.constant 0 : index
    %100 = vector.load %arg17[%c0_44, %c0_45] : memref<4x32xf32, #tpu.memory_space<vmem>>, vector<4x32xf32>
    %cst_46 = arith.constant dense<0.000000e+00> : vector<64x32xf32>
    %101 = tpu.matmul %99, %100, %cst_46 {dimension_numbers = #tpu.dot_dimension_numbers<[1], [0], [0], [1], [0, 0, 1, 1], [], []>} : vector<64x4xf32>, vector<4x32xf32>, vector<64x32xf32> -> vector<64x32xf32>
    %102 = vector.shape_cast %101 : vector<64x32xf32> to vector<8x8x32xf32>
    %103 = vector.shape_cast %15 : vector<8x32xf32> to vector<1x8x32xf32>
    %104 = vector.broadcast %103 : vector<1x8x32xf32> to vector<8x8x32xf32>
    %105 = arith.mulf %102, %104 : vector<8x8x32xf32>
    %cst_47 = arith.constant dense<0.000000e+00> : vector<8x32xf32>
    %106 = vector.multi_reduction <add>, %105, %cst_47 [1] : vector<8x8x32xf32> to vector<8x32xf32>
    %c0_i32 = arith.constant 0 : i32
    %107 = arith.cmpi eq, %arg1, %c0_i32 : i32
    %108 = arith.extui %107 : i1 to i32
    %c0_i32_48 = arith.constant 0 : i32
    %109 = arith.cmpi ne, %108, %c0_i32_48 : i32
    scf.if %109 {
      %c0_53 = arith.constant 0 : index
      %c0_54 = arith.constant 0 : index
      %116 = vector.load %arg20[%c0_53, %c0_54] : memref<8x32xf32, #tpu.memory_space<vmem>>, vector<8x32xf32>
      tpu.vector_store %arg20[%c0_53, %c0_54], %106 {strides = array<i32>} : memref<8x32xf32, #tpu.memory_space<vmem>>, vector<8x32xf32>,
    } else {
    }
    %c0_i32_49 = arith.constant 0 : i32
    %110 = arith.cmpi sgt, %arg1, %c0_i32_49 : i32
    %111 = arith.extui %110 : i1 to i32
    %c0_i32_50 = arith.constant 0 : i32
    %112 = arith.cmpi ne, %111, %c0_i32_50 : i32
    scf.if %112 {
      %c0_53 = arith.constant 0 : index
      %c0_54 = arith.constant 0 : index
      %116 = vector.load %arg20[%c0_53, %c0_54] : memref<8x32xf32, #tpu.memory_space<vmem>>, vector<8x32xf32>
      %117 = arith.addf %116, %106 : vector<8x32xf32>
      %c0_55 = arith.constant 0 : index
      %c0_56 = arith.constant 0 : index
      %118 = vector.load %arg20[%c0_55, %c0_56] : memref<8x32xf32, #tpu.memory_space<vmem>>, vector<8x32xf32>
      tpu.vector_store %arg20[%c0_55, %c0_56], %117 {strides = array<i32>} : memref<8x32xf32, #tpu.memory_space<vmem>>, vector<8x32xf32>,
    } else {
    }
    %c0_i32_51 = arith.constant 0 : i32
    %113 = arith.cmpi eq, %arg1, %c0_i32_51 : i32
    %114 = arith.extui %113 : i1 to i32
    %c0_i32_52 = arith.constant 0 : i32
    %115 = arith.cmpi ne, %114, %c0_i32_52 : i32
    scf.if %115 {
      %c0_53 = arith.constant 0 : index
      %c0_54 = arith.constant 0 : index
      %116 = vector.load %arg20[%c0_53, %c0_54] : memref<8x32xf32, #tpu.memory_space<vmem>>, vector<8x32xf32>
      %c0_55 = arith.constant 0 : index
      %c0_56 = arith.constant 0 : index
      %117 = vector.load %arg14[%c0_55, %c0_56] : memref<32x32xf32, #tpu.memory_space<vmem>>, vector<32x32xf32>
      %cst_57 = arith.constant dense<0.000000e+00> : vector<8x32xf32>
      %118 = tpu.matmul %116, %117, %cst_57 {dimension_numbers = #tpu.dot_dimension_numbers<[1], [0], [0], [1], [0, 0, 1, 1], [], []>} : vector<8x32xf32>, vector<32x32xf32>, vector<8x32xf32> -> vector<8x32xf32>
      %c0_58 = arith.constant 0 : index
      %c0_59 = arith.constant 0 : index
      %119 = vector.load %arg15[%c0_58, %c0_59] : memref<1x32xf32, #tpu.memory_space<vmem>>, vector<1x32xf32>
      %120 = vector.broadcast %119 : vector<1x32xf32> to vector<8x32xf32>
      %121 = arith.addf %118, %120 : vector<8x32xf32>
      %c0_60 = arith.constant 0 : index
      %c0_61 = arith.constant 0 : index
      %c0_62 = arith.constant 0 : index
      %122 = vector.load %arg6[%c0_60, %c0_61, %c0_62] : memref<1x8x32xf32, #tpu.memory_space<vmem>>, vector<1x8x32xf32>
      %123 = vector.shape_cast %122 : vector<1x8x32xf32> to vector<8x32xf32>
      %124 = vector.broadcast %1 : vector<8x1xf32> to vector<8x32xf32>
      %125 = arith.mulf %121, %124 : vector<8x32xf32>
      %126 = arith.addf %123, %125 : vector<8x32xf32>
      %c0_63 = arith.constant 0 : index
      %c0_64 = arith.constant 0 : index
      %c0_65 = arith.constant 0 : index
      %127 = vector.load %arg18[%c0_63, %c0_64, %c0_65] : memref<1x8x32xf32, #tpu.memory_space<vmem>>, vector<1x8x32xf32>
      %128 = vector.shape_cast %127 : vector<1x8x32xf32> to vector<8x32xf32>
      %129 = vector.shape_cast %126 : vector<8x32xf32> to vector<1x8x32xf32>
      tpu.vector_store %arg18[%c0_63, %c0_64, %c0_65], %129 {strides = array<i32>} : memref<1x8x32xf32, #tpu.memory_space<vmem>>, vector<1x8x32xf32>,
    } else {
    }
    return
  }
  func.func @transform_0(%arg0: i32, %arg1: i32) -> (i32, i32, i32) {
    %c0_i32 = arith.constant 0 : i32
    %c0_i32_0 = arith.constant 0 : i32
    %c0_i32_1 = arith.constant 0 : i32
    return %arg0, %c0_i32, %c0_i32_0 : i32, i32, i32
  }
  func.func @transform_1(%arg0: i32, %arg1: i32) -> (i32, i32, i32) {
    %c0_i32 = arith.constant 0 : i32
    %c0_i32_0 = arith.constant 0 : i32
    return %arg0, %c0_i32, %arg1 : i32, i32, i32
  }
  func.func @transform_2(%arg0: i32, %arg1: i32) -> (i32, i32, i32) {
    %c0_i32 = arith.constant 0 : i32
    %c0_i32_0 = arith.constant 0 : i32
    %c0_i32_1 = arith.constant 0 : i32
    return %arg0, %c0_i32, %c0_i32_0 : i32, i32, i32
  }
  func.func @transform_3(%arg0: i32, %arg1: i32) -> (i32, i32, i32) {
    %c0_i32 = arith.constant 0 : i32
    %c0_i32_0 = arith.constant 0 : i32
    return %arg0, %arg1, %c0_i32 : i32, i32, i32
  }
  func.func @transform_4(%arg0: i32, %arg1: i32) -> (i32, i32, i32) {
    %c0_i32 = arith.constant 0 : i32
    %c0_i32_0 = arith.constant 0 : i32
    %c0_i32_1 = arith.constant 0 : i32
    return %arg0, %c0_i32, %c0_i32_0 : i32, i32, i32
  }
  func.func @transform_5(%arg0: i32, %arg1: i32) -> (i32, i32, i32, i32) {
    %c0_i32 = arith.constant 0 : i32
    %c0_i32_0 = arith.constant 0 : i32
    %c0_i32_1 = arith.constant 0 : i32
    return %arg0, %c0_i32, %arg1, %c0_i32_0 : i32, i32, i32, i32
  }
  func.func @transform_6(%arg0: i32, %arg1: i32) -> (i32, i32) {
    %c0_i32 = arith.constant 0 : i32
    %c0_i32_0 = arith.constant 0 : i32
    %c0_i32_1 = arith.constant 0 : i32
    return %c0_i32, %c0_i32_0 : i32, i32
  }
  func.func @transform_7(%arg0: i32, %arg1: i32) -> (i32, i32) {
    %c0_i32 = arith.constant 0 : i32
    %c0_i32_0 = arith.constant 0 : i32
    %c0_i32_1 = arith.constant 0 : i32
    return %c0_i32, %c0_i32_0 : i32, i32
  }
  func.func @transform_8(%arg0: i32, %arg1: i32) -> (i32, i32) {
    %c0_i32 = arith.constant 0 : i32
    %c0_i32_0 = arith.constant 0 : i32
    %c0_i32_1 = arith.constant 0 : i32
    return %c0_i32, %c0_i32_0 : i32, i32
  }
  func.func @transform_9(%arg0: i32, %arg1: i32) -> (i32, i32) {
    %c0_i32 = arith.constant 0 : i32
    %c0_i32_0 = arith.constant 0 : i32
    %c0_i32_1 = arith.constant 0 : i32
    return %c0_i32, %c0_i32_0 : i32, i32
  }
  func.func @transform_10(%arg0: i32, %arg1: i32) -> (i32, i32) {
    %c0_i32 = arith.constant 0 : i32
    %c0_i32_0 = arith.constant 0 : i32
    %c0_i32_1 = arith.constant 0 : i32
    return %c0_i32, %c0_i32_0 : i32, i32
  }
  func.func @transform_11(%arg0: i32, %arg1: i32) -> (i32, i32) {
    %c0_i32 = arith.constant 0 : i32
    %c0_i32_0 = arith.constant 0 : i32
    %c0_i32_1 = arith.constant 0 : i32
    return %c0_i32, %c0_i32_0 : i32, i32
  }
  func.func @transform_12(%arg0: i32, %arg1: i32) -> (i32, i32) {
    %c0_i32 = arith.constant 0 : i32
    %c0_i32_0 = arith.constant 0 : i32
    %c0_i32_1 = arith.constant 0 : i32
    return %c0_i32, %c0_i32_0 : i32, i32
  }
  func.func @transform_13(%arg0: i32, %arg1: i32) -> (i32, i32) {
    %c0_i32 = arith.constant 0 : i32
    %c0_i32_0 = arith.constant 0 : i32
    %c0_i32_1 = arith.constant 0 : i32
    return %c0_i32, %c0_i32_0 : i32, i32
  }
  func.func @transform_14(%arg0: i32, %arg1: i32) -> (i32, i32) {
    %c0_i32 = arith.constant 0 : i32
    %c0_i32_0 = arith.constant 0 : i32
    %c0_i32_1 = arith.constant 0 : i32
    return %c0_i32, %c0_i32_0 : i32, i32
  }
  func.func @transform_15(%arg0: i32, %arg1: i32) -> (i32, i32) {
    %c0_i32 = arith.constant 0 : i32
    %c0_i32_0 = arith.constant 0 : i32
    %c0_i32_1 = arith.constant 0 : i32
    return %c0_i32, %c0_i32_0 : i32, i32
  }
  func.func @transform_16(%arg0: i32, %arg1: i32) -> (i32, i32, i32) {
    %c0_i32 = arith.constant 0 : i32
    %c0_i32_0 = arith.constant 0 : i32
    %c0_i32_1 = arith.constant 0 : i32
    return %arg0, %c0_i32, %c0_i32_0 : i32, i32, i32
  }
  func.func @transform_17(%arg0: i32, %arg1: i32) -> (i32, i32, i32, i32) {
    %c0_i32 = arith.constant 0 : i32
    %c0_i32_0 = arith.constant 0 : i32
    %c0_i32_1 = arith.constant 0 : i32
    return %arg0, %c0_i32, %arg1, %c0_i32_0 : i32, i32, i32, i32
  }
}

module attributes {stable_mosaic.version = 11 : i64} {
  func.func @_fused_mlp_kernel(%arg0: i32, %arg1: memref<16x32xf32, #tpu.memory_space<vmem>>, %arg2: memref<1x32xf32, #tpu.memory_space<vmem>>, %arg3: memref<1x32xf32, #tpu.memory_space<vmem>>, %arg4: memref<32x128xf32, #tpu.memory_space<vmem>>, %arg5: memref<1x128xf32, #tpu.memory_space<vmem>>, %arg6: memref<128x32xf32, #tpu.memory_space<vmem>>, %arg7: memref<1x32xf32, #tpu.memory_space<vmem>>, %arg8: memref<16x1xf32, #tpu.memory_space<vmem>>, %arg9: memref<16x32xf32, #tpu.memory_space<vmem>>) attributes {dimension_semantics = [#tpu.dimension_semantics<parallel>], iteration_bounds = array<i64: 1>, scalar_prefetch = 0 : i64, scratch_operands = 0 : i64, tpu.core_type = #tpu.core_type<tc>, window_params = [{transform_indices = @transform_0, window_bounds = array<i64: 16, 32>}, {pipeline_mode = #tpu.pipeline_mode<synchronous>, transform_indices = @transform_1, window_bounds = array<i64: 1, 32>}, {pipeline_mode = #tpu.pipeline_mode<synchronous>, transform_indices = @transform_2, window_bounds = array<i64: 1, 32>}, {pipeline_mode = #tpu.pipeline_mode<synchronous>, transform_indices = @transform_3, window_bounds = array<i64: 32, 128>}, {pipeline_mode = #tpu.pipeline_mode<synchronous>, transform_indices = @transform_4, window_bounds = array<i64: 1, 128>}, {pipeline_mode = #tpu.pipeline_mode<synchronous>, transform_indices = @transform_5, window_bounds = array<i64: 128, 32>}, {pipeline_mode = #tpu.pipeline_mode<synchronous>, transform_indices = @transform_6, window_bounds = array<i64: 1, 32>}, {transform_indices = @transform_7, window_bounds = array<i64: 16, 1>}, {transform_indices = @transform_8, window_bounds = array<i64: 16, 32>}]} {
    %c0 = arith.constant 0 : index
    %c0_0 = arith.constant 0 : index
    %0 = vector.load %arg1[%c0, %c0_0] : memref<16x32xf32, #tpu.memory_space<vmem>>, vector<16x32xf32>
    %cst = arith.constant dense<0.000000e+00> : vector<16xf32>
    %1 = vector.multi_reduction <add>, %0, %cst [1] : vector<16x32xf32> to vector<16xf32>
    %2 = vector.shape_cast %1 : vector<16xf32> to vector<16x1xf32>
    %cst_1 = arith.constant 3.200000e+01 : f32
    %3 = vector.broadcast %cst_1 : f32 to vector<16x1xf32>
    %4 = arith.divf %2, %3 : vector<16x1xf32>
    %5 = vector.broadcast %4 : vector<16x1xf32> to vector<16x32xf32>
    %6 = arith.subf %0, %5 : vector<16x32xf32>
    %7 = arith.mulf %6, %6 : vector<16x32xf32>
    %cst_2 = arith.constant dense<0.000000e+00> : vector<16xf32>
    %8 = vector.multi_reduction <add>, %7, %cst_2 [1] : vector<16x32xf32> to vector<16xf32>
    %9 = vector.shape_cast %8 : vector<16xf32> to vector<16x1xf32>
    %cst_3 = arith.constant 3.200000e+01 : f32
    %10 = vector.broadcast %cst_3 : f32 to vector<16x1xf32>
    %11 = arith.divf %9, %10 : vector<16x1xf32>
    %cst_4 = arith.constant 9.99999974E-6 : f32
    %12 = vector.broadcast %cst_4 : f32 to vector<16x1xf32>
    %13 = arith.addf %11, %12 : vector<16x1xf32>
    %14 = math.rsqrt %13 : vector<16x1xf32>
    %15 = vector.broadcast %14 : vector<16x1xf32> to vector<16x32xf32>
    %16 = arith.mulf %6, %15 : vector<16x32xf32>
    %c0_5 = arith.constant 0 : index
    %c0_6 = arith.constant 0 : index
    %17 = vector.load %arg2[%c0_5, %c0_6] : memref<1x32xf32, #tpu.memory_space<vmem>>, vector<1x32xf32>
    %18 = vector.broadcast %17 : vector<1x32xf32> to vector<16x32xf32>
    %19 = arith.mulf %16, %18 : vector<16x32xf32>
    %c0_7 = arith.constant 0 : index
    %c0_8 = arith.constant 0 : index
    %20 = vector.load %arg3[%c0_7, %c0_8] : memref<1x32xf32, #tpu.memory_space<vmem>>, vector<1x32xf32>
    %21 = vector.broadcast %20 : vector<1x32xf32> to vector<16x32xf32>
    %22 = arith.addf %19, %21 : vector<16x32xf32>
    %c0_9 = arith.constant 0 : index
    %c0_10 = arith.constant 0 : index
    %23 = vector.load %arg4[%c0_9, %c0_10] : memref<32x128xf32, #tpu.memory_space<vmem>>, vector<32x128xf32>
    %cst_11 = arith.constant dense<0.000000e+00> : vector<16x128xf32>
    %24 = tpu.matmul %22, %23, %cst_11 {dimension_numbers = #tpu.dot_dimension_numbers<[1], [0], [0], [1], [0, 0, 1, 1], [], []>} : vector<16x32xf32>, vector<32x128xf32>, vector<16x128xf32> -> vector<16x128xf32>
    %c0_12 = arith.constant 0 : index
    %c0_13 = arith.constant 0 : index
    %25 = vector.load %arg5[%c0_12, %c0_13] : memref<1x128xf32, #tpu.memory_space<vmem>>, vector<1x128xf32>
    %26 = vector.broadcast %25 : vector<1x128xf32> to vector<16x128xf32>
    %27 = arith.addf %24, %26 : vector<16x128xf32>
    %cst_14 = arith.constant 0.000000e+00 : f32
    %28 = vector.broadcast %cst_14 : f32 to vector<16x128xf32>
    %29 = arith.cmpf oge, %27, %28 : vector<16x128xf32>
    %cst_15 = arith.constant 0.00999999977 : f32
    %30 = vector.broadcast %cst_15 : f32 to vector<16x128xf32>
    %31 = arith.mulf %30, %27 : vector<16x128xf32>
    %32 = arith.select %29, %27, %31 : vector<16x128xi1>, vector<16x128xf32>
    %c0_16 = arith.constant 0 : index
    %c0_17 = arith.constant 0 : index
    %33 = vector.load %arg6[%c0_16, %c0_17] : memref<128x32xf32, #tpu.memory_space<vmem>>, vector<128x32xf32>
    %cst_18 = arith.constant dense<0.000000e+00> : vector<16x32xf32>
    %34 = tpu.matmul %32, %33, %cst_18 {dimension_numbers = #tpu.dot_dimension_numbers<[1], [0], [0], [1], [0, 0, 1, 1], [], []>} : vector<16x128xf32>, vector<128x32xf32>, vector<16x32xf32> -> vector<16x32xf32>
    %c0_19 = arith.constant 0 : index
    %c0_20 = arith.constant 0 : index
    %35 = vector.load %arg7[%c0_19, %c0_20] : memref<1x32xf32, #tpu.memory_space<vmem>>, vector<1x32xf32>
    %36 = vector.broadcast %35 : vector<1x32xf32> to vector<16x32xf32>
    %37 = arith.addf %34, %36 : vector<16x32xf32>
    %c0_21 = arith.constant 0 : index
    %c0_22 = arith.constant 0 : index
    %38 = vector.load %arg8[%c0_21, %c0_22] : memref<16x1xf32, #tpu.memory_space<vmem>>, vector<16x1xf32>
    %39 = vector.broadcast %38 : vector<16x1xf32> to vector<16x32xf32>
    %40 = arith.mulf %37, %39 : vector<16x32xf32>
    %41 = arith.addf %0, %40 : vector<16x32xf32>
    %c0_23 = arith.constant 0 : index
    %c0_24 = arith.constant 0 : index
    %42 = vector.load %arg9[%c0_23, %c0_24] : memref<16x32xf32, #tpu.memory_space<vmem>>, vector<16x32xf32>
    tpu.vector_store %arg9[%c0_23, %c0_24], %41 {strides = array<i32>} : memref<16x32xf32, #tpu.memory_space<vmem>>, vector<16x32xf32>,
    return
  }
  func.func @transform_0(%arg0: i32) -> (i32, i32) {
    %c0_i32 = arith.constant 0 : i32
    %c0_i32_0 = arith.constant 0 : i32
    return %arg0, %c0_i32 : i32, i32
  }
  func.func @transform_1(%arg0: i32) -> (i32, i32) {
    %c0_i32 = arith.constant 0 : i32
    %c0_i32_0 = arith.constant 0 : i32
    %c0_i32_1 = arith.constant 0 : i32
    return %c0_i32, %c0_i32_0 : i32, i32
  }
  func.func @transform_2(%arg0: i32) -> (i32, i32) {
    %c0_i32 = arith.constant 0 : i32
    %c0_i32_0 = arith.constant 0 : i32
    %c0_i32_1 = arith.constant 0 : i32
    return %c0_i32, %c0_i32_0 : i32, i32
  }
  func.func @transform_3(%arg0: i32) -> (i32, i32) {
    %c0_i32 = arith.constant 0 : i32
    %c0_i32_0 = arith.constant 0 : i32
    %c0_i32_1 = arith.constant 0 : i32
    return %c0_i32, %c0_i32_0 : i32, i32
  }
  func.func @transform_4(%arg0: i32) -> (i32, i32) {
    %c0_i32 = arith.constant 0 : i32
    %c0_i32_0 = arith.constant 0 : i32
    %c0_i32_1 = arith.constant 0 : i32
    return %c0_i32, %c0_i32_0 : i32, i32
  }
  func.func @transform_5(%arg0: i32) -> (i32, i32) {
    %c0_i32 = arith.constant 0 : i32
    %c0_i32_0 = arith.constant 0 : i32
    %c0_i32_1 = arith.constant 0 : i32
    return %c0_i32, %c0_i32_0 : i32, i32
  }
  func.func @transform_6(%arg0: i32) -> (i32, i32) {
    %c0_i32 = arith.constant 0 : i32
    %c0_i32_0 = arith.constant 0 : i32
    %c0_i32_1 = arith.constant 0 : i32
    return %c0_i32, %c0_i32_0 : i32, i32
  }
  func.func @transform_7(%arg0: i32) -> (i32, i32) {
    %c0_i32 = arith.constant 0 : i32
    %c0_i32_0 = arith.constant 0 : i32
    return %arg0, %c0_i32 : i32, i32
  }
  func.func @transform_8(%arg0: i32) -> (i32, i32) {
    %c0_i32 = arith.constant 0 : i32
    %c0_i32_0 = arith.constant 0 : i32
    return %arg0, %c0_i32 : i32, i32
  }
}

module attributes {stable_mosaic.version = 11 : i64} {
  func.func @_fused_mlp_kernel(%arg0: i32, %arg1: memref<128x32xbf16, #tpu.memory_space<vmem>>, %arg2: memref<32x16xf32, #tpu.memory_space<vmem>>, %arg3: memref<1x16xf32, #tpu.memory_space<vmem>>, %arg4: memref<16x5xf32, #tpu.memory_space<vmem>>, %arg5: memref<1x5xf32, #tpu.memory_space<vmem>>, %arg6: memref<128x5xf32, #tpu.memory_space<vmem>>) attributes {dimension_semantics = [#tpu.dimension_semantics<parallel>], iteration_bounds = array<i64: 1>, scalar_prefetch = 0 : i64, scratch_operands = 0 : i64, tpu.core_type = #tpu.core_type<tc>, window_params = [{transform_indices = @transform_0, window_bounds = array<i64: 128, 32>}, {pipeline_mode = #tpu.pipeline_mode<synchronous>, transform_indices = @transform_1, window_bounds = array<i64: 32, 16>}, {pipeline_mode = #tpu.pipeline_mode<synchronous>, transform_indices = @transform_2, window_bounds = array<i64: 1, 16>}, {pipeline_mode = #tpu.pipeline_mode<synchronous>, transform_indices = @transform_3, window_bounds = array<i64: 16, 5>}, {pipeline_mode = #tpu.pipeline_mode<synchronous>, transform_indices = @transform_4, window_bounds = array<i64: 1, 5>}, {transform_indices = @transform_5, window_bounds = array<i64: 128, 5>}]} {
    %c0 = arith.constant 0 : index
    %c0_0 = arith.constant 0 : index
    %0 = vector.load %arg1[%c0, %c0_0] : memref<128x32xbf16, #tpu.memory_space<vmem>>, vector<128x32xbf16>
    %1 = arith.extf %0 : vector<128x32xbf16> to vector<128x32xf32>
    %c0_1 = arith.constant 0 : index
    %c0_2 = arith.constant 0 : index
    %2 = vector.load %arg2[%c0_1, %c0_2] : memref<32x16xf32, #tpu.memory_space<vmem>>, vector<32x16xf32>
    %cst = arith.constant dense<0.000000e+00> : vector<128x16xf32>
    %3 = tpu.matmul %1, %2, %cst {dimension_numbers = #tpu.dot_dimension_numbers<[1], [0], [0], [1], [0, 0, 1, 1], [], []>} : vector<128x32xf32>, vector<32x16xf32>, vector<128x16xf32> -> vector<128x16xf32>
    %c0_3 = arith.constant 0 : index
    %c0_4 = arith.constant 0 : index
    %4 = vector.load %arg3[%c0_3, %c0_4] : memref<1x16xf32, #tpu.memory_space<vmem>>, vector<1x16xf32>
    %5 = vector.broadcast %4 : vector<1x16xf32> to vector<128x16xf32>
    %6 = arith.addf %3, %5 : vector<128x16xf32>
    %cst_5 = arith.constant 0.000000e+00 : f32
    %7 = vector.broadcast %cst_5 : f32 to vector<128x16xf32>
    %8 = arith.maximumf %6, %7 : vector<128x16xf32>
    %c0_6 = arith.constant 0 : index
    %c0_7 = arith.constant 0 : index
    %9 = vector.load %arg4[%c0_6, %c0_7] : memref<16x5xf32, #tpu.memory_space<vmem>>, vector<16x5xf32>
    %cst_8 = arith.constant dense<0.000000e+00> : vector<128x5xf32>
    %10 = tpu.matmul %8, %9, %cst_8 {dimension_numbers = #tpu.dot_dimension_numbers<[1], [0], [0], [1], [0, 0, 1, 1], [], []>} : vector<128x16xf32>, vector<16x5xf32>, vector<128x5xf32> -> vector<128x5xf32>
    %c0_9 = arith.constant 0 : index
    %c0_10 = arith.constant 0 : index
    %11 = vector.load %arg5[%c0_9, %c0_10] : memref<1x5xf32, #tpu.memory_space<vmem>>, vector<1x5xf32>
    %12 = vector.broadcast %11 : vector<1x5xf32> to vector<128x5xf32>
    %13 = arith.addf %10, %12 : vector<128x5xf32>
    %c0_11 = arith.constant 0 : index
    %c0_12 = arith.constant 0 : index
    %14 = vector.load %arg6[%c0_11, %c0_12] : memref<128x5xf32, #tpu.memory_space<vmem>>, vector<128x5xf32>
    tpu.vector_store %arg6[%c0_11, %c0_12], %13 {strides = array<i32>} : memref<128x5xf32, #tpu.memory_space<vmem>>, vector<128x5xf32>,
    return
  }
  func.func @transform_0(%arg0: i32) -> (i32, i32) {
    %c0_i32 = arith.constant 0 : i32
    %c0_i32_0 = arith.constant 0 : i32
    return %arg0, %c0_i32 : i32, i32
  }
  func.func @transform_1(%arg0: i32) -> (i32, i32) {
    %c0_i32 = arith.constant 0 : i32
    %c0_i32_0 = arith.constant 0 : i32
    %c0_i32_1 = arith.constant 0 : i32
    return %c0_i32, %c0_i32_0 : i32, i32
  }
  func.func @transform_2(%arg0: i32) -> (i32, i32) {
    %c0_i32 = arith.constant 0 : i32
    %c0_i32_0 = arith.constant 0 : i32
    %c0_i32_1 = arith.constant 0 : i32
    return %c0_i32, %c0_i32_0 : i32, i32
  }
  func.func @transform_3(%arg0: i32) -> (i32, i32) {
    %c0_i32 = arith.constant 0 : i32
    %c0_i32_0 = arith.constant 0 : i32
    %c0_i32_1 = arith.constant 0 : i32
    return %c0_i32, %c0_i32_0 : i32, i32
  }
  func.func @transform_4(%arg0: i32) -> (i32, i32) {
    %c0_i32 = arith.constant 0 : i32
    %c0_i32_0 = arith.constant 0 : i32
    %c0_i32_1 = arith.constant 0 : i32
    return %c0_i32, %c0_i32_0 : i32, i32
  }
  func.func @transform_5(%arg0: i32) -> (i32, i32) {
    %c0_i32 = arith.constant 0 : i32
    %c0_i32_0 = arith.constant 0 : i32
    return %arg0, %c0_i32 : i32, i32
  }
}

module attributes {stable_mosaic.version = 11 : i64} {
  func.func @_fused_mlp_kernel(%arg0: i32, %arg1: memref<128x32xbf16, #tpu.memory_space<vmem>>, %arg2: memref<1x32xf32, #tpu.memory_space<vmem>>, %arg3: memref<1x32xf32, #tpu.memory_space<vmem>>, %arg4: memref<32x128xf32, #tpu.memory_space<vmem>>, %arg5: memref<1x128xf32, #tpu.memory_space<vmem>>, %arg6: memref<128x32xf32, #tpu.memory_space<vmem>>, %arg7: memref<1x32xf32, #tpu.memory_space<vmem>>, %arg8: memref<128x1xf32, #tpu.memory_space<vmem>>, %arg9: memref<128x32xbf16, #tpu.memory_space<vmem>>) attributes {dimension_semantics = [#tpu.dimension_semantics<parallel>], iteration_bounds = array<i64: 1>, scalar_prefetch = 0 : i64, scratch_operands = 0 : i64, tpu.core_type = #tpu.core_type<tc>, window_params = [{transform_indices = @transform_0, window_bounds = array<i64: 128, 32>}, {pipeline_mode = #tpu.pipeline_mode<synchronous>, transform_indices = @transform_1, window_bounds = array<i64: 1, 32>}, {pipeline_mode = #tpu.pipeline_mode<synchronous>, transform_indices = @transform_2, window_bounds = array<i64: 1, 32>}, {pipeline_mode = #tpu.pipeline_mode<synchronous>, transform_indices = @transform_3, window_bounds = array<i64: 32, 128>}, {pipeline_mode = #tpu.pipeline_mode<synchronous>, transform_indices = @transform_4, window_bounds = array<i64: 1, 128>}, {pipeline_mode = #tpu.pipeline_mode<synchronous>, transform_indices = @transform_5, window_bounds = array<i64: 128, 32>}, {pipeline_mode = #tpu.pipeline_mode<synchronous>, transform_indices = @transform_6, window_bounds = array<i64: 1, 32>}, {transform_indices = @transform_7, window_bounds = array<i64: 128, 1>}, {transform_indices = @transform_8, window_bounds = array<i64: 128, 32>}]} {
    %c0 = arith.constant 0 : index
    %c0_0 = arith.constant 0 : index
    %0 = vector.load %arg1[%c0, %c0_0] : memref<128x32xbf16, #tpu.memory_space<vmem>>, vector<128x32xbf16>
    %1 = arith.extf %0 : vector<128x32xbf16> to vector<128x32xf32>
    %cst = arith.constant dense<0.000000e+00> : vector<128xf32>
    %2 = vector.multi_reduction <add>, %1, %cst [1] : vector<128x32xf32> to vector<128xf32>
    %3 = vector.shape_cast %2 : vector<128xf32> to vector<128x1xf32>
    %cst_1 = arith.constant 3.200000e+01 : f32
    %4 = vector.broadcast %cst_1 : f32 to vector<128x1xf32>
    %5 = arith.divf %3, %4 : vector<128x1xf32>
    %6 = vector.broadcast %5 : vector<128x1xf32> to vector<128x32xf32>
    %7 = arith.subf %1, %6 : vector<128x32xf32>
    %8 = arith.mulf %7, %7 : vector<128x32xf32>
    %cst_2 = arith.constant dense<0.000000e+00> : vector<128xf32>
    %9 = vector.multi_reduction <add>, %8, %cst_2 [1] : vector<128x32xf32> to vector<128xf32>
    %10 = vector.shape_cast %9 : vector<128xf32> to vector<128x1xf32>
    %cst_3 = arith.constant 3.200000e+01 : f32
    %11 = vector.broadcast %cst_3 : f32 to vector<128x1xf32>
    %12 = arith.divf %10, %11 : vector<128x1xf32>
    %cst_4 = arith.constant 9.99999974E-6 : f32
    %13 = vector.broadcast %cst_4 : f32 to vector<128x1xf32>
    %14 = arith.addf %12, %13 : vector<128x1xf32>
    %15 = math.rsqrt %14 : vector<128x1xf32>
    %16 = vector.broadcast %15 : vector<128x1xf32> to vector<128x32xf32>
    %17 = arith.mulf %7, %16 : vector<128x32xf32>
    %c0_5 = arith.constant 0 : index
    %c0_6 = arith.constant 0 : index
    %18 = vector.load %arg2[%c0_5, %c0_6] : memref<1x32xf32, #tpu.memory_space<vmem>>, vector<1x32xf32>
    %19 = vector.broadcast %18 : vector<1x32xf32> to vector<128x32xf32>
    %20 = arith.mulf %17, %19 : vector<128x32xf32>
    %c0_7 = arith.constant 0 : index
    %c0_8 = arith.constant 0 : index
    %21 = vector.load %arg3[%c0_7, %c0_8] : memref<1x32xf32, #tpu.memory_space<vmem>>, vector<1x32xf32>
    %22 = vector.broadcast %21 : vector<1x32xf32> to vector<128x32xf32>
    %23 = arith.addf %20, %22 : vector<128x32xf32>
    %c0_9 = arith.constant 0 : index
    %c0_10 = arith.constant 0 : index
    %24 = vector.load %arg4[%c0_9, %c0_10] : memref<32x128xf32, #tpu.memory_space<vmem>>, vector<32x128xf32>
    %cst_11 = arith.constant dense<0.000000e+00> : vector<128x128xf32>
    %25 = tpu.matmul %23, %24, %cst_11 {dimension_numbers = #tpu.dot_dimension_numbers<[1], [0], [0], [1], [0, 0, 1, 1], [], []>} : vector<128x32xf32>, vector<32x128xf32>, vector<128x128xf32> -> vector<128x128xf32>
    %c0_12 = arith.constant 0 : index
    %c0_13 = arith.constant 0 : index
    %26 = vector.load %arg5[%c0_12, %c0_13] : memref<1x128xf32, #tpu.memory_space<vmem>>, vector<1x128xf32>
    %27 = vector.broadcast %26 : vector<1x128xf32> to vector<128x128xf32>
    %28 = arith.addf %25, %27 : vector<128x128xf32>
    %cst_14 = arith.constant 0.000000e+00 : f32
    %29 = vector.broadcast %cst_14 : f32 to vector<128x128xf32>
    %30 = arith.cmpf oge, %28, %29 : vector<128x128xf32>
    %cst_15 = arith.constant 0.00999999977 : f32
    %31 = vector.broadcast %cst_15 : f32 to vector<128x128xf32>
    %32 = arith.mulf %31, %28 : vector<128x128xf32>
    %33 = arith.select %30, %28, %32 : vector<128x128xi1>, vector<128x128xf32>
    %c0_16 = arith.constant 0 : index
    %c0_17 = arith.constant 0 : index
    %34 = vector.load %arg6[%c0_16, %c0_17] : memref<128x32xf32, #tpu.memory_space<vmem>>, vector<128x32xf32>
    %cst_18 = arith.constant dense<0.000000e+00> : vector<128x32xf32>
    %35 = tpu.matmul %33, %34, %cst_18 {dimension_numbers = #tpu.dot_dimension_numbers<[1], [0], [0], [1], [0, 0, 1, 1], [], []>} : vector<128x128xf32>, vector<128x32xf32>, vector<128x32xf32> -> vector<128x32xf32>
    %c0_19 = arith.constant 0 : index
    %c0_20 = arith.constant 0 : index
    %36 = vector.load %arg7[%c0_19, %c0_20] : memref<1x32xf32, #tpu.memory_space<vmem>>, vector<1x32xf32>
    %37 = vector.broadcast %36 : vector<1x32xf32> to vector<128x32xf32>
    %38 = arith.addf %35, %37 : vector<128x32xf32>
    %c0_21 = arith.constant 0 : index
    %c0_22 = arith.constant 0 : index
    %39 = vector.load %arg8[%c0_21, %c0_22] : memref<128x1xf32, #tpu.memory_space<vmem>>, vector<128x1xf32>
    %40 = vector.broadcast %39 : vector<128x1xf32> to vector<128x32xf32>
    %41 = arith.mulf %38, %40 : vector<128x32xf32>
    %42 = arith.addf %1, %41 : vector<128x32xf32>
    %43 = arith.truncf %42 : vector<128x32xf32> to vector<128x32xbf16>
    %c0_23 = arith.constant 0 : index
    %c0_24 = arith.constant 0 : index
    %44 = vector.load %arg9[%c0_23, %c0_24] : memref<128x32xbf16, #tpu.memory_space<vmem>>, vector<128x32xbf16>
    tpu.vector_store %arg9[%c0_23, %c0_24], %43 {strides = array<i32>} : memref<128x32xbf16, #tpu.memory_space<vmem>>, vector<128x32xbf16>,
    return
  }
  func.func @transform_0(%arg0: i32) -> (i32, i32) {
    %c0_i32 = arith.constant 0 : i32
    %c0_i32_0 = arith.constant 0 : i32
    return %arg0, %c0_i32 : i32, i32
  }
  func.func @transform_1(%arg0: i32) -> (i32, i32) {
    %c0_i32 = arith.constant 0 : i32
    %c0_i32_0 = arith.constant 0 : i32
    %c0_i32_1 = arith.constant 0 : i32
    return %c0_i32, %c0_i32_0 : i32, i32
  }
  func.func @transform_2(%arg0: i32) -> (i32, i32) {
    %c0_i32 = arith.constant 0 : i32
    %c0_i32_0 = arith.constant 0 : i32
    %c0_i32_1 = arith.constant 0 : i32
    return %c0_i32, %c0_i32_0 : i32, i32
  }
  func.func @transform_3(%arg0: i32) -> (i32, i32) {
    %c0_i32 = arith.constant 0 : i32
    %c0_i32_0 = arith.constant 0 : i32
    %c0_i32_1 = arith.constant 0 : i32
    return %c0_i32, %c0_i32_0 : i32, i32
  }
  func.func @transform_4(%arg0: i32) -> (i32, i32) {
    %c0_i32 = arith.constant 0 : i32
    %c0_i32_0 = arith.constant 0 : i32
    %c0_i32_1 = arith.constant 0 : i32
    return %c0_i32, %c0_i32_0 : i32, i32
  }
  func.func @transform_5(%arg0: i32) -> (i32, i32) {
    %c0_i32 = arith.constant 0 : i32
    %c0_i32_0 = arith.constant 0 : i32
    %c0_i32_1 = arith.constant 0 : i32
    return %c0_i32, %c0_i32_0 : i32, i32
  }
  func.func @transform_6(%arg0: i32) -> (i32, i32) {
    %c0_i32 = arith.constant 0 : i32
    %c0_i32_0 = arith.constant 0 : i32
    %c0_i32_1 = arith.constant 0 : i32
    return %c0_i32, %c0_i32_0 : i32, i32
  }
  func.func @transform_7(%arg0: i32) -> (i32, i32) {
    %c0_i32 = arith.constant 0 : i32
    %c0_i32_0 = arith.constant 0 : i32
    return %arg0, %c0_i32 : i32, i32
  }
  func.func @transform_8(%arg0: i32) -> (i32, i32) {
    %c0_i32 = arith.constant 0 : i32
    %c0_i32_0 = arith.constant 0 : i32
    return %arg0, %c0_i32 : i32, i32
  }
}

module attributes {stable_mosaic.version = 11 : i64} {
  func.func @_fused_mlp_kernel(%arg0: i32, %arg1: memref<16x32xf32, #tpu.memory_space<vmem>>, %arg2: memref<32x16xf32, #tpu.memory_space<vmem>>, %arg3: memref<1x16xf32, #tpu.memory_space<vmem>>, %arg4: memref<16x6xf32, #tpu.memory_space<vmem>>, %arg5: memref<1x6xf32, #tpu.memory_space<vmem>>, %arg6: memref<16x6xf32, #tpu.memory_space<vmem>>) attributes {dimension_semantics = [#tpu.dimension_semantics<parallel>], iteration_bounds = array<i64: 1>, scalar_prefetch = 0 : i64, scratch_operands = 0 : i64, tpu.core_type = #tpu.core_type<tc>, window_params = [{transform_indices = @transform_0, window_bounds = array<i64: 16, 32>}, {pipeline_mode = #tpu.pipeline_mode<synchronous>, transform_indices = @transform_1, window_bounds = array<i64: 32, 16>}, {pipeline_mode = #tpu.pipeline_mode<synchronous>, transform_indices = @transform_2, window_bounds = array<i64: 1, 16>}, {pipeline_mode = #tpu.pipeline_mode<synchronous>, transform_indices = @transform_3, window_bounds = array<i64: 16, 6>}, {pipeline_mode = #tpu.pipeline_mode<synchronous>, transform_indices = @transform_4, window_bounds = array<i64: 1, 6>}, {transform_indices = @transform_5, window_bounds = array<i64: 16, 6>}]} {
    %c0 = arith.constant 0 : index
    %c0_0 = arith.constant 0 : index
    %0 = vector.load %arg1[%c0, %c0_0] : memref<16x32xf32, #tpu.memory_space<vmem>>, vector<16x32xf32>
    %c0_1 = arith.constant 0 : index
    %c0_2 = arith.constant 0 : index
    %1 = vector.load %arg2[%c0_1, %c0_2] : memref<32x16xf32, #tpu.memory_space<vmem>>, vector<32x16xf32>
    %cst = arith.constant dense<0.000000e+00> : vector<16x16xf32>
    %2 = tpu.matmul %0, %1, %cst {dimension_numbers = #tpu.dot_dimension_numbers<[1], [0], [0], [1], [0, 0, 1, 1], [], []>} : vector<16x32xf32>, vector<32x16xf32>, vector<16x16xf32> -> vector<16x16xf32>
    %c0_3 = arith.constant 0 : index
    %c0_4 = arith.constant 0 : index
    %3 = vector.load %arg3[%c0_3, %c0_4] : memref<1x16xf32, #tpu.memory_space<vmem>>, vector<1x16xf32>
    %4 = vector.broadcast %3 : vector<1x16xf32> to vector<16x16xf32>
    %5 = arith.addf %2, %4 : vector<16x16xf32>
    %cst_5 = arith.constant 0.000000e+00 : f32
    %6 = vector.broadcast %cst_5 : f32 to vector<16x16xf32>
    %7 = arith.maximumf %5, %6 : vector<16x16xf32>
    %c0_6 = arith.constant 0 : index
    %c0_7 = arith.constant 0 : index
    %8 = vector.load %arg4[%c0_6, %c0_7] : memref<16x6xf32, #tpu.memory_space<vmem>>, vector<16x6xf32>
    %cst_8 = arith.constant dense<0.000000e+00> : vector<16x6xf32>
    %9 = tpu.matmul %7, %8, %cst_8 {dimension_numbers = #tpu.dot_dimension_numbers<[1], [0], [0], [1], [0, 0, 1, 1], [], []>} : vector<16x16xf32>, vector<16x6xf32>, vector<16x6xf32> -> vector<16x6xf32>
    %c0_9 = arith.constant 0 : index
    %c0_10 = arith.constant 0 : index
    %10 = vector.load %arg5[%c0_9, %c0_10] : memref<1x6xf32, #tpu.memory_space<vmem>>, vector<1x6xf32>
    %11 = vector.broadcast %10 : vector<1x6xf32> to vector<16x6xf32>
    %12 = arith.addf %9, %11 : vector<16x6xf32>
    %c0_11 = arith.constant 0 : index
    %c0_12 = arith.constant 0 : index
    %13 = vector.load %arg6[%c0_11, %c0_12] : memref<16x6xf32, #tpu.memory_space<vmem>>, vector<16x6xf32>
    tpu.vector_store %arg6[%c0_11, %c0_12], %12 {strides = array<i32>} : memref<16x6xf32, #tpu.memory_space<vmem>>, vector<16x6xf32>,
    return
  }
  func.func @transform_0(%arg0: i32) -> (i32, i32) {
    %c0_i32 = arith.constant 0 : i32
    %c0_i32_0 = arith.constant 0 : i32
    return %arg0, %c0_i32 : i32, i32
  }
  func.func @transform_1(%arg0: i32) -> (i32, i32) {
    %c0_i32 = arith.constant 0 : i32
    %c0_i32_0 = arith.constant 0 : i32
    %c0_i32_1 = arith.constant 0 : i32
    return %c0_i32, %c0_i32_0 : i32, i32
  }
  func.func @transform_2(%arg0: i32) -> (i32, i32) {
    %c0_i32 = arith.constant 0 : i32
    %c0_i32_0 = arith.constant 0 : i32
    %c0_i32_1 = arith.constant 0 : i32
    return %c0_i32, %c0_i32_0 : i32, i32
  }
  func.func @transform_3(%arg0: i32) -> (i32, i32) {
    %c0_i32 = arith.constant 0 : i32
    %c0_i32_0 = arith.constant 0 : i32
    %c0_i32_1 = arith.constant 0 : i32
    return %c0_i32, %c0_i32_0 : i32, i32
  }
  func.func @transform_4(%arg0: i32) -> (i32, i32) {
    %c0_i32 = arith.constant 0 : i32
    %c0_i32_0 = arith.constant 0 : i32
    %c0_i32_1 = arith.constant 0 : i32
    return %c0_i32, %c0_i32_0 : i32, i32
  }
  func.func @transform_5(%arg0: i32) -> (i32, i32) {
    %c0_i32 = arith.constant 0 : i32
    %c0_i32_0 = arith.constant 0 : i32
    return %arg0, %c0_i32 : i32, i32
  }
}

module attributes {stable_mosaic.version = 11 : i64} {
  func.func @_fused_mlp_kernel(%arg0: i32, %arg1: memref<2x3xf32, #tpu.memory_space<vmem>>, %arg2: memref<3x16xf32, #tpu.memory_space<vmem>>, %arg3: memref<1x16xf32, #tpu.memory_space<vmem>>, %arg4: memref<16x16xf32, #tpu.memory_space<vmem>>, %arg5: memref<1x16xf32, #tpu.memory_space<vmem>>, %arg6: memref<2x16xf32, #tpu.memory_space<vmem>>) attributes {dimension_semantics = [#tpu.dimension_semantics<parallel>], iteration_bounds = array<i64: 1>, scalar_prefetch = 0 : i64, scratch_operands = 0 : i64, tpu.core_type = #tpu.core_type<tc>, window_params = [{transform_indices = @transform_0, window_bounds = array<i64: 2, 3>}, {pipeline_mode = #tpu.pipeline_mode<synchronous>, transform_indices = @transform_1, window_bounds = array<i64: 3, 16>}, {pipeline_mode = #tpu.pipeline_mode<synchronous>, transform_indices = @transform_2, window_bounds = array<i64: 1, 16>}, {pipeline_mode = #tpu.pipeline_mode<synchronous>, transform_indices = @transform_3, window_bounds = array<i64: 16, 16>}, {pipeline_mode = #tpu.pipeline_mode<synchronous>, transform_indices = @transform_4, window_bounds = array<i64: 1, 16>}, {transform_indices = @transform_5, window_bounds = array<i64: 2, 16>}]} {
    %c0 = arith.constant 0 : index
    %c0_0 = arith.constant 0 : index
    %0 = vector.load %arg1[%c0, %c0_0] : memref<2x3xf32, #tpu.memory_space<vmem>>, vector<2x3xf32>
    %c0_1 = arith.constant 0 : index
    %c0_2 = arith.constant 0 : index
    %1 = vector.load %arg2[%c0_1, %c0_2] : memref<3x16xf32, #tpu.memory_space<vmem>>, vector<3x16xf32>
    %cst = arith.constant dense<0.000000e+00> : vector<2x16xf32>
    %2 = tpu.matmul %0, %1, %cst {dimension_numbers = #tpu.dot_dimension_numbers<[1], [0], [0], [1], [0, 0, 1, 1], [], []>} : vector<2x3xf32>, vector<3x16xf32>, vector<2x16xf32> -> vector<2x16xf32>
    %c0_3 = arith.constant 0 : index
    %c0_4 = arith.constant 0 : index
    %3 = vector.load %arg3[%c0_3, %c0_4] : memref<1x16xf32, #tpu.memory_space<vmem>>, vector<1x16xf32>
    %4 = vector.broadcast %3 : vector<1x16xf32> to vector<2x16xf32>
    %5 = arith.addf %2, %4 : vector<2x16xf32>
    %cst_5 = arith.constant 0.000000e+00 : f32
    %6 = vector.broadcast %cst_5 : f32 to vector<2x16xf32>
    %7 = arith.maximumf %5, %6 : vector<2x16xf32>
    %c0_6 = arith.constant 0 : index
    %c0_7 = arith.constant 0 : index
    %8 = vector.load %arg4[%c0_6, %c0_7] : memref<16x16xf32, #tpu.memory_space<vmem>>, vector<16x16xf32>
    %cst_8 = arith.constant dense<0.000000e+00> : vector<2x16xf32>
    %9 = tpu.matmul %7, %8, %cst_8 {dimension_numbers = #tpu.dot_dimension_numbers<[1], [0], [0], [1], [0, 0, 1, 1], [], []>} : vector<2x16xf32>, vector<16x16xf32>, vector<2x16xf32> -> vector<2x16xf32>
    %c0_9 = arith.constant 0 : index
    %c0_10 = arith.constant 0 : index
    %10 = vector.load %arg5[%c0_9, %c0_10] : memref<1x16xf32, #tpu.memory_space<vmem>>, vector<1x16xf32>
    %11 = vector.broadcast %10 : vector<1x16xf32> to vector<2x16xf32>
    %12 = arith.addf %9, %11 : vector<2x16xf32>
    %cst_11 = arith.constant 0.000000e+00 : f32
    %13 = vector.broadcast %cst_11 : f32 to vector<2x16xf32>
    %14 = arith.maximumf %12, %13 : vector<2x16xf32>
    %c0_12 = arith.constant 0 : index
    %c0_13 = arith.constant 0 : index
    %15 = vector.load %arg6[%c0_12, %c0_13] : memref<2x16xf32, #tpu.memory_space<vmem>>, vector<2x16xf32>
    tpu.vector_store %arg6[%c0_12, %c0_13], %14 {strides = array<i32>} : memref<2x16xf32, #tpu.memory_space<vmem>>, vector<2x16xf32>,
    return
  }
  func.func @transform_0(%arg0: i32) -> (i32, i32) {
    %c0_i32 = arith.constant 0 : i32
    %c0_i32_0 = arith.constant 0 : i32
    return %arg0, %c0_i32 : i32, i32
  }
  func.func @transform_1(%arg0: i32) -> (i32, i32) {
    %c0_i32 = arith.constant 0 : i32
    %c0_i32_0 = arith.constant 0 : i32
    %c0_i32_1 = arith.constant 0 : i32
    return %c0_i32, %c0_i32_0 : i32, i32
  }
  func.func @transform_2(%arg0: i32) -> (i32, i32) {
    %c0_i32 = arith.constant 0 : i32
    %c0_i32_0 = arith.constant 0 : i32
    %c0_i32_1 = arith.constant 0 : i32
    return %c0_i32, %c0_i32_0 : i32, i32
  }
  func.func @transform_3(%arg0: i32) -> (i32, i32) {
    %c0_i32 = arith.constant 0 : i32
    %c0_i32_0 = arith.constant 0 : i32
    %c0_i32_1 = arith.constant 0 : i32
    return %c0_i32, %c0_i32_0 : i32, i32
  }
  func.func @transform_4(%arg0: i32) -> (i32, i32) {
    %c0_i32 = arith.constant 0 : i32
    %c0_i32_0 = arith.constant 0 : i32
    %c0_i32_1 = arith.constant 0 : i32
    return %c0_i32, %c0_i32_0 : i32, i32
  }
  func.func @transform_5(%arg0: i32) -> (i32, i32) {
    %c0_i32 = arith.constant 0 : i32
    %c0_i32_0 = arith.constant 0 : i32
    return %arg0, %c0_i32 : i32, i32
  }
}

module attributes {stable_mosaic.version = 11 : i64} {
  func.func @_fused_mlp_kernel(%arg0: i32, %arg1: memref<2x16xf32, #tpu.memory_space<vmem>>, %arg2: memref<16x16xf32, #tpu.memory_space<vmem>>, %arg3: memref<1x16xf32, #tpu.memory_space<vmem>>, %arg4: memref<16x3xf32, #tpu.memory_space<vmem>>, %arg5: memref<1x3xf32, #tpu.memory_space<vmem>>, %arg6: memref<2x3xf32, #tpu.memory_space<vmem>>) attributes {dimension_semantics = [#tpu.dimension_semantics<parallel>], iteration_bounds = array<i64: 1>, scalar_prefetch = 0 : i64, scratch_operands = 0 : i64, tpu.core_type = #tpu.core_type<tc>, window_params = [{transform_indices = @transform_0, window_bounds = array<i64: 2, 16>}, {pipeline_mode = #tpu.pipeline_mode<synchronous>, transform_indices = @transform_1, window_bounds = array<i64: 16, 16>}, {pipeline_mode = #tpu.pipeline_mode<synchronous>, transform_indices = @transform_2, window_bounds = array<i64: 1, 16>}, {pipeline_mode = #tpu.pipeline_mode<synchronous>, transform_indices = @transform_3, window_bounds = array<i64: 16, 3>}, {pipeline_mode = #tpu.pipeline_mode<synchronous>, transform_indices = @transform_4, window_bounds = array<i64: 1, 3>}, {transform_indices = @transform_5, window_bounds = array<i64: 2, 3>}]} {
    %c0 = arith.constant 0 : index
    %c0_0 = arith.constant 0 : index
    %0 = vector.load %arg1[%c0, %c0_0] : memref<2x16xf32, #tpu.memory_space<vmem>>, vector<2x16xf32>
    %c0_1 = arith.constant 0 : index
    %c0_2 = arith.constant 0 : index
    %1 = vector.load %arg2[%c0_1, %c0_2] : memref<16x16xf32, #tpu.memory_space<vmem>>, vector<16x16xf32>
    %cst = arith.constant dense<0.000000e+00> : vector<2x16xf32>
    %2 = tpu.matmul %0, %1, %cst {dimension_numbers = #tpu.dot_dimension_numbers<[1], [0], [0], [1], [0, 0, 1, 1], [], []>} : vector<2x16xf32>, vector<16x16xf32>, vector<2x16xf32> -> vector<2x16xf32>
    %c0_3 = arith.constant 0 : index
    %c0_4 = arith.constant 0 : index
    %3 = vector.load %arg3[%c0_3, %c0_4] : memref<1x16xf32, #tpu.memory_space<vmem>>, vector<1x16xf32>
    %4 = vector.broadcast %3 : vector<1x16xf32> to vector<2x16xf32>
    %5 = arith.addf %2, %4 : vector<2x16xf32>
    %cst_5 = arith.constant 0.000000e+00 : f32
    %6 = vector.broadcast %cst_5 : f32 to vector<2x16xf32>
    %7 = arith.maximumf %5, %6 : vector<2x16xf32>
    %c0_6 = arith.constant 0 : index
    %c0_7 = arith.constant 0 : index
    %8 = vector.load %arg4[%c0_6, %c0_7] : memref<16x3xf32, #tpu.memory_space<vmem>>, vector<16x3xf32>
    %cst_8 = arith.constant dense<0.000000e+00> : vector<2x3xf32>
    %9 = tpu.matmul %7, %8, %cst_8 {dimension_numbers = #tpu.dot_dimension_numbers<[1], [0], [0], [1], [0, 0, 1, 1], [], []>} : vector<2x16xf32>, vector<16x3xf32>, vector<2x3xf32> -> vector<2x3xf32>
    %c0_9 = arith.constant 0 : index
    %c0_10 = arith.constant 0 : index
    %10 = vector.load %arg5[%c0_9, %c0_10] : memref<1x3xf32, #tpu.memory_space<vmem>>, vector<1x3xf32>
    %11 = vector.broadcast %10 : vector<1x3xf32> to vector<2x3xf32>
    %12 = arith.addf %9, %11 : vector<2x3xf32>
    %c0_11 = arith.constant 0 : index
    %c0_12 = arith.constant 0 : index
    %13 = vector.load %arg6[%c0_11, %c0_12] : memref<2x3xf32, #tpu.memory_space<vmem>>, vector<2x3xf32>
    tpu.vector_store %arg6[%c0_11, %c0_12], %12 {strides = array<i32>} : memref<2x3xf32, #tpu.memory_space<vmem>>, vector<2x3xf32>,
    return
  }
  func.func @transform_0(%arg0: i32) -> (i32, i32) {
    %c0_i32 = arith.constant 0 : i32
    %c0_i32_0 = arith.constant 0 : i32
    return %arg0, %c0_i32 : i32, i32
  }
  func.func @transform_1(%arg0: i32) -> (i32, i32) {
    %c0_i32 = arith.constant 0 : i32
    %c0_i32_0 = arith.constant 0 : i32
    %c0_i32_1 = arith.constant 0 : i32
    return %c0_i32, %c0_i32_0 : i32, i32
  }
  func.func @transform_2(%arg0: i32) -> (i32, i32) {
    %c0_i32 = arith.constant 0 : i32
    %c0_i32_0 = arith.constant 0 : i32
    %c0_i32_1 = arith.constant 0 : i32
    return %c0_i32, %c0_i32_0 : i32, i32
  }
  func.func @transform_3(%arg0: i32) -> (i32, i32) {
    %c0_i32 = arith.constant 0 : i32
    %c0_i32_0 = arith.constant 0 : i32
    %c0_i32_1 = arith.constant 0 : i32
    return %c0_i32, %c0_i32_0 : i32, i32
  }
  func.func @transform_4(%arg0: i32) -> (i32, i32) {
    %c0_i32 = arith.constant 0 : i32
    %c0_i32_0 = arith.constant 0 : i32
    %c0_i32_1 = arith.constant 0 : i32
    return %c0_i32, %c0_i32_0 : i32, i32
  }
  func.func @transform_5(%arg0: i32) -> (i32, i32) {
    %c0_i32 = arith.constant 0 : i32
    %c0_i32_0 = arith.constant 0 : i32
    return %arg0, %c0_i32 : i32, i32
  }
}

</mosaic_0001>

<bundles_post_ra>
// kernel: _lambda_.15
= control target key start
LH: loop header
LB: loop body
LE: loop exit
PB: predicated region body
PF: predicated region fallthrough
CT: control target
= control target key end

     0   :  { %vm40_vm0 = vcmask 1045504   ;;  %vm33_vm1 = vcmask 48128   ;;  %v267_v6 = vmov 0   ;;  %vm130_vm2 = vcmask 130048   ;;  %s336_s1 = inlined_call_operand.vmem [shape: f32[6,16], index: 1, kind: input, shape index: {}]   ;;  %s337_s0 = inlined_call_operand.vmem [shape: f32[16,6], index: 0, kind: input, shape index: {}]   ;;  %s338_s3 = inlined_call_operand.vmem [shape: f32[16,32], index: 3, kind: input, shape index: {}]   ;;  %s339_s5 = inlined_call_operand.vmem [shape: f32[16,1], index: 5, kind: input, shape index: {}]   ;;  %s340_s2 = inlined_call_operand.vmem [shape: f32[1,16], index: 2, kind: input, shape index: {}]   ;;  %s341_s4 = inlined_call_operand.vmem [shape: f32[1,32], index: 4, kind: input, shape index: {}]   ;;  %s342_s6 = inlined_call_operand.vmem [shape: f32[16,32], index: 6, kind: output, shape index: {}]  }
   0x1   :  { %v25_v0 = vld [vmem:[%s336_s1] sm:$0x3f]  ;;  %v24_v2 = vld [vmem:[%s337_s0 + $0x8] sm:$0xff]  ;;  %266 = vset.pattern.permute.xlu0 %v267_v6  ;;  %vm228_vm3 = vcmask 261120  }
   0x2   :  { %v23_v1 = vld [vmem:[%s337_s0] sm:$0xff]  ;;  %249 = vmatprep.subr.msk.mxu0 %vm40_vm0, %v25_v0  ;;  %v122_v4 = vld [vmem:[%s338_s3 + $0x8] sm:$0xff] }
   0x3   :  { %251 = vmatprep.mubr.msk.f32.mxu0 %vm33_vm1, %v23_v1  ;;  %250 = vmatpush3.msk.msra.mxu0 %vm40_vm0, %v25_v0  ;;  %v121_v3 = vld [vmem:[%s338_s3] sm:$0xff]  ;;  %v215_v8 = vld [vmem:[%s339_s5 + $0x8] sm:$0xff] }
   0x4   :  { %252 = vmatmul.mubr.msk.f32.vlgmr.msra.gmra.mrb[0].mxu0 %vm33_vm1, %v24_v2  ;;  %v261_v5 = vpack.c.bf16 %v122_v4, %v121_v3  ;;  %v214_v7 = vld [vmem:[%s339_s5] sm:$0xff] }
   0x5   :  { %218 = vperm.xlu0 %266, %v214_v7   ;;  %v235_v9 = vld [vmem:[%s340_s2] ss:$0 sm:$0xff] }
   0x6   :  { %262 = vmatprep.subr.bf16.mxu1 %v261_v5  ;;  %v239_v17 = vld [vmem:[%s341_s4] ss:$0 sm:$0xff] }
   0x7   :  { %264 = vmatpush3.bf16.msra.mxu1 %v261_v5 }
   0x9   :  { %223 = vperm.xlu0 %266, %v215_v8  }
  0x84   :  { %v219_v16 = vpop.permute.xlu0 %218 }
  0x88   :  { %v224_v23 = vpop.permute.xlu0 %223 }
  0xd7   :  { %v253_v10 = vpop.f32.mrb[0].mxu0 }
  0xd8   :  { %v116_v11 = vadd.f32 %v253_v10, %v235_v9  ;;  %v110_v12 = vpop.f32.mrb[1].mxu0 }
  0xd9   :  { %v111_v13 = vadd.f32 %v235_v9, %v110_v12 }
  0xda   :  { %v120_v15 = vmax.f32 %v116_v11, 0.0 }
  0xdb   :  { %v119_v14 = vmax.f32 %v111_v13, 0.0 }
  0xdd   :  { %258 = vmatprep.mubr.msk.f32.mxu1 %vm130_vm2, %v119_v14 }
  0xde   :  { %259 = vmatmul.mubr.msk.f32.vlgmr.msra.gmra.mrb[0].mxu1 %vm130_vm2, %v120_v15 }
 0x1b1   :  { %v260_v18 = vpop.f32.mrb[0].mxu1 }
 0x1b2   :  { %v209_v19 = vadd.f32 %v260_v18, %v239_v17  ;;  %v203_v20 = vpop.f32.mrb[1].mxu1 }
 0x1b3   :  { %v204_v21 = vadd.f32 %v239_v17, %v203_v20 }
 0x1b4   :  { %v213_v22 = vmax.f32 %v209_v19, 0.0 }
 0x1b5   :  { %v212_v24 = vmax.f32 %v204_v21, 0.0 }
 0x1b6   :  { %v227_v25 = vmul.f32 %v224_v23, %v213_v22 }
 0x1b7   :  { %v226_v26 = vmul.f32 %v219_v16, %v212_v24 }
 0x1b8   :  { %230 = vst.msk [vmem:[%s342_s6 + $0x8] sm:$0xff] %vm228_vm3, %v227_v25 }
 0x1b9   :  { %229 = vst.msk [vmem:[%s342_s6] sm:$0xff] %vm228_vm3, %v226_v26 }

// kernel: _lambda_.14
= control target key start
LH: loop header
LB: loop body
LE: loop exit
PB: predicated region body
PF: predicated region fallthrough
CT: control target
= control target key end

     0   :  { %vm96_vm0 = vcmask 1044480   ;;  %vm47_vm1 = vcmask 39936   ;;  %v840_v20 = vmov 0   ;;  %vm270_vm2 = vcmask 130048   ;;  %s1101_s1 = inlined_call_operand.vmem [shape: f32[5,16], index: 1, kind: input, shape index: {}]   ;;  %s1102_s0 = inlined_call_operand.vmem [shape: f32[128,5], index: 0, kind: input, shape index: {}]   ;;  %s1103_s3 = inlined_call_operand.vmem [shape: f32[16,32], index: 3, kind: input, shape index: {}]   ;;  %s1104_s5 = inlined_call_operand.vmem [shape: f32[128,1], index: 5, kind: input, shape index: {}]   ;;  %s1105_s2 = inlined_call_operand.vmem [shape: f32[1,16], index: 2, kind: input, shape index: {}]   ;;  %s1106_s4 = inlined_call_operand.vmem [shape: f32[1,32], index: 4, kind: input, shape index: {}]   ;;  %s1107_s6 = inlined_call_operand.vmem [shape: bf16[128,32], index: 6, kind: output, shape index: {}]  }
   0x1   :  { %v39_v0 = vld [vmem:[%s1101_s1] sm:$0x1f]  ;;  %v24_v2 = vld [vmem:[%s1102_s0 + $0x8] sm:$0xff]  ;;  %v25_v3 = vld [vmem:[%s1102_s0 + $0x10] sm:$0xff]  ;;  %839 = vset.pattern.permute.xlu1 %v840_v20  ;;  %838 = vset.pattern.permute.xlu0 %v840_v20  ;;  %vm656_vm3 = vcmask 257024  }
   0x2   :  { %v23_v1 = vld [vmem:[%s1102_s0] sm:$0xff]  ;;  %779 = vmatprep.subr.msk.mxu0 %vm96_vm0, %v39_v0  ;;  %v26_v4 = vld [vmem:[%s1102_s0 + $0x18] sm:$0xff]  ;;  %v28_v6 = vld [vmem:[%s1102_s0 + $0x28] sm:$0xff] }
   0x3   :  { %781 = vmatprep.mubr.msk.f32.mxu0 %vm47_vm1, %v23_v1  ;;  %780 = vmatpush3.msk.msra.mxu0 %vm96_vm0, %v39_v0  ;;  %v27_v5 = vld [vmem:[%s1102_s0 + $0x20] sm:$0xff]  ;;  %v29_v7 = vld [vmem:[%s1102_s0 + $0x30] sm:$0xff]  ;;  %v30_v8 = vld [vmem:[%s1102_s0 + $0x38] sm:$0xff] }
   0x4   :  { %782 = vmatmul.mubr.msk.f32.vlgmr.msra.gmra.mrb[0].mxu0 %vm47_vm1, %v24_v2  ;;  %v31_v9 = vld [vmem:[%s1102_s0 + $0x40] sm:$0xff]  ;;  %v32_v10 = vld [vmem:[%s1102_s0 + $0x48] sm:$0xff]  ;;  %v33_v11 = vld [vmem:[%s1102_s0 + $0x50] sm:$0xff] }
   0x5   :  { %784 = vmatprep.mubr.msk.f32.mxu0 %vm47_vm1, %v25_v3  ;;  %v34_v12 = vld [vmem:[%s1102_s0 + $0x58] sm:$0xff]  ;;  %v35_v13 = vld [vmem:[%s1102_s0 + $0x60] sm:$0xff]  ;;  %v36_v14 = vld [vmem:[%s1102_s0 + $0x68] sm:$0xff] }
   0x6   :  { %v37_v15 = vld [vmem:[%s1102_s0 + $0x70] sm:$0xff]  ;;  %v38_v16 = vld [vmem:[%s1102_s0 + $0x78] sm:$0xff]  ;;  %v261_v17 = vld [vmem:[%s1103_s3] sm:$0xff] }
   0x7   :  { %v262_v18 = vld [vmem:[%s1103_s3 + $0x8] sm:$0xff]  ;;  %v482_v21 = vld [vmem:[%s1104_s5 + $0x10] sm:$0xff]  ;;  %v480_v22 = vld [vmem:[%s1104_s5] sm:$0xff] }
   0x8   :  { %785 = vmatmul.mubr.msk.f32.gmra.mrb[2].mxu0 %vm47_vm1, %v26_v4  ;;  %v833_v19 = vpack.c.bf16 %v262_v18, %v261_v17  ;;  %508 = vperm.xlu1 %839, %v482_v21   ;;  %v483_v23 = vld [vmem:[%s1104_s5 + $0x18] sm:$0xff]  ;;  %v481_v24 = vld [vmem:[%s1104_s5 + $0x8] sm:$0xff]  ;;  %v484_v26 = vld [vmem:[%s1104_s5 + $0x20] sm:$0xff] }
   0x9   :  { %787 = vmatprep.mubr.msk.f32.mxu0 %vm47_vm1, %v27_v5  ;;  %498 = vperm.xlu0 %838, %v480_v22   ;;  %v485_v25 = vld [vmem:[%s1104_s5 + $0x28] sm:$0xff]  ;;  %v487_v27 = vld [vmem:[%s1104_s5 + $0x38] sm:$0xff]  ;;  %v486_v28 = vld [vmem:[%s1104_s5 + $0x30] sm:$0xff] }
   0xa   :  { %834 = vmatprep.subr.bf16.mxu1 %v833_v19  ;;  %v489_v29 = vld [vmem:[%s1104_s5 + $0x48] sm:$0xff]  ;;  %v488_v30 = vld [vmem:[%s1104_s5 + $0x40] sm:$0xff]  ;;  %v491_v31 = vld [vmem:[%s1104_s5 + $0x58] sm:$0xff] }
   0xb   :  { %836 = vmatpush3.bf16.msra.mxu1 %v833_v19  ;;  %v490_v32 = vld [vmem:[%s1104_s5 + $0x50] sm:$0xff]  ;;  %v493_v33 = vld [vmem:[%s1104_s5 + $0x68] sm:$0xff]  ;;  %v492_v34 = vld [vmem:[%s1104_s5 + $0x60] sm:$0xff] }
   0xc   :  { %788 = vmatmul.mubr.msk.f32.gmra.mrb[4].mxu0 %vm47_vm1, %v28_v6  ;;  %513 = vperm.xlu1 %839, %v483_v23   ;;  %v495_v35 = vld [vmem:[%s1104_s5 + $0x78] sm:$0xff]  ;;  %v494_v36 = vld [vmem:[%s1104_s5 + $0x70] sm:$0xff]  ;;  %v677_v37 = vld [vmem:[%s1105_s2] ss:$0 sm:$0xff] }
   0xd   :  { %790 = vmatprep.mubr.msk.f32.mxu0 %vm47_vm1, %v29_v7  ;;  %503 = vperm.xlu0 %838, %v481_v24  }
  0x10   :  { %791 = vmatmul.mubr.msk.f32.gmra.mrb[6].mxu0 %vm47_vm1, %v30_v8  ;;  %523 = vperm.xlu1 %839, %v485_v25  }
  0x11   :  { %793 = vmatprep.mubr.msk.f32.mxu0 %vm47_vm1, %v31_v9  ;;  %518 = vperm.xlu0 %838, %v484_v26   ;;  %v1019_v26 = vld [vmem:[%s1106_s4] ss:$0 sm:$0xff] }
  0x14   :  { %794 = vmatmul.mubr.msk.f32.gmra.mrb[8].mxu0 %vm47_vm1, %v32_v10  ;;  %533 = vperm.xlu1 %839, %v487_v27  }
  0x15   :  { %796 = vmatprep.mubr.msk.f32.mxu0 %vm47_vm1, %v33_v11  ;;  %528 = vperm.xlu0 %838, %v486_v28  }
  0x18   :  { %797 = vmatmul.mubr.msk.f32.gmra.mrb[10].mxu0 %vm47_vm1, %v34_v12  ;;  %543 = vperm.xlu1 %839, %v489_v29  }
  0x19   :  { %799 = vmatprep.mubr.msk.f32.mxu0 %vm47_vm1, %v35_v13  ;;  %538 = vperm.xlu0 %838, %v488_v30  }
  0x1c   :  { %800 = vmatmul.mubr.msk.f32.gmra.mrb[12].mxu0 %vm47_vm1, %v36_v14  ;;  %553 = vperm.xlu1 %839, %v491_v31  }
  0x1d   :  { %802 = vmatprep.mubr.msk.f32.mxu0 %vm47_vm1, %v37_v15  ;;  %548 = vperm.xlu0 %838, %v490_v32  }
  0x20   :  { %803 = vmatmul.mubr.msk.f32.gmra.mrb[14].mxu0 %vm47_vm1, %v38_v16  ;;  %563 = vperm.xlu1 %839, %v493_v33  }
  0x21   :  { %558 = vperm.xlu0 %838, %v492_v34  }
  0x24   :  { %573 = vperm.xlu1 %839, %v495_v35  }
  0x25   :  { %568 = vperm.xlu0 %838, %v494_v36  }
  0x87   :  { %v509_v22 = vpop.permute.xlu1 %508 }
  0x88   :  { %v499_v23 = vpop.permute.xlu0 %498 }
  0x8b   :  { %v514_v24 = vpop.permute.xlu1 %513 }
  0x8c   :  { %v504_v25 = vpop.permute.xlu0 %503 }
  0x8f   :  { %v524_v30 = vpop.permute.xlu1 %523 }
  0x90   :  { %v519_v32 = vpop.permute.xlu0 %518 }
  0xd7   :  { %v783_v38 = vpop.f32.mrb[0].mxu0 }
  0xd8   :  { %v172_v39 = vadd.f32 %v783_v38, %v677_v37  ;;  %v166_v40 = vpop.f32.mrb[1].mxu0 }
  0xd9   :  { %v167_v41 = vadd.f32 %v677_v37, %v166_v40 }
  0xda   :  { %v246_v44 = vmax.f32 %v172_v39, 0.0 }
  0xdb   :  { %v245_v42 = vmax.f32 %v167_v41, 0.0  ;;  %v786_v43 = vpop.f32.mrb[2].mxu0 }
  0xdc   :  { %v182_v45 = vadd.f32 %v786_v43, %v677_v37  ;;  %v176_v46 = vpop.f32.mrb[3].mxu0  ;;  %v534_v43 = vpop.permute.xlu1 %533 }
  0xdd   :  { %v177_v47 = vadd.f32 %v677_v37, %v176_v46  ;;  %809 = vmatprep.mubr.msk.f32.mxu1 %vm270_vm2, %v245_v42 }
  0xde   :  { %810 = vmatmul.mubr.msk.f32.vlgmr.msra.gmra.mrb[0].mxu1 %vm270_vm2, %v246_v44  ;;  %v248_v50 = vmax.f32 %v182_v45, 0.0 }
  0xdf   :  { %v247_v48 = vmax.f32 %v177_v47, 0.0  ;;  %v789_v49 = vpop.f32.mrb[4].mxu0  ;;  %v529_v47 = vpop.permute.xlu0 %528 }
  0xe0   :  { %v192_v51 = vadd.f32 %v789_v49, %v677_v37  ;;  %v186_v52 = vpop.f32.mrb[5].mxu0 }
  0xe1   :  { %v187_v53 = vadd.f32 %v677_v37, %v186_v52  ;;  %812 = vmatprep.mubr.msk.f32.mxu1 %vm270_vm2, %v247_v48 }
  0xe2   :  { %813 = vmatmul.mubr.msk.f32.gmra.mrb[2].mxu1 %vm270_vm2, %v248_v50  ;;  %v250_v56 = vmax.f32 %v192_v51, 0.0 }
  0xe3   :  { %v249_v54 = vmax.f32 %v187_v53, 0.0  ;;  %v792_v55 = vpop.f32.mrb[6].mxu0 }
  0xe4   :  { %v202_v57 = vadd.f32 %v792_v55, %v677_v37  ;;  %v196_v58 = vpop.f32.mrb[7].mxu0 }
  0xe5   :  { %v197_v59 = vadd.f32 %v677_v37, %v196_v58  ;;  %815 = vmatprep.mubr.msk.f32.mxu1 %vm270_vm2, %v249_v54 }
  0xe6   :  { %816 = vmatmul.mubr.msk.f32.gmra.mrb[4].mxu1 %vm270_vm2, %v250_v56  ;;  %v252_v62 = vmax.f32 %v202_v57, 0.0 }
  0xe7   :  { %v251_v60 = vmax.f32 %v197_v59, 0.0  ;;  %v795_v61 = vpop.f32.mrb[8].mxu0 }
  0xe8   :  { %v212_v63 = vadd.f32 %v795_v61, %v677_v37  ;;  %v206_v0 = vpop.f32.mrb[9].mxu0  ;;  %v544_v61 = vpop.permute.xlu1 %543 }
  0xe9   :  { %v207_v1 = vadd.f32 %v677_v37, %v206_v0  ;;  %818 = vmatprep.mubr.msk.f32.mxu1 %vm270_vm2, %v251_v60  ;;  %v539_v0 = vpop.permute.xlu0 %538 }
  0xea   :  { %819 = vmatmul.mubr.msk.f32.gmra.mrb[6].mxu1 %vm270_vm2, %v252_v62  ;;  %v254_v4 = vmax.f32 %v212_v63, 0.0 }
  0xeb   :  { %v253_v2 = vmax.f32 %v207_v1, 0.0  ;;  %v798_v3 = vpop.f32.mrb[10].mxu0 }
  0xec   :  { %v222_v5 = vadd.f32 %v798_v3, %v677_v37  ;;  %v216_v6 = vpop.f32.mrb[11].mxu0 }
  0xed   :  { %v217_v7 = vadd.f32 %v677_v37, %v216_v6  ;;  %821 = vmatprep.mubr.msk.f32.mxu1 %vm270_vm2, %v253_v2 }
  0xee   :  { %822 = vmatmul.mubr.msk.f32.gmra.mrb[8].mxu1 %vm270_vm2, %v254_v4  ;;  %v256_v10 = vmax.f32 %v222_v5, 0.0 }
  0xef   :  { %v255_v8 = vmax.f32 %v217_v7, 0.0  ;;  %v801_v9 = vpop.f32.mrb[12].mxu0 }
  0xf0   :  { %v232_v11 = vadd.f32 %v801_v9, %v677_v37  ;;  %v226_v12 = vpop.f32.mrb[13].mxu0 }
  0xf1   :  { %v227_v13 = vadd.f32 %v677_v37, %v226_v12  ;;  %824 = vmatprep.mubr.msk.f32.mxu1 %vm270_vm2, %v255_v8 }
  0xf2   :  { %825 = vmatmul.mubr.msk.f32.gmra.mrb[10].mxu1 %vm270_vm2, %v256_v10  ;;  %v258_v16 = vmax.f32 %v232_v11, 0.0 }
  0xf3   :  { %v257_v14 = vmax.f32 %v227_v13, 0.0  ;;  %v804_v15 = vpop.f32.mrb[14].mxu0  ;;  %v554_v13 = vpop.permute.xlu1 %553 }
  0xf4   :  { %v242_v17 = vadd.f32 %v804_v15, %v677_v37  ;;  %v236_v18 = vpop.f32.mrb[15].mxu0 }
  0xf5   :  { %v237_v19 = vadd.f32 %v677_v37, %v236_v18  ;;  %827 = vmatprep.mubr.msk.f32.mxu1 %vm270_vm2, %v257_v14 }
  0xf6   :  { %828 = vmatmul.mubr.msk.f32.gmra.mrb[12].mxu1 %vm270_vm2, %v258_v16  ;;  %v260_v21 = vmax.f32 %v242_v17, 0.0  ;;  %v549_v17 = vpop.permute.xlu0 %548 }
  0xf7   :  { %v259_v20 = vmax.f32 %v237_v19, 0.0 }
  0xf9   :  { %830 = vmatprep.mubr.msk.f32.mxu1 %vm270_vm2, %v259_v20 }
  0xfa   :  { %831 = vmatmul.mubr.msk.f32.gmra.mrb[14].mxu1 %vm270_vm2, %v260_v21 }
 0x1b1   :  { %v811_v27 = vpop.f32.mrb[0].mxu1 }
 0x1b2   :  { %v391_v28 = vadd.f32 %v811_v27, %v1019_v26  ;;  %v385_v29 = vpop.f32.mrb[1].mxu1 }
 0x1b3   :  { %v386_v31 = vadd.f32 %v1019_v26, %v385_v29 }
 0x1b4   :  { %v465_v33 = vmax.f32 %v391_v28, 0.0 }
 0x1b5   :  { %v464_v34 = vmax.f32 %v386_v31, 0.0  ;;  %v814_v35 = vpop.f32.mrb[2].mxu1 }
 0x1b6   :  { %v577_v36 = vmul.f32 %v504_v25, %v465_v33  ;;  %v401_v37 = vadd.f32 %v814_v35, %v1019_v26  ;;  %v395_v38 = vpop.f32.mrb[3].mxu1  ;;  %v559_v35 = vpop.permute.xlu0 %558 }
 0x1b7   :  { %v576_v39 = vmul.f32 %v499_v23, %v464_v34  ;;  %v396_v40 = vadd.f32 %v1019_v26, %v395_v38 }
 0x1b8   :  { %v729_v41 = vpack.c.bf16 %v577_v36, %v577_v36  ;;  %v467_v42 = vmax.f32 %v401_v37, 0.0 }
 0x1b9   :  { %v728_v44 = vpack.c.bf16 %v576_v39, %v576_v39  ;;  %v466_v45 = vmax.f32 %v396_v40, 0.0  ;;  %v817_v46 = vpop.f32.mrb[4].mxu1 }
 0x1ba   :  { %658 = vst.msk [vmem:[%s1107_s6 + $0x4] sm:$0xf] %vm656_vm3, %v729_v41  ;;  %v579_v48 = vmul.f32 %v514_v24, %v467_v42  ;;  %v411_v49 = vadd.f32 %v817_v46, %v1019_v26  ;;  %v405_v50 = vpop.f32.mrb[5].mxu1 }
 0x1bb   :  { %657 = vst.msk [vmem:[%s1107_s6] sm:$0xf] %vm656_vm3, %v728_v44  ;;  %v578_v51 = vmul.f32 %v509_v22, %v466_v45  ;;  %v406_v52 = vadd.f32 %v1019_v26, %v405_v50 }
 0x1bc   :  { %v731_v53 = vpack.c.bf16 %v579_v48, %v579_v48  ;;  %v469_v54 = vmax.f32 %v411_v49, 0.0 }
 0x1bd   :  { %v730_v55 = vpack.c.bf16 %v578_v51, %v578_v51  ;;  %v468_v56 = vmax.f32 %v406_v52, 0.0  ;;  %v820_v57 = vpop.f32.mrb[6].mxu1  ;;  %v569_v51 = vpop.permute.xlu0 %568 }
 0x1be   :  { %660 = vst.msk [vmem:[%s1107_s6 + $0xc] sm:$0xf] %vm656_vm3, %v731_v53  ;;  %v581_v58 = vmul.f32 %v524_v30, %v469_v54  ;;  %v421_v59 = vadd.f32 %v820_v57, %v1019_v26  ;;  %v415_v60 = vpop.f32.mrb[7].mxu1 }
 0x1bf   :  { %659 = vst.msk [vmem:[%s1107_s6 + $0x8] sm:$0xf] %vm656_vm3, %v730_v55  ;;  %v580_v62 = vmul.f32 %v519_v32, %v468_v56  ;;  %v416_v63 = vadd.f32 %v1019_v26, %v415_v60  ;;  %v564_v32 = vpop.permute.xlu1 %563 }
 0x1c0   :  { %v733_v1 = vpack.c.bf16 %v581_v58, %v581_v58  ;;  %v471_v2 = vmax.f32 %v421_v59, 0.0 }
 0x1c1   :  { %v732_v3 = vpack.c.bf16 %v580_v62, %v580_v62  ;;  %v470_v4 = vmax.f32 %v416_v63, 0.0  ;;  %v823_v5 = vpop.f32.mrb[8].mxu1 }
 0x1c2   :  { %662 = vst.msk [vmem:[%s1107_s6 + $0x14] sm:$0xf] %vm656_vm3, %v733_v1  ;;  %v583_v6 = vmul.f32 %v534_v43, %v471_v2  ;;  %v431_v7 = vadd.f32 %v823_v5, %v1019_v26  ;;  %v425_v8 = vpop.f32.mrb[9].mxu1 }
 0x1c3   :  { %661 = vst.msk [vmem:[%s1107_s6 + $0x10] sm:$0xf] %vm656_vm3, %v732_v3  ;;  %v582_v9 = vmul.f32 %v529_v47, %v470_v4  ;;  %v426_v10 = vadd.f32 %v1019_v26, %v425_v8  ;;  %v574_v48 = vpop.permute.xlu1 %573 }
 0x1c4   :  { %v735_v11 = vpack.c.bf16 %v583_v6, %v583_v6  ;;  %v473_v12 = vmax.f32 %v431_v7, 0.0 }
 0x1c5   :  { %v734_v14 = vpack.c.bf16 %v582_v9, %v582_v9  ;;  %v472_v15 = vmax.f32 %v426_v10, 0.0  ;;  %v826_v16 = vpop.f32.mrb[10].mxu1 }
 0x1c6   :  { %664 = vst.msk [vmem:[%s1107_s6 + $0x1c] sm:$0xf] %vm656_vm3, %v735_v11  ;;  %v585_v18 = vmul.f32 %v544_v61, %v473_v12  ;;  %v441_v19 = vadd.f32 %v826_v16, %v1019_v26  ;;  %v435_v20 = vpop.f32.mrb[11].mxu1 }
 0x1c7   :  { %663 = vst.msk [vmem:[%s1107_s6 + $0x18] sm:$0xf] %vm656_vm3, %v734_v14  ;;  %v584_v21 = vmul.f32 %v539_v0, %v472_v15  ;;  %v436_v22 = vadd.f32 %v1019_v26, %v435_v20 }
 0x1c8   :  { %v737_v23 = vpack.c.bf16 %v585_v18, %v585_v18  ;;  %v475_v24 = vmax.f32 %v441_v19, 0.0 }
 0x1c9   :  { %v736_v25 = vpack.c.bf16 %v584_v21, %v584_v21  ;;  %v474_v27 = vmax.f32 %v436_v22, 0.0  ;;  %v829_v28 = vpop.f32.mrb[12].mxu1 }
 0x1ca   :  { %666 = vst.msk [vmem:[%s1107_s6 + $0x24] sm:$0xf] %vm656_vm3, %v737_v23  ;;  %v587_v29 = vmul.f32 %v554_v13, %v475_v24  ;;  %v451_v30 = vadd.f32 %v829_v28, %v1019_v26  ;;  %v445_v31 = vpop.f32.mrb[13].mxu1 }
 0x1cb   :  { %665 = vst.msk [vmem:[%s1107_s6 + $0x20] sm:$0xf] %vm656_vm3, %v736_v25  ;;  %v586_v33 = vmul.f32 %v549_v17, %v474_v27  ;;  %v446_v34 = vadd.f32 %v1019_v26, %v445_v31 }
 0x1cc   :  { %v739_v36 = vpack.c.bf16 %v587_v29, %v587_v29  ;;  %v477_v37 = vmax.f32 %v451_v30, 0.0 }
 0x1cd   :  { %v738_v38 = vpack.c.bf16 %v586_v33, %v586_v33  ;;  %v476_v39 = vmax.f32 %v446_v34, 0.0  ;;  %v832_v40 = vpop.f32.mrb[14].mxu1 }
 0x1ce   :  { %668 = vst.msk [vmem:[%s1107_s6 + $0x2c] sm:$0xf] %vm656_vm3, %v739_v36  ;;  %v589_v41 = vmul.f32 %v564_v32, %v477_v37  ;;  %v461_v42 = vadd.f32 %v832_v40, %v1019_v26  ;;  %v455_v43 = vpop.f32.mrb[15].mxu1 }
 0x1cf   :  { %667 = vst.msk [vmem:[%s1107_s6 + $0x28] sm:$0xf] %vm656_vm3, %v738_v38  ;;  %v588_v44 = vmul.f32 %v559_v35, %v476_v39  ;;  %v456_v45 = vadd.f32 %v1019_v26, %v455_v43 }
 0x1d0   :  { %v741_v46 = vpack.c.bf16 %v589_v41, %v589_v41  ;;  %v479_v47 = vmax.f32 %v461_v42, 0.0 }
 0x1d1   :  { %v740_v49 = vpack.c.bf16 %v588_v44, %v588_v44  ;;  %v478_v50 = vmax.f32 %v456_v45, 0.0 }
 0x1d2   :  { %670 = vst.msk [vmem:[%s1107_s6 + $0x34] sm:$0xf] %vm656_vm3, %v741_v46  ;;  %v591_v52 = vmul.f32 %v574_v48, %v479_v47 }
 0x1d3   :  { %669 = vst.msk [vmem:[%s1107_s6 + $0x30] sm:$0xf] %vm656_vm3, %v740_v49  ;;  %v590_v53 = vmul.f32 %v569_v51, %v478_v50 }
 0x1d4   :  { %v743_v54 = vpack.c.bf16 %v591_v52, %v591_v52 }
 0x1d5   :  { %v742_v26 = vpack.c.bf16 %v590_v53, %v590_v53 }
 0x1d6   :  { %672 = vst.msk [vmem:[%s1107_s6 + $0x3c] sm:$0xf] %vm656_vm3, %v743_v54 }
 0x1d7   :  { %671 = vst.msk [vmem:[%s1107_s6 + $0x38] sm:$0xf] %vm656_vm3, %v742_v26 }

// kernel: _lambda_.17
= control target key start
LH: loop header
LB: loop body
LE: loop exit
PB: predicated region body
PF: predicated region fallthrough
CT: control target
= control target key end

     0   :  { %vm24_vm0 = vcmask 261120   ;;  %v208_v17 = vmov 0.0   ;;  %v82_v43 = vlaneseq  ;;  %s311_s0 = inlined_call_operand.vmem [shape: f32[16,32], index: 0, kind: input, shape index: {}]   ;;  %s312_s3 = inlined_call_operand.vmem [shape: f32[32,160], index: 3, kind: input, shape index: {}]   ;;  %s313_s1 = inlined_call_operand.vmem [shape: f32[1,32], index: 1, kind: input, shape index: {}]   ;;  %s314_s2 = inlined_call_operand.vmem [shape: f32[1,32], index: 2, kind: input, shape index: {}]   ;;  %s315_s5 = inlined_call_operand.vmem [shape: f32[16,32], index: 5, kind: output, shape index: {0}]   ;;  %s316_s4 = inlined_call_operand.vmem [shape: f32[1,160], index: 4, kind: input, shape index: {}]   ;;  %s317_s6 = inlined_call_operand.vmem [shape: f32[16,160], index: 6, kind: output, shape index: {1}]  }
   0x1   :  { %v22_v0 = vld [vmem:[%s311_s0] sm:$0xff]  ;;  %v23_v1 = vld [vmem:[%s311_s0 + $0x8] sm:$0xff]  ;;  %v75_v15 = vld [vmem:[%s312_s3 + $0x18] sm:$0xff]  ;;  %162 = vmatprep.mubr.f32.mxu0 %v208_v17  ;;  %168 = vmatprep.mubr.f32.mxu1 %v208_v17 }
   0x2   :  { %v25_v2 = vsel %vm24_vm0, %v22_v0, 0.0  ;;  %v28_v3 = vsel %vm24_vm0, %v23_v1, 0.0  ;;  %v73_v14 = vld [vmem:[%s312_s3 + $0x8] sm:$0xff]  ;;  %v72_v16 = vld [vmem:[%s312_s3] sm:$0xff]  ;;  %v74_v19 = vld [vmem:[%s312_s3 + $0x10] sm:$0xff]  ;;  %v83_v44 = vshrl.u32 %v82_v43, 7 }
   0x3   :  { %26 = vadd.xlane.f32.xlu0 %v25_v2  ;;  %v191_v18 = vpack.c.bf16 %v75_v15, %v73_v14  ;;  %v77_v20 = vld [vmem:[%s312_s3 + $0x28] sm:$0xff]  ;;  %v79_v21 = vld [vmem:[%s312_s3 + $0x38] sm:$0xff]  ;;  %v193_v22 = vpack.c.bf16 %v74_v19, %v72_v16  ;;  %v76_v24 = vld [vmem:[%s312_s3 + $0x20] sm:$0xff] }
   0x4   :  { %v195_v23 = vpack.c.bf16 %v79_v21, %v77_v20  ;;  %v78_v25 = vld [vmem:[%s312_s3 + $0x30] sm:$0xff]  ;;  %v187_v34 = vld [vmem:[%s313_s1] ss:$0 sm:$0xff]  ;;  %v84_v45 = vsub.s32 0, %v83_v44  ;;  %v88_v47 = vsub.s32 1, %v83_v44 }
   0x5   :  { %192 = vmatprep.subr.bf16.mxu0 %v191_v18  ;;  %199 = vmatprep.subr.bf16.mxu1 %v191_v18  ;;  %v197_v26 = vpack.c.bf16 %v78_v25, %v76_v24  ;;  %v188_v36 = vld [vmem:[%s314_s2] ss:$0 sm:$0xff] }
   0x6   :  { %194 = vmatpush1.bf16.msra.mxu0 %v193_v22  ;;  %201 = vmatpush1.bf16.msra.mxu1 %v193_v22  ;;  %v80_v46 = vld [vmem:[%s316_s4] sm:$0x3] }
   0x7   :  { %29 = vadd.xlane.f32.xlu0 %v28_v3  ;;  %196 = vmatprep.subr.bf16.mxu0 %v195_v23  ;;  %v85_v48 = vrot.slane %v80_v46, %v84_v45  ;;  %v89_v49 = vrot.slane %v80_v46, %v88_v47 }
   0x8   :  { %200 = vmatprep.subr.bf16.mxu1 %v195_v23 }
   0xa   :  { %198 = vmatpush1.bf16.msra.mxu0 %v197_v26  ;;  %202 = vmatpush1.bf16.msra.mxu1 %v197_v26 }
  0x90   :  { %v27_v4 = vpop.xlane.xlu0 %26 }
  0x91   :  { %v32_v5 = vmul.f32 0.03125, %v27_v4 }
  0x93   :  { %v34_v6 = vsub.f32 %v22_v0, %v32_v5 }
  0x94   :  { %v30_v7 = vpop.xlane.xlu0 %29 }
  0x95   :  { %v33_v8 = vmul.f32 0.03125, %v30_v7  ;;  %v36_v9 = vmul.f32 %v34_v6, %v34_v6 }
  0x97   :  { %v35_v10 = vsub.f32 %v23_v1, %v33_v8  ;;  %v38_v11 = vsel %vm24_vm0, %v36_v9, 0.0 }
  0x98   :  { %39 = vadd.xlane.f32.xlu1 %v38_v11 }
  0x99   :  { %v37_v12 = vmul.f32 %v35_v10, %v35_v10 }
  0x9b   :  { %v41_v13 = vsel %vm24_vm0, %v37_v12, 0.0 }
  0x9c   :  { %42 = vadd.xlane.f32.xlu1 %v41_v13 }
 0x125   :  { %v40_v27 = vpop.xlane.xlu1 %39 }
 0x126   :  { %v44_v28 = vmul.f32 0.03125, %v40_v27 }
 0x128   :  { %v46_v29 = vadd.f32 1e-05, %v44_v28 }
 0x129   :  { %v43_v30 = vpop.xlane.xlu1 %42 }
 0x12a   :  { %204 = vrsqrt.f32 %v46_v29  ;;  %v45_v31 = vmul.f32 0.03125, %v43_v30 }
 0x12c   :  { %v47_v32 = vadd.f32 1e-05, %v45_v31 }
 0x12e   :  { %206 = vrsqrt.f32 %v47_v32 }
 0x134   :  { %v205_v33 = vpop.eup %204 }
 0x135   :  { %v50_v35 = vmul.f32 %v205_v33, %v34_v6 }
 0x137   :  { %v59_v37 = vmul.f32 %v187_v34, %v50_v35 }
 0x138   :  { %v207_v38 = vpop.eup %206 }
 0x139   :  { %v68_v39 = vadd.f32 %v188_v36, %v59_v37  ;;  %v51_v40 = vmul.f32 %v207_v38, %v35_v10 }
 0x13b   :  { %70 = vst.msk [vmem:[%s315_s5] sm:$0xff] %vm24_vm0, %v68_v39  ;;  %189 = vmatmul.mubr.msk.f32.vlgmr.msra.gmra.mrb[0].mxu0 %vm24_vm0, %v68_v39  ;;  %v60_v41 = vmul.f32 %v187_v34, %v51_v40 }
 0x13d   :  { %v69_v42 = vadd.f32 %v188_v36, %v60_v41 }
 0x13f   :  { %71 = vst.msk [vmem:[%s315_s5 + $0x8] sm:$0xff] %vm24_vm0, %v69_v42  ;;  %190 = vmatmul.mubr.msk.f32.vlgmr.msra.gmra.mrb[0].mxu1 %vm24_vm0, %v69_v42 }
 0x20e   :  { %v164_v50 = vpop.f32.mrb[0].mxu0 }
 0x20f   :  { %v165_v51 = vadd.f32 %v164_v50, %v85_v48  ;;  %v166_v52 = vpop.f32.mrb[1].mxu0 }
 0x210   :  { %v167_v53 = vadd.f32 %v166_v52, %v89_v49 }
 0x211   :  { %175 = vst [vmem:[%s317_s6] sm:$0xff] %v165_v51 }
 0x212   :  { %176 = vst.msk [vmem:[%s317_s6 + $0x8] sm:$0xff] %vm24_vm0, %v167_v53  ;;  %v170_v54 = vpop.f32.mrb[0].mxu1 }
 0x213   :  { %v171_v55 = vadd.f32 %v170_v54, %v85_v48  ;;  %v172_v56 = vpop.f32.mrb[1].mxu1 }
 0x214   :  { %v173_v57 = vadd.f32 %v172_v56, %v89_v49 }
 0x215   :  { %177 = vst [vmem:[%s317_s6 + $0x10] sm:$0xff] %v171_v55 }
 0x216   :  { %178 = vst.msk [vmem:[%s317_s6 + $0x18] sm:$0xff] %vm24_vm0, %v173_v57 }

// kernel: _lambda_.19
= control target key start
LH: loop header
LB: loop body
LE: loop exit
PB: predicated region body
PF: predicated region fallthrough
CT: control target
= control target key end

     0   :  { %vm31_vm0 = vcmask 261120   ;;  %v418_v60 = vmov 0   ;;  %s582_s0 = inlined_call_operand.vmem [shape: f32[16,32], index: 0, kind: input, shape index: {}]   ;;  %s583_s3 = inlined_call_operand.vmem [shape: f32[32,128], index: 3, kind: input, shape index: {}]   ;;  %s584_s5 = inlined_call_operand.vmem [shape: f32[128,32], index: 5, kind: input, shape index: {}]   ;;  %s585_s1 = inlined_call_operand.vmem [shape: f32[1,32], index: 1, kind: input, shape index: {}]   ;;  %s586_s2 = inlined_call_operand.vmem [shape: f32[1,32], index: 2, kind: input, shape index: {}]   ;;  %s587_s7 = inlined_call_operand.vmem [shape: f32[16,1], index: 7, kind: input, shape index: {}]   ;;  %s588_s4 = inlined_call_operand.vmem [shape: f32[1,128], index: 4, kind: input, shape index: {}]   ;;  %s589_s6 = inlined_call_operand.vmem [shape: f32[1,32], index: 6, kind: input, shape index: {}]   ;;  %s590_s8 = inlined_call_operand.vmem [shape: f32[16,32], index: 8, kind: output, shape index: {}]  }
   0x1   :  { %v467_v0 = vld [vmem:[%s582_s0] sm:$0xff]  ;;  %v472_v1 = vld [vmem:[%s582_s0 + $0x8] sm:$0xff]  ;;  %v79_v16 = vld [vmem:[%s583_s3 + $0x10] sm:$0xff]  ;;  %413 = vset.pattern.permute.xlu1 %v418_v60  ;;  %412 = vset.pattern.permute.xlu0 %v418_v60 }
   0x2   :  { %v32_v2 = vsel %vm31_vm0, %v467_v0, 0.0  ;;  %v35_v3 = vsel %vm31_vm0, %v472_v1, 0.0  ;;  %v77_v14 = vld [vmem:[%s583_s3] sm:$0xff]  ;;  %v78_v15 = vld [vmem:[%s583_s3 + $0x8] sm:$0xff]  ;;  %v80_v18 = vld [vmem:[%s583_s3 + $0x18] sm:$0xff] }
   0x3   :  { %33 = vadd.xlane.f32.xlu0 %v32_v2  ;;  %v371_v17 = vpack.c.bf16 %v78_v15, %v77_v14  ;;  %v375_v19 = vpack.c.bf16 %v80_v18, %v79_v16  ;;  %v175_v20 = vld [vmem:[%s584_s5] sm:$0xff]  ;;  %v176_v21 = vld [vmem:[%s584_s5 + $0x8] sm:$0xff]  ;;  %v177_v22 = vld [vmem:[%s584_s5 + $0x10] sm:$0xff] }
   0x4   :  { %v379_v23 = vpack.c.bf16 %v176_v21, %v175_v20  ;;  %v178_v24 = vld [vmem:[%s584_s5 + $0x18] sm:$0xff]  ;;  %v179_v26 = vld [vmem:[%s584_s5 + $0x20] sm:$0xff]  ;;  %v180_v27 = vld [vmem:[%s584_s5 + $0x28] sm:$0xff] }
   0x5   :  { %372 = vmatprep.subr.bf16.mxu0 %v371_v17  ;;  %v383_v25 = vpack.c.bf16 %v178_v24, %v177_v22  ;;  %v387_v28 = vpack.c.bf16 %v180_v27, %v179_v26  ;;  %v181_v29 = vld [vmem:[%s584_s5 + $0x30] sm:$0xff]  ;;  %v182_v30 = vld [vmem:[%s584_s5 + $0x38] sm:$0xff]  ;;  %v183_v32 = vld [vmem:[%s584_s5 + $0x40] sm:$0xff] }
   0x6   :  { %374 = vmatpush3.bf16.msra.mxu0 %v371_v17  ;;  %380 = vmatprep.subr.bf16.mxu1 %v379_v23  ;;  %v391_v31 = vpack.c.bf16 %v182_v30, %v181_v29  ;;  %v184_v33 = vld [vmem:[%s584_s5 + $0x48] sm:$0xff]  ;;  %v185_v35 = vld [vmem:[%s584_s5 + $0x50] sm:$0xff]  ;;  %v186_v36 = vld [vmem:[%s584_s5 + $0x58] sm:$0xff] }
   0x7   :  { %36 = vadd.xlane.f32.xlu0 %v35_v3  ;;  %376 = vmatprep.subr.bf16.mxu0 %v375_v19  ;;  %v395_v34 = vpack.c.bf16 %v184_v33, %v183_v32  ;;  %v399_v37 = vpack.c.bf16 %v186_v36, %v185_v35  ;;  %v295_v45 = vld [vmem:[%s585_s1] ss:$0 sm:$0xff]  ;;  %v188_v55 = vld [vmem:[%s584_s5 + $0x68] sm:$0xff]  ;;  %v189_v57 = vld [vmem:[%s584_s5 + $0x70] sm:$0xff] }
   0x8   :  { %382 = vmatpush3.bf16.msra.mxu1 %v379_v23  ;;  %v296_v47 = vld [vmem:[%s586_s2] ss:$0 sm:$0xff]  ;;  %v190_v58 = vld [vmem:[%s584_s5 + $0x78] sm:$0xff]  ;;  %v274_v61 = vld [vmem:[%s587_s7 + $0x8] sm:$0xff] }
   0x9   :  { %384 = vmatprep.subr.bf16.mxu1 %v383_v25  ;;  %v187_v54 = vld [vmem:[%s584_s5 + $0x60] sm:$0xff]  ;;  %v407_v59 = vpack.c.bf16 %v190_v58, %v189_v57 }
   0xa   :  { %378 = vmatpush3.bf16.msra.mxu0 %v375_v19  ;;  %v403_v56 = vpack.c.bf16 %v188_v55, %v187_v54  ;;  %v273_v62 = vld [vmem:[%s587_s7] sm:$0xff] }
   0xb   :  { %v297_v63 = vld [vmem:[%s588_s4] ss:$0 sm:$0xff] }
   0xc   :  { %386 = vmatpush3.bf16.msra.mxu1 %v383_v25 }
   0xd   :  { %388 = vmatprep.subr.bf16.mxu1 %v387_v28 }
  0x10   :  { %390 = vmatpush3.bf16.msra.mxu1 %v387_v28 }
  0x11   :  { %392 = vmatprep.subr.bf16.mxu1 %v391_v31 }
  0x14   :  { %394 = vmatpush3.bf16.msra.mxu1 %v391_v31 }
  0x15   :  { %396 = vmatprep.subr.bf16.mxu1 %v395_v34 }
  0x18   :  { %398 = vmatpush3.bf16.msra.mxu1 %v395_v34 }
  0x19   :  { %400 = vmatprep.subr.bf16.mxu1 %v399_v37 }
  0x1c   :  { %402 = vmatpush3.bf16.msra.mxu1 %v399_v37 }
  0x1d   :  { %404 = vmatprep.subr.bf16.mxu1 %v403_v56  ;;  %277 = vperm.xlu0 %412, %v273_v62  }
  0x20   :  { %406 = vmatpush3.bf16.msra.mxu1 %v403_v56 }
  0x21   :  { %408 = vmatprep.subr.bf16.mxu1 %v407_v59 }
  0x24   :  { %410 = vmatpush3.bf16.msra.mxu1 %v407_v59 }
  0x90   :  { %v34_v4 = vpop.xlane.xlu0 %33 }
  0x91   :  { %v39_v5 = vmul.f32 0.03125, %v34_v4 }
  0x93   :  { %v479_v6 = vsub.f32 %v467_v0, %v39_v5 }
  0x94   :  { %v37_v7 = vpop.xlane.xlu0 %36 }
  0x95   :  { %v40_v8 = vmul.f32 0.03125, %v37_v7  ;;  %v43_v9 = vmul.f32 %v479_v6, %v479_v6 }
  0x97   :  { %v484_v10 = vsub.f32 %v472_v1, %v40_v8  ;;  %v45_v11 = vsel %vm31_vm0, %v43_v9, 0.0 }
  0x98   :  { %46 = vadd.xlane.f32.xlu1 %v45_v11 }
  0x99   :  { %v44_v12 = vmul.f32 %v484_v10, %v484_v10 }
  0x9b   :  { %v48_v13 = vsel %vm31_vm0, %v44_v12, 0.0 }
  0x9c   :  { %49 = vadd.xlane.f32.xlu1 %v48_v13  ;;  %v278_v15 = vpop.permute.xlu0 %277 }
  0xad   :  { %282 = vperm.xlu1 %413, %v274_v61  }
 0x125   :  { %v47_v38 = vpop.xlane.xlu1 %46 }
 0x126   :  { %v51_v39 = vmul.f32 0.03125, %v47_v38 }
 0x128   :  { %v53_v40 = vadd.f32 1e-05, %v51_v39 }
 0x129   :  { %v50_v41 = vpop.xlane.xlu1 %49 }
 0x12a   :  { %414 = vrsqrt.f32 %v53_v40  ;;  %v52_v42 = vmul.f32 0.03125, %v50_v41 }
 0x12c   :  { %v54_v43 = vadd.f32 1e-05, %v52_v42 }
 0x12d   :  { %v283_v12 = vpop.permute.xlu1 %282 }
 0x12e   :  { %416 = vrsqrt.f32 %v54_v43 }
 0x134   :  { %v415_v44 = vpop.eup %414 }
 0x135   :  { %v57_v46 = vmul.f32 %v415_v44, %v479_v6 }
 0x137   :  { %v66_v48 = vmul.f32 %v295_v45, %v57_v46 }
 0x138   :  { %v417_v49 = vpop.eup %416 }
 0x139   :  { %v58_v50 = vmul.f32 %v417_v49, %v484_v10  ;;  %v75_v51 = vadd.f32 %v296_v47, %v66_v48  ;;  %v300_v10 = vld [vmem:[%s589_s6] ss:$0 sm:$0xff] }
 0x13b   :  { %v67_v52 = vmul.f32 %v295_v45, %v58_v50  ;;  %333 = vmatprep.mubr.msk.f32.mxu0 %vm31_vm0, %v75_v51 }
 0x13d   :  { %v76_v53 = vadd.f32 %v296_v47, %v67_v52 }
 0x13f   :  { %334 = vmatmul.mubr.msk.f32.vlgmr.msra.gmra.mrb[0].mxu0 %vm31_vm0, %v76_v53 }
 0x212   :  { %v335_v2 = vpop.f32.mrb[0].mxu0 }
 0x213   :  { %v166_v3 = vadd.f32 %v335_v2, %v297_v63  ;;  %v160_v4 = vpop.f32.mrb[1].mxu0 }
 0x214   :  { %v161_v5 = vadd.f32 %v297_v63, %v160_v4 }
 0x215   :  { %v172_v6 = vmul.f32 0.01, %v166_v3  ;;  %vm170_vm2 = vcmp.ge.f32.partialorder %v166_v3, 0.0 }
 0x216   :  { %vm169_vm1 = vcmp.ge.f32.partialorder %v161_v5, 0.0  ;;  %v171_v7 = vmul.f32 0.01, %v161_v5 }
 0x217   :  { %v174_v9 = vsel %vm170_vm2, %v166_v3, %v172_v6 }
 0x218   :  { %v173_v8 = vsel %vm169_vm1, %v161_v5, %v171_v7 }
 0x219   :  { %368 = vmatprep.mubr.f32.mxu1 %v173_v8 }
 0x21a   :  { %369 = vmatmul.mubr.f32.vlgmr.msra.gmra.mrb[0].mxu1 %v174_v9 }
 0x2ed   :  { %v370_v11 = vpop.f32.mrb[0].mxu1 }
 0x2ee   :  { %v270_v13 = vadd.f32 %v370_v11, %v300_v10  ;;  %v264_v14 = vpop.f32.mrb[1].mxu1 }
 0x2ef   :  { %v265_v16 = vadd.f32 %v300_v10, %v264_v14 }
 0x2f0   :  { %v286_v17 = vmul.f32 %v283_v12, %v270_v13 }
 0x2f1   :  { %v285_v18 = vmul.f32 %v278_v15, %v265_v16 }
 0x2f2   :  { %v288_v19 = vadd.f32 %v286_v17, %v472_v1 }
 0x2f3   :  { %v287_v20 = vadd.f32 %v285_v18, %v467_v0 }
 0x2f4   :  { %290 = vst.msk [vmem:[%s590_s8 + $0x8] sm:$0xff] %vm31_vm0, %v288_v19 }
 0x2f5   :  { %289 = vst.msk [vmem:[%s590_s8] sm:$0xff] %vm31_vm0, %v287_v20 }

// kernel: _lambda_.26
= control target key start
LH: loop header
LB: loop body
LE: loop exit
PB: predicated region body
PF: predicated region fallthrough
CT: control target
= control target key end

     0   :  { %vm63_vm0 = vcmask 261120   ;;  %vm282_vm1 = vcmask 130048   ;;  %vm476_vm2 = vcmask 39936   ;;  %s854_s1 = inlined_call_operand.vmem [shape: f32[32,16], index: 1, kind: input, shape index: {}]   ;;  %s855_s0 = inlined_call_operand.vmem [shape: bf16[128,32], index: 0, kind: input, shape index: {}]   ;;  %s856_s3 = inlined_call_operand.vmem [shape: f32[16,5], index: 3, kind: input, shape index: {}]   ;;  %s857_s2 = inlined_call_operand.vmem [shape: f32[1,16], index: 2, kind: input, shape index: {}]   ;;  %s858_s4 = inlined_call_operand.vmem [shape: f32[1,5], index: 4, kind: input, shape index: {}]   ;;  %s859_s5 = inlined_call_operand.vmem [shape: f32[128,5], index: 5, kind: output, shape index: {}]  }
   0x1   :  { %v52_v0 = vld [vmem:[%s854_s1] sm:$0xff]  ;;  %v53_v1 = vld [vmem:[%s854_s1 + $0x8] sm:$0xff]  ;;  %v54_v2 = vld [vmem:[%s854_s1 + $0x10] sm:$0xff] }
   0x2   :  { %v668_v3 = vpack.c.bf16 %v53_v1, %v52_v0  ;;  %v55_v4 = vld [vmem:[%s854_s1 + $0x18] sm:$0xff]  ;;  %v532_v5 = vld [vmem:[%s855_s0] sm:$0xff]   ;;  %v563_v8 = vld [vmem:[%s855_s0 + $0x8] sm:$0xff]  }
   0x3   :  { %v672_v6 = vpack.c.bf16 %v55_v4, %v54_v2  ;;  %v533_v7 = vunpack.c.l.bf16 %v532_v5  ;;  %v534_v9 = vunpack.c.h.bf16 %v532_v5  ;;  %v537_v10 = vunpack.c.l.bf16 %v563_v8  ;;  %v564_v11 = vld [vmem:[%s855_s0 + $0x10] sm:$0xff]   ;;  %v565_v14 = vld [vmem:[%s855_s0 + $0x18] sm:$0xff]   ;;  %v566_v17 = vld [vmem:[%s855_s0 + $0x20] sm:$0xff]  }
   0x4   :  { %669 = vmatprep.subr.bf16.mxu0 %v668_v3  ;;  %v538_v12 = vunpack.c.h.bf16 %v563_v8  ;;  %v541_v13 = vunpack.c.l.bf16 %v564_v11  ;;  %v542_v15 = vunpack.c.h.bf16 %v564_v11  ;;  %v545_v16 = vunpack.c.l.bf16 %v565_v14  ;;  %v567_v20 = vld [vmem:[%s855_s0 + $0x28] sm:$0xff]   ;;  %v568_v23 = vld [vmem:[%s855_s0 + $0x30] sm:$0xff]   ;;  %v569_v26 = vld [vmem:[%s855_s0 + $0x38] sm:$0xff]  }
   0x5   :  { %671 = vmatpush3.bf16.msra.mxu0 %v668_v3  ;;  %616 = vmatprep.mubr.msk.f32.mxu0 %vm63_vm0, %v533_v7  ;;  %v546_v18 = vunpack.c.h.bf16 %v565_v14  ;;  %v549_v19 = vunpack.c.l.bf16 %v566_v17  ;;  %v550_v21 = vunpack.c.h.bf16 %v566_v17  ;;  %v553_v22 = vunpack.c.l.bf16 %v567_v20  ;;  %v273_v30 = vld [vmem:[%s856_s3] sm:$0xff]  ;;  %v274_v31 = vld [vmem:[%s856_s3 + $0x8] sm:$0xff] }
   0x6   :  { %673 = vmatprep.subr.bf16.mxu0 %v672_v6  ;;  %v554_v24 = vunpack.c.h.bf16 %v567_v20  ;;  %v557_v25 = vunpack.c.l.bf16 %v568_v23  ;;  %v558_v27 = vunpack.c.h.bf16 %v568_v23  ;;  %v561_v28 = vunpack.c.l.bf16 %v569_v26  ;;  %v497_v33 = vld [vmem:[%s857_s2] ss:$0 sm:$0xff] }
   0x7   :  { %v562_v29 = vunpack.c.h.bf16 %v569_v26  ;;  %v676_v32 = vpack.c.bf16 %v274_v31, %v273_v30 }
   0x9   :  { %675 = vmatpush3.bf16.msra.mxu0 %v672_v6  ;;  %677 = vmatprep.subr.bf16.mxu1 %v676_v32 }
   0xa   :  { %679 = vmatpush3.bf16.msra.mxu1 %v676_v32 }
   0xc   :  { %617 = vmatmul.mubr.msk.f32.vlgmr.msra.gmra.mrb[0].mxu0 %vm63_vm0, %v534_v9 }
   0xd   :  { %619 = vmatprep.mubr.msk.f32.mxu0 %vm63_vm0, %v537_v10 }
  0x10   :  { %620 = vmatmul.mubr.msk.f32.gmra.mrb[2].mxu0 %vm63_vm0, %v538_v12 }
  0x11   :  { %622 = vmatprep.mubr.msk.f32.mxu0 %vm63_vm0, %v541_v13 }
  0x14   :  { %623 = vmatmul.mubr.msk.f32.gmra.mrb[4].mxu0 %vm63_vm0, %v542_v15 }
  0x15   :  { %625 = vmatprep.mubr.msk.f32.mxu0 %vm63_vm0, %v545_v16 }
  0x18   :  { %626 = vmatmul.mubr.msk.f32.gmra.mrb[6].mxu0 %vm63_vm0, %v546_v18  ;;  %v514_v18 = vld [vmem:[%s858_s4] ss:$0 sm:$0xff] }
  0x19   :  { %628 = vmatprep.mubr.msk.f32.mxu0 %vm63_vm0, %v549_v19 }
  0x1c   :  { %629 = vmatmul.mubr.msk.f32.gmra.mrb[8].mxu0 %vm63_vm0, %v550_v21 }
  0x1d   :  { %631 = vmatprep.mubr.msk.f32.mxu0 %vm63_vm0, %v553_v22 }
  0x20   :  { %632 = vmatmul.mubr.msk.f32.gmra.mrb[10].mxu0 %vm63_vm0, %v554_v24 }
  0x21   :  { %634 = vmatprep.mubr.msk.f32.mxu0 %vm63_vm0, %v557_v25 }
  0x24   :  { %635 = vmatmul.mubr.msk.f32.gmra.mrb[12].mxu0 %vm63_vm0, %v558_v27 }
  0x25   :  { %637 = vmatprep.mubr.msk.f32.mxu0 %vm63_vm0, %v561_v28 }
  0x28   :  { %638 = vmatmul.mubr.msk.f32.gmra.mrb[14].mxu0 %vm63_vm0, %v562_v29 }
  0xdf   :  { %v618_v34 = vpop.f32.mrb[0].mxu0 }
  0xe0   :  { %v184_v35 = vadd.f32 %v618_v34, %v497_v33  ;;  %v178_v36 = vpop.f32.mrb[1].mxu0 }
  0xe1   :  { %v179_v37 = vadd.f32 %v497_v33, %v178_v36 }
  0xe2   :  { %v258_v40 = vmax.f32 %v184_v35, 0.0 }
  0xe3   :  { %v257_v38 = vmax.f32 %v179_v37, 0.0  ;;  %v621_v39 = vpop.f32.mrb[2].mxu0 }
  0xe4   :  { %v194_v41 = vadd.f32 %v621_v39, %v497_v33  ;;  %v188_v42 = vpop.f32.mrb[3].mxu0 }
  0xe5   :  { %v189_v43 = vadd.f32 %v497_v33, %v188_v42  ;;  %644 = vmatprep.mubr.msk.f32.mxu1 %vm282_vm1, %v257_v38 }
  0xe6   :  { %645 = vmatmul.mubr.msk.f32.vlgmr.msra.gmra.mrb[0].mxu1 %vm282_vm1, %v258_v40  ;;  %v260_v46 = vmax.f32 %v194_v41, 0.0 }
  0xe7   :  { %v259_v44 = vmax.f32 %v189_v43, 0.0  ;;  %v624_v45 = vpop.f32.mrb[4].mxu0 }
  0xe8   :  { %v204_v47 = vadd.f32 %v624_v45, %v497_v33  ;;  %v198_v48 = vpop.f32.mrb[5].mxu0 }
  0xe9   :  { %v199_v49 = vadd.f32 %v497_v33, %v198_v48  ;;  %647 = vmatprep.mubr.msk.f32.mxu1 %vm282_vm1, %v259_v44 }
  0xea   :  { %648 = vmatmul.mubr.msk.f32.gmra.mrb[2].mxu1 %vm282_vm1, %v260_v46  ;;  %v262_v52 = vmax.f32 %v204_v47, 0.0 }
  0xeb   :  { %v261_v50 = vmax.f32 %v199_v49, 0.0  ;;  %v627_v51 = vpop.f32.mrb[6].mxu0 }
  0xec   :  { %v214_v53 = vadd.f32 %v627_v51, %v497_v33  ;;  %v208_v54 = vpop.f32.mrb[7].mxu0 }
  0xed   :  { %v209_v55 = vadd.f32 %v497_v33, %v208_v54  ;;  %650 = vmatprep.mubr.msk.f32.mxu1 %vm282_vm1, %v261_v50 }
  0xee   :  { %651 = vmatmul.mubr.msk.f32.gmra.mrb[4].mxu1 %vm282_vm1, %v262_v52  ;;  %v264_v58 = vmax.f32 %v214_v53, 0.0 }
  0xef   :  { %v263_v56 = vmax.f32 %v209_v55, 0.0  ;;  %v630_v57 = vpop.f32.mrb[8].mxu0 }
  0xf0   :  { %v224_v59 = vadd.f32 %v630_v57, %v497_v33  ;;  %v218_v60 = vpop.f32.mrb[9].mxu0 }
  0xf1   :  { %v219_v61 = vadd.f32 %v497_v33, %v218_v60  ;;  %653 = vmatprep.mubr.msk.f32.mxu1 %vm282_vm1, %v263_v56 }
  0xf2   :  { %654 = vmatmul.mubr.msk.f32.gmra.mrb[6].mxu1 %vm282_vm1, %v264_v58  ;;  %v266_v0 = vmax.f32 %v224_v59, 0.0 }
  0xf3   :  { %v265_v62 = vmax.f32 %v219_v61, 0.0  ;;  %v633_v63 = vpop.f32.mrb[10].mxu0 }
  0xf4   :  { %v234_v1 = vadd.f32 %v633_v63, %v497_v33  ;;  %v228_v2 = vpop.f32.mrb[11].mxu0 }
  0xf5   :  { %v229_v3 = vadd.f32 %v497_v33, %v228_v2  ;;  %656 = vmatprep.mubr.msk.f32.mxu1 %vm282_vm1, %v265_v62 }
  0xf6   :  { %657 = vmatmul.mubr.msk.f32.gmra.mrb[8].mxu1 %vm282_vm1, %v266_v0  ;;  %v268_v6 = vmax.f32 %v234_v1, 0.0 }
  0xf7   :  { %v267_v4 = vmax.f32 %v229_v3, 0.0  ;;  %v636_v5 = vpop.f32.mrb[12].mxu0 }
  0xf8   :  { %v244_v7 = vadd.f32 %v636_v5, %v497_v33  ;;  %v238_v8 = vpop.f32.mrb[13].mxu0 }
  0xf9   :  { %v239_v9 = vadd.f32 %v497_v33, %v238_v8  ;;  %659 = vmatprep.mubr.msk.f32.mxu1 %vm282_vm1, %v267_v4 }
  0xfa   :  { %660 = vmatmul.mubr.msk.f32.gmra.mrb[10].mxu1 %vm282_vm1, %v268_v6  ;;  %v270_v12 = vmax.f32 %v244_v7, 0.0 }
  0xfb   :  { %v269_v10 = vmax.f32 %v239_v9, 0.0  ;;  %v639_v11 = vpop.f32.mrb[14].mxu0 }
  0xfc   :  { %v254_v13 = vadd.f32 %v639_v11, %v497_v33  ;;  %v248_v14 = vpop.f32.mrb[15].mxu0 }
  0xfd   :  { %v249_v15 = vadd.f32 %v497_v33, %v248_v14  ;;  %662 = vmatprep.mubr.msk.f32.mxu1 %vm282_vm1, %v269_v10 }
  0xfe   :  { %663 = vmatmul.mubr.msk.f32.gmra.mrb[12].mxu1 %vm282_vm1, %v270_v12  ;;  %v272_v17 = vmax.f32 %v254_v13, 0.0 }
  0xff   :  { %v271_v16 = vmax.f32 %v249_v15, 0.0 }
 0x101   :  { %665 = vmatprep.mubr.msk.f32.mxu1 %vm282_vm1, %v271_v16 }
 0x102   :  { %666 = vmatmul.mubr.msk.f32.gmra.mrb[14].mxu1 %vm282_vm1, %v272_v17 }
 0x1b9   :  { %v646_v19 = vpop.f32.mrb[0].mxu1 }
 0x1ba   :  { %v403_v20 = vadd.f32 %v646_v19, %v514_v18  ;;  %v397_v21 = vpop.f32.mrb[1].mxu1 }
 0x1bb   :  { %v398_v22 = vadd.f32 %v514_v18, %v397_v21 }
 0x1bc   :  { %478 = vst.msk [vmem:[%s859_s5 + $0x8] sm:$0xff] %vm476_vm2, %v403_v20 }
 0x1bd   :  { %477 = vst.msk [vmem:[%s859_s5] sm:$0xff] %vm476_vm2, %v398_v22  ;;  %v649_v23 = vpop.f32.mrb[2].mxu1 }
 0x1be   :  { %v413_v24 = vadd.f32 %v649_v23, %v514_v18  ;;  %v407_v25 = vpop.f32.mrb[3].mxu1 }
 0x1bf   :  { %v408_v26 = vadd.f32 %v514_v18, %v407_v25 }
 0x1c0   :  { %480 = vst.msk [vmem:[%s859_s5 + $0x18] sm:$0xff] %vm476_vm2, %v413_v24 }
 0x1c1   :  { %479 = vst.msk [vmem:[%s859_s5 + $0x10] sm:$0xff] %vm476_vm2, %v408_v26  ;;  %v652_v27 = vpop.f32.mrb[4].mxu1 }
 0x1c2   :  { %v423_v28 = vadd.f32 %v652_v27, %v514_v18  ;;  %v417_v29 = vpop.f32.mrb[5].mxu1 }
 0x1c3   :  { %v418_v30 = vadd.f32 %v514_v18, %v417_v29 }
 0x1c4   :  { %482 = vst.msk [vmem:[%s859_s5 + $0x28] sm:$0xff] %vm476_vm2, %v423_v28 }
 0x1c5   :  { %481 = vst.msk [vmem:[%s859_s5 + $0x20] sm:$0xff] %vm476_vm2, %v418_v30  ;;  %v655_v31 = vpop.f32.mrb[6].mxu1 }
 0x1c6   :  { %v433_v32 = vadd.f32 %v655_v31, %v514_v18  ;;  %v427_v33 = vpop.f32.mrb[7].mxu1 }
 0x1c7   :  { %v428_v34 = vadd.f32 %v514_v18, %v427_v33 }
 0x1c8   :  { %484 = vst.msk [vmem:[%s859_s5 + $0x38] sm:$0xff] %vm476_vm2, %v433_v32 }
 0x1c9   :  { %483 = vst.msk [vmem:[%s859_s5 + $0x30] sm:$0xff] %vm476_vm2, %v428_v34  ;;  %v658_v35 = vpop.f32.mrb[8].mxu1 }
 0x1ca   :  { %v443_v36 = vadd.f32 %v658_v35, %v514_v18  ;;  %v437_v37 = vpop.f32.mrb[9].mxu1 }
 0x1cb   :  { %v438_v38 = vadd.f32 %v514_v18, %v437_v37 }
 0x1cc   :  { %486 = vst.msk [vmem:[%s859_s5 + $0x48] sm:$0xff] %vm476_vm2, %v443_v36 }
 0x1cd   :  { %485 = vst.msk [vmem:[%s859_s5 + $0x40] sm:$0xff] %vm476_vm2, %v438_v38  ;;  %v661_v39 = vpop.f32.mrb[10].mxu1 }
 0x1ce   :  { %v453_v40 = vadd.f32 %v661_v39, %v514_v18  ;;  %v447_v41 = vpop.f32.mrb[11].mxu1 }
 0x1cf   :  { %v448_v42 = vadd.f32 %v514_v18, %v447_v41 }
 0x1d0   :  { %488 = vst.msk [vmem:[%s859_s5 + $0x58] sm:$0xff] %vm476_vm2, %v453_v40 }
 0x1d1   :  { %487 = vst.msk [vmem:[%s859_s5 + $0x50] sm:$0xff] %vm476_vm2, %v448_v42  ;;  %v664_v43 = vpop.f32.mrb[12].mxu1 }
 0x1d2   :  { %v463_v44 = vadd.f32 %v664_v43, %v514_v18  ;;  %v457_v45 = vpop.f32.mrb[13].mxu1 }
 0x1d3   :  { %v458_v46 = vadd.f32 %v514_v18, %v457_v45 }
 0x1d4   :  { %490 = vst.msk [vmem:[%s859_s5 + $0x68] sm:$0xff] %vm476_vm2, %v463_v44 }
 0x1d5   :  { %489 = vst.msk [vmem:[%s859_s5 + $0x60] sm:$0xff] %vm476_vm2, %v458_v46  ;;  %v667_v47 = vpop.f32.mrb[14].mxu1 }
 0x1d6   :  { %v473_v48 = vadd.f32 %v667_v47, %v514_v18  ;;  %v467_v49 = vpop.f32.mrb[15].mxu1 }
 0x1d7   :  { %v468_v50 = vadd.f32 %v514_v18, %v467_v49 }
 0x1d8   :  { %492 = vst.msk [vmem:[%s859_s5 + $0x78] sm:$0xff] %vm476_vm2, %v473_v48 }
 0x1d9   :  { %491 = vst.msk [vmem:[%s859_s5 + $0x70] sm:$0xff] %vm476_vm2, %v468_v50 }

// kernel: _lambda_.18
= control target key start
LH: loop header
LB: loop body
LE: loop exit
PB: predicated region body
PF: predicated region fallthrough
CT: control target
= control target key end

     0   :  { %s2635_s24 = smov 0   ;;  %s2637_s25 = smov 0   ;;  %s3057_s0 = inlined_call_operand.vmem [shape: f32[2,8,1], index: 0, kind: input, shape index: {}]   ;;  %s3058_s1 = inlined_call_operand.vmem [shape: f32[2,1,8], index: 1, kind: input, shape index: {}]   ;;  %s3059_s2 = inlined_call_operand.vmem [shape: f32[2,8,160], index: 2, kind: input, shape index: {}, may-alias: {2,3}]   ;;  %s3060_s3 = inlined_call_operand.vmem [shape: f32[2,8,160], index: 3, kind: input, shape index: {}, may-alias: {2,3}]   ;;  %s3061_s4 = inlined_call_operand.vmem [shape: f32[2,8,32], index: 4, kind: input, shape index: {}]   ;;  %s3062_s5 = inlined_call_operand.vmem [shape: bf16[2,8,8,32], index: 5, kind: input, shape index: {}]   ;;  %s3063_s6 = inlined_call_operand.vmem [shape: f32[1,32], index: 6, kind: input, shape index: {}]   ;;  %s3064_s7 = inlined_call_operand.vmem [shape: f32[1,32], index: 7, kind: input, shape index: {}]   ;;  %s3065_s8 = inlined_call_operand.vmem [shape: f32[32,32], index: 8, kind: input, shape index: {}]   ;;  %s3066_s9 = inlined_call_operand.vmem [shape: f32[1,32], index: 9, kind: input, shape index: {}]   ;;  %s3067_s10 = inlined_call_operand.vmem [shape: f32[32,32], index: 10, kind: input, shape index: {}]   ;;  %s3068_s11 = inlined_call_operand.vmem [shape: f32[1,32], index: 11, kind: input, shape index: {}]   ;;  %s3069_s12 = inlined_call_operand.vmem [shape: f32[32,32], index: 12, kind: input, shape index: {}]   ;;  %s3070_s13 = inlined_call_operand.vmem [shape: f32[1,32], index: 13, kind: input, shape index: {}]   ;;  %s3071_s14 = inlined_call_operand.vmem [shape: f32[32,4], index: 14, kind: input, shape index: {}]   ;;  %s3072_s15 = inlined_call_operand.vmem [shape: f32[4,32], index: 15, kind: input, shape index: {}]   ;;  %s3073_s16 = inlined_call_operand.vmem [shape: f32[2,8,32], index: 16, kind: output, shape index: {0}]   ;;  %s3074_s17 = inlined_call_operand.vmem [shape: bf16[2,8,8,32], index: 17, kind: output, shape index: {1}]  }
   0x1   :  { %3076 = sst [smem:[#allocation3_spill]] %s3057_s0  ;;  %s2639_s26 = smov 0  }
   0x2   :  { %3077 = sst [smem:[#allocation4_spill]] %s3058_s1 }
   0x3 LB: > { %s40_s27 = sadd.s32 1, %s2531_s25  ;;  %p2203_p0 = scmp.ge.s32.totalorder %s2535_s26, 1  ;;  %s2535_s26 = sphi %s2639_s26, %s28_s26   ;;  %s2531_s25 = sphi %s2637_s25, %s3082_s25   ;;  %s2527_s24 = sphi %s2635_s24, %s3081_s24  }
   0x4   : > { %p42_p1 = scmp.ge.s32.totalorder %s40_s27, 2  ;;  %p566_p2 = scmp.lt.s32.totalorder %s2535_s26, 3 }
   0x6   : > { %s3084_s27 = smov (%p42_p1, %s40_s27), 0  ;;  %p567_p3 = pnand %p2203_p0, %p566_p2 }
   0x7   : > { %p656_p4 = scmp.lt.s32.totalorder (!%p567_p3), %s2527_s24, 1  ;;  %vm793_vm0 = vcmask (!%p567_p3), 261120   ;;  %v929_v60 = vld [vmem:[%s3065_s8] sm:$0xff] (!%p567_p3)  ;;  %v930_v61 = vld [vmem:[%s3065_s8 + $0x8] sm:$0xff] (!%p567_p3)  ;;  %v931_v63 = vld [vmem:[%s3065_s8 + $0x10] sm:$0xff] (!%p567_p3)  ;;  %s2537_s23 = smov (!%p567_p3), 96  }
   0x8   : > { %570 = sbr.rel (%p567_p3) target bundleno = 1545 (0x609), region = 84  ;;  %v2415_v62 = vpack.c.bf16 (!%p567_p3), %v930_v61, %v929_v60  ;;  %v2218_v61 = vld [vmem:[%s3066_s9] ss:$0 sm:$0xff] (!%p567_p3)  ;;  %s3078_s20 = sld [smem:[#allocation3_spill]] (!%p567_p3)  ;;  %vm1690_vm1 = vcmask (!%p567_p3), 1043456   ;;  %vm1391_vm2 = vcmask (!%p567_p3), 257024  }
   0x9   : > { %vm1593_vm3 = vcmask (!%p567_p3), 31744   ;;  %vm2543_vm12 = vmmov (!%p567_p3), 0   ;;  %vm1878_vm13 = vcmask (!%p567_p3), 1041409   ;;  %vm1880_vm14 = vcmask (!%p567_p3), 1042434  }
   0xa   : > { %2416 = vmatprep.subr.bf16.mxu0 (!%p567_p3), %v2415_v62  ;;  %vm1882_vm15 = vcmask (!%p567_p3), 1043459  }
   0xb   : > { %2418 = vmatpush3.bf16.msra.mxu0 (!%p567_p3), %v2415_v62 }
   0xf   : > { %s3086_s24 = smov (!%p656_p4, %s2527_s24), 1 }
  0x10   : > { %s3075_s28 = sshll.u32 %s3086_s24, 5  ;;  %s2257_s1 = sshll.u32 %s3086_s24, 4 }
  0x11   : > { %s691_s30 = scalar_lea.vmem %s3062_s5, %s3075_s28  ;;  %s2773_s22 = scalar_lea.vmem %s3060_s3, %s2257_s1 }
  0x12   : > { %v2262_v0 = vld [vmem:[%s691_s30] sm:$0xff]   ;;  %v2277_v1 = vld [vmem:[%s691_s30 + $0x8] sm:$0xff]   ;;  %v2278_v6 = vld [vmem:[%s691_s30 + $0x10] sm:$0xff]   ;;  %s670_s18 = scalar_lea.vmem %s3059_s2, %s2257_s1  ;;  %s2842_s19 = sshll.u32 %s3086_s24, 3 }
  0x13   : > { %v2263_v2 = vunpack.c.l.bf16 %v2262_v0  ;;  %v2267_v3 = vunpack.c.l.bf16 %v2277_v1  ;;  %v2264_v4 = vunpack.c.h.bf16 %v2262_v0  ;;  %v2268_v5 = vunpack.c.h.bf16 %v2277_v1  ;;  %v2279_v13 = vld [vmem:[%s691_s30 + $0x18] sm:$0xff]   ;;  %s659_s21 = scalar_lea.vmem %s3078_s20, %s2842_s19  ;;  %s3079_s1 = sld [smem:[#allocation4_spill]] }
  0x14   : > { %v2271_v11 = vunpack.c.l.bf16 %v2278_v6  ;;  %v2272_v12 = vunpack.c.h.bf16 %v2278_v6  ;;  %v2275_v16 = vunpack.c.l.bf16 %v2279_v13  ;;  %v2276_v17 = vunpack.c.h.bf16 %v2279_v13  ;;  %v932_v0 = vld [vmem:[%s3065_s8 + $0x18] sm:$0xff] }
  0x15   : > { %v794_v7 = vsel %vm793_vm0, %v2263_v2, 0.0  ;;  %v800_v8 = vsel %vm793_vm0, %v2267_v3, 0.0  ;;  %v797_v9 = vsel %vm793_vm0, %v2264_v4, 0.0  ;;  %v803_v10 = vsel %vm793_vm0, %v2268_v5, 0.0 }
  0x16   : > { %795 = vadd.xlane.f32.xlu0 %v794_v7  ;;  %801 = vadd.xlane.f32.xlu1 %v800_v8  ;;  %v806_v14 = vsel %vm793_vm0, %v2271_v11, 0.0  ;;  %v809_v15 = vsel %vm793_vm0, %v2272_v12, 0.0  ;;  %v812_v18 = vsel %vm793_vm0, %v2275_v16, 0.0  ;;  %v815_v19 = vsel %vm793_vm0, %v2276_v17, 0.0 }
  0x17   : > { %v2419_v1 = vpack.c.bf16 %v932_v0, %v931_v63 }
  0x19   : > { %2420 = vmatprep.subr.bf16.mxu0 %v2419_v1  ;;  %s665_s28 = scalar_lea.vmem %s3079_s1, %s3086_s24 }
  0x1a   : > { %798 = vadd.xlane.f32.xlu0 %v797_v9  ;;  %804 = vadd.xlane.f32.xlu1 %v803_v10 }
  0x1b   : > { %2422 = vmatpush3.bf16.msra.mxu0 %v2419_v1 }
  0x1e   : > { %807 = vadd.xlane.f32.xlu0 %v806_v14  ;;  %810 = vadd.xlane.f32.xlu1 %v809_v15 }
  0x22   : > { %813 = vadd.xlane.f32.xlu0 %v812_v18  ;;  %816 = vadd.xlane.f32.xlu1 %v815_v19 }
  0xa3   : > { %v796_v20 = vpop.xlane.xlu0 %795  ;;  %v802_v21 = vpop.xlane.xlu1 %801 }
  0xa4   : > { %v819_v22 = vmul.f32 0.03125, %v796_v20  ;;  %v821_v23 = vmul.f32 0.03125, %v802_v21 }
  0xa6   : > { %v2669_v24 = vsub.f32 %v2263_v2, %v819_v22  ;;  %v2671_v25 = vsub.f32 %v2267_v3, %v821_v23 }
  0xa7   : > { %v799_v26 = vpop.xlane.xlu0 %798  ;;  %v805_v27 = vpop.xlane.xlu1 %804 }
  0xa8   : > { %v820_v28 = vmul.f32 0.03125, %v799_v26  ;;  %v822_v29 = vmul.f32 0.03125, %v805_v27  ;;  %v835_v30 = vmul.f32 %v2669_v24, %v2669_v24  ;;  %v837_v31 = vmul.f32 %v2671_v25, %v2671_v25  ;;  %v2216_v26 = vld [vmem:[%s3063_s6] ss:$0 sm:$0xff] }
  0xaa   : > { %v2677_v32 = vsub.f32 %v2264_v4, %v820_v28  ;;  %v2679_v33 = vsub.f32 %v2268_v5, %v822_v29  ;;  %v843_v34 = vsel %vm793_vm0, %v835_v30, 0.0  ;;  %v849_v37 = vsel %vm793_vm0, %v837_v31, 0.0  ;;  %v2217_v30 = vld [vmem:[%s3064_s7] ss:$0 sm:$0xff] }
  0xab   : > { %844 = vadd.xlane.f32.xlu0 %v843_v34  ;;  %v808_v35 = vpop.xlane.xlu0 %807  ;;  %v811_v36 = vpop.xlane.xlu1 %810 }
  0xac   : > { %v823_v38 = vmul.f32 0.03125, %v808_v35  ;;  %v824_v39 = vmul.f32 0.03125, %v811_v36  ;;  %v836_v40 = vmul.f32 %v2677_v32, %v2677_v32  ;;  %v838_v41 = vmul.f32 %v2679_v33, %v2679_v33 }
  0xae   : > { %v2687_v42 = vsub.f32 %v2271_v11, %v823_v38  ;;  %v2689_v43 = vsub.f32 %v2272_v12, %v824_v39  ;;  %v846_v44 = vsel %vm793_vm0, %v836_v40, 0.0  ;;  %v852_v47 = vsel %vm793_vm0, %v838_v41, 0.0 }
  0xaf   : > { %850 = vadd.xlane.f32.xlu0 %v849_v37  ;;  %847 = vadd.xlane.f32.xlu1 %v846_v44  ;;  %v814_v45 = vpop.xlane.xlu0 %813  ;;  %v817_v46 = vpop.xlane.xlu1 %816 }
  0xb0   : > { %v825_v48 = vmul.f32 0.03125, %v814_v45  ;;  %v826_v49 = vmul.f32 0.03125, %v817_v46  ;;  %v839_v50 = vmul.f32 %v2687_v42, %v2687_v42  ;;  %v840_v51 = vmul.f32 %v2689_v43, %v2689_v43 }
  0xb2   : > { %v2697_v52 = vsub.f32 %v2275_v16, %v825_v48  ;;  %v2699_v53 = vsub.f32 %v2276_v17, %v826_v49  ;;  %v855_v54 = vsel %vm793_vm0, %v839_v50, 0.0  ;;  %v858_v55 = vsel %vm793_vm0, %v840_v51, 0.0 }
  0xb3   : > { %853 = vadd.xlane.f32.xlu1 %v852_v47  ;;  %856 = vadd.xlane.f32.xlu0 %v855_v54 }
  0xb4   : > { %v841_v56 = vmul.f32 %v2697_v52, %v2697_v52  ;;  %v842_v57 = vmul.f32 %v2699_v53, %v2699_v53 }
  0xb6   : > { %v861_v58 = vsel %vm793_vm0, %v841_v56, 0.0  ;;  %v864_v59 = vsel %vm793_vm0, %v842_v57, 0.0 }
  0xb7   : > { %859 = vadd.xlane.f32.xlu1 %v858_v55  ;;  %862 = vadd.xlane.f32.xlu0 %v861_v58 }
  0xbb   : > { %865 = vadd.xlane.f32.xlu1 %v864_v59 }
 0x138   : > { %v845_v2 = vpop.xlane.xlu0 %844 }
 0x139   : > { %v867_v3 = vmul.f32 0.03125, %v845_v2 }
 0x13b   : > { %v875_v4 = vadd.f32 1e-05, %v867_v3 }
 0x13c   : > { %v848_v5 = vpop.xlane.xlu1 %847  ;;  %v851_v6 = vpop.xlane.xlu0 %850 }
 0x13d   : > { %2479 = vrsqrt.f32 %v875_v4  ;;  %v868_v7 = vmul.f32 0.03125, %v848_v5  ;;  %v869_v8 = vmul.f32 0.03125, %v851_v6 }
 0x13f   : > { %v876_v9 = vadd.f32 1e-05, %v868_v7  ;;  %v877_v10 = vadd.f32 1e-05, %v869_v8 }
 0x140   : > { %v854_v11 = vpop.xlane.xlu1 %853  ;;  %v857_v12 = vpop.xlane.xlu0 %856 }
 0x141   : > { %2481 = vrsqrt.f32 %v876_v9  ;;  %v870_v13 = vmul.f32 0.03125, %v854_v11  ;;  %v871_v14 = vmul.f32 0.03125, %v857_v12  ;;  %v1429_v11 = vld [vmem:[%s3071_s14 + $0x8] sm:$0xff]  ;;  %v1211_v12 = vld [vmem:[%s3067_s10] sm:$0xff] }
 0x142   : > { %2483 = vrsqrt.f32 %v877_v10  ;;  %v1428_v10 = vld [vmem:[%s3071_s14] sm:$0xff] }
 0x143   : > { %v878_v15 = vadd.f32 1e-05, %v870_v13  ;;  %v879_v16 = vadd.f32 1e-05, %v871_v14 }
 0x144   : > { %v860_v17 = vpop.xlane.xlu1 %859  ;;  %v863_v18 = vpop.xlane.xlu0 %862 }
 0x145   : > { %2485 = vrsqrt.f32 %v878_v15  ;;  %v872_v19 = vmul.f32 0.03125, %v860_v17  ;;  %v873_v20 = vmul.f32 0.03125, %v863_v18  ;;  %v2431_v17 = vpack.c.bf16 %v1429_v11, %v1428_v10  ;;  %v1212_v18 = vld [vmem:[%s3067_s10 + $0x8] sm:$0xff] }
 0x146   : > { %2487 = vrsqrt.f32 %v879_v16  ;;  %v2538_v16 = vmov 0  }
 0x147   : > { %v2480_v21 = vpop.eup %2479  ;;  %v880_v22 = vadd.f32 1e-05, %v872_v19  ;;  %v881_v23 = vadd.f32 1e-05, %v873_v20  ;;  %2477 = vset.pattern.permute.xlu0 %v2538_v16  ;;  %v2423_v19 = vpack.c.bf16 %v1212_v18, %v1211_v12  ;;  %2432 = vmatprep.subr.bf16.mxu0 %v2431_v17 }
 0x148   : > { %v866_v27 = vpop.xlane.xlu1 %865  ;;  %v891_v28 = vmul.f32 %v2480_v21, %v2669_v24  ;;  %v718_v21 = vlaneseq }
 0x149   : > { %2489 = vrsqrt.f32 %v880_v22  ;;  %v874_v29 = vmul.f32 0.03125, %v866_v27  ;;  %2424 = vmatprep.subr.bf16.mxu1 %v2423_v19  ;;  %v2539_v22 = vmov 1966171168  }
 0x14a   : > { %2491 = vrsqrt.f32 %v881_v23  ;;  %v906_v31 = vmul.f32 %v2216_v26, %v891_v28  ;;  %2426 = vmatpush3.bf16.msra.mxu1 %v2423_v19  ;;  %v1072_v23 = vunpack.c.l.s4 %v2539_v22 }
 0x14b   : > { %v2482_v34 = vpop.eup %2481  ;;  %v882_v35 = vadd.f32 1e-05, %v874_v29  ;;  %v774_v29 = vld [vmem:[%s670_s18] sm:$0xff]  ;;  %s2540_s18 = smov 32  }
 0x14c   : > { %v2484_v36 = vpop.eup %2483  ;;  %v2728_v37 = vadd.f32 %v2217_v30, %v906_v31  ;;  %v892_v38 = vmul.f32 %v2482_v34, %v2677_v32  ;;  %v1073_v27 = vunpack.c.0.s8 %v1072_v23 }
 0x14d   : > { %2493 = vrsqrt.f32 %v882_v35  ;;  %v893_v39 = vmul.f32 %v2484_v36, %v2671_v25  ;;  %v1213_v36 = vld [vmem:[%s3067_s10 + $0x10] sm:$0xff] }
 0x14e   : > { %2338 = vmatprep.mubr.msk.f32.mxu0 %vm793_vm0, %v2728_v37  ;;  %v907_v24 = vmul.f32 %v2216_v26, %v892_v38  ;;  %v1214_v38 = vld [vmem:[%s3067_s10 + $0x18] sm:$0xff] }
 0x14f   : > { %v2486_v40 = vpop.eup %2485  ;;  %v908_v41 = vmul.f32 %v2216_v26, %v893_v39  ;;  %v2427_v39 = vpack.c.bf16 %v1214_v38, %v1213_v36 }
 0x150   : > { %v2488_v44 = vpop.eup %2487  ;;  %v2734_v45 = vadd.f32 %v2217_v30, %v907_v24  ;;  %v894_v46 = vmul.f32 %v2486_v40, %v2679_v33  ;;  %v1430_v24 = vld [vmem:[%s3071_s14 + $0x10] sm:$0xff]  ;;  %v1431_v40 = vld [vmem:[%s3071_s14 + $0x18] sm:$0xff] }
 0x151   : > { %v2737_v47 = vadd.f32 %v2217_v30, %v908_v41  ;;  %v895_v48 = vmul.f32 %v2488_v44, %v2687_v42  ;;  %v2435_v41 = vpack.c.bf16 %v1431_v40, %v1430_v24  ;;  %2428 = vmatprep.subr.bf16.mxu1 %v2427_v39 }
 0x152   : > { %2339 = vmatmul.mubr.msk.f32.vlgmr.msra.gmra.mrb[0].mxu0 %vm793_vm0, %v2734_v45  ;;  %v909_v32 = vmul.f32 %v2216_v26, %v894_v46  ;;  %2430 = vmatpush3.bf16.msra.mxu1 %v2427_v39  ;;  %v1070_v46 = vcombine.high %v774_v29, %v774_v29 }
 0x153   : > { %v2490_v25 = vpop.eup %2489  ;;  %2341 = vmatprep.mubr.msk.f32.mxu0 %vm793_vm0, %v2737_v47  ;;  %v910_v49 = vmul.f32 %v2216_v26, %v895_v48  ;;  %2434 = vmatpush3.bf16.msra.mxu0 %v2431_v17 }
 0x154   : > { %v2492_v50 = vpop.eup %2491  ;;  %v2744_v51 = vadd.f32 %v2217_v30, %v909_v32  ;;  %v896_v54 = vmul.f32 %v2490_v25, %v2689_v43  ;;  %2436 = vmatprep.subr.bf16.mxu0 %v2435_v41 }
 0x155   : > { %v2747_v33 = vadd.f32 %v2217_v30, %v910_v49  ;;  %v897_v42 = vmul.f32 %v2492_v50, %v2697_v52 }
 0x156   : > { %2342 = vmatmul.mubr.msk.f32.gmra.mrb[2].mxu0 %vm793_vm0, %v2744_v51  ;;  %v911_v55 = vmul.f32 %v2216_v26, %v896_v54 }
 0x157   : > { %v2494_v56 = vpop.eup %2493  ;;  %2344 = vmatprep.mubr.msk.f32.mxu0 %vm793_vm0, %v2747_v33  ;;  %v912_v57 = vmul.f32 %v2216_v26, %v897_v42  ;;  %2438 = vmatpush3.bf16.msra.mxu0 %v2435_v41 }
 0x158   : > { %v2754_v58 = vadd.f32 %v2217_v30, %v911_v55  ;;  %v898_v59 = vmul.f32 %v2494_v56, %v2699_v53  ;;  %v776_v53 = vld [vmem:[%s2773_s22 + $0x8] sm:$0xff] }
 0x159   : > { %v2757_v43 = vadd.f32 %v2217_v30, %v912_v57  ;;  %1160 = vrot.lane.b32.xlu0 %v776_v53, %s2537_s23 }
 0x15a   : > { %2345 = vmatmul.mubr.msk.f32.gmra.mrb[4].mxu0 %vm793_vm0, %v2754_v58  ;;  %v913_v60 = vmul.f32 %v2216_v26, %v898_v59  ;;  %v2800_v26 = vshrl.u32 %v718_v21, 7 }
 0x15b   : > { %2347 = vmatprep.mubr.msk.f32.mxu0 %vm793_vm0, %v2757_v43 }
 0x15c   : > { %v2763_v52 = vadd.f32 %v2217_v30, %v913_v60  ;;  %v1076_v28 = vsub.s32 %v1073_v27, %v2800_v26  ;;  %v2809_v34 = vsub.s32 0, %v2800_v26 }
 0x15e   : > { %2348 = vmatmul.mubr.msk.f32.gmra.mrb[6].mxu0 %vm793_vm0, %v2763_v52  ;;  %v1077_v30 = vrot.slane %v774_v29, %v1076_v28  ;;  %v1084_v50 = vrot.slane %v1070_v46, %v1076_v28 }
 0x160   : > { %v1085_v31 = vcombine.high %v1077_v30, %v1077_v30  ;;  %v1093_v32 = vrot.slane %v1077_v30, %v1076_v28  ;;  %v1086_v59 = vcombine.high %v1084_v50, %v1084_v50  ;;  %v1100_v53 = vrot.slane %v1084_v50, %v1076_v28 }
 0x162   : > { %v1107_v35 = vrot.slane %v1085_v31, %v1076_v28  ;;  %v1122_v49 = vrot.slane %v1093_v32, %v2809_v34  ;;  %v1115_v54 = vcombine.high %v1093_v32, %v1093_v32 }
 0x164   : > { %v2824_v44 = vrot.slane %v1107_v35, %v2809_v34  ;;  %v1117_v57 = vcombine.high %v1107_v35, %v1107_v35  ;;  %v1130_v60 = vrot.slane %v1115_v54, %v2809_v34 }
 0x1cb   : > { %v1161_v48 = vpop.permute.xlu0 %1160 }
 0x1cc   : > { %v1164_v25 = vadd.f32 %v1161_v48, %v2824_v44  ;;  %v1163_v56 = vadd.f32 %v1161_v48, %v1122_v49 }
 0x225   : > { %v2340_v62 = vpop.f32.mrb[0].mxu0 }
 0x226   : > { %v1036_v63 = vadd.f32 %v2340_v62, %v2218_v61  ;;  %v1030_v0 = vpop.f32.mrb[1].mxu0 }
 0x227   : > { %v1031_v2 = vadd.f32 %v2218_v61, %v1030_v0 }
 0x228   : > { %1181 = vrot.lane.b32.xlu1 %v1036_v63, %s2537_s23  ;;  %v1134_v63 = vrot.slane %v1117_v57, %v2809_v34 }
 0x229   : > { %v2343_v1 = vpop.f32.mrb[2].mxu0 }
 0x22a   : > { %v1046_v3 = vadd.f32 %v2343_v1, %v2218_v61  ;;  %v1040_v4 = vpop.f32.mrb[3].mxu0  ;;  %v1114_v1 = vrot.slane %v1086_v59, %v1076_v28  ;;  %v704_v28 = vld [vmem:[%s659_s21] sm:$0xff]  ;;  %s3080_s21 = sshll.u32 %s3086_s24, 5 }
 0x22b   : > { %v1041_v6 = vadd.f32 %v2218_v61, %v1040_v4  ;;  %v1116_v4 = vcombine.high %v1100_v53, %v1100_v53  ;;  %s2915_s1 = scalar_lea.vmem %s3074_s17, %s3080_s21 }
 0x22c   : > { %1179 = vrot.lane.b32.xlu1 %v1031_v2, %s2537_s23  ;;  %1185 = vrot.lane.b32.xlu0 %v1046_v3, %s2537_s23  ;;  %v1165_v2 = vadd.f32 %v1161_v48, %v1130_v60  ;;  %v1138_v3 = vrot.slane %v1100_v53, %v2809_v34  ;;  %v1142_v10 = vrot.slane %v1114_v1, %v2809_v34 }
 0x22d   : > { %v2346_v5 = vpop.f32.mrb[4].mxu0  ;;  %v1146_v12 = vrot.slane %v1116_v4, %v2809_v34 }
 0x22e   : > { %v1056_v7 = vadd.f32 %v2346_v5, %v2218_v61  ;;  %v1050_v8 = vpop.f32.mrb[5].mxu0  ;;  %v1167_v11 = vadd.f32 %v1161_v48, %v1138_v3  ;;  %v1168_v17 = vadd.f32 %v1161_v48, %v1142_v10 }
 0x22f   : > { %v1051_v13 = vadd.f32 %v2218_v61, %v1050_v8  ;;  %v1169_v19 = vadd.f32 %v1161_v48, %v1146_v12 }
 0x230   : > { %1183 = vrot.lane.b32.xlu1 %v1041_v6, %s2537_s23  ;;  %1189 = vrot.lane.b32.xlu0 %v1056_v7, %s2537_s23  ;;  %v2834_v6 = vld [vmem:[%s2773_s22] sm:$0xff]  ;;  %v1166_v7 = vadd.f32 %v1161_v48, %v1134_v63  ;;  %s2541_s22 = smov 64  }
 0x231   : > { %v2349_v9 = vpop.f32.mrb[6].mxu0 }
 0x232   : > { %v1066_v14 = vadd.f32 %v2349_v9, %v2218_v61  ;;  %v1060_v15 = vpop.f32.mrb[7].mxu0  ;;  %v1118_v9 = vcombine.high %v1114_v1, %v1114_v1 }
 0x233   : > { %v1061_v20 = vadd.f32 %v2218_v61, %v1060_v15 }
 0x234   : > { %1187 = vrot.lane.b32.xlu1 %v1051_v13, %s2537_s23  ;;  %1193 = vrot.lane.b32.xlu0 %v1066_v14, %s2537_s23  ;;  %v1150_v18 = vrot.slane %v1118_v9, %v2809_v34 }
 0x236   : > { %v1170_v27 = vadd.f32 %v1161_v48, %v1150_v18 }
 0x238   : > { %1191 = vrot.lane.b32.xlu1 %v1061_v20, %s2537_s23 }
 0x29a   : > { %v1182_v42 = vpop.permute.xlu1 %1181 }
 0x29b   : > { %v1204_v55 = vadd.f32 %v1182_v42, %v1164_v25 }
 0x29d   : > { %1232 = vrot.lane.b32.xlu0 %v1204_v55, %s2540_s18 }
 0x29e   : > { %v1180_v61 = vpop.permute.xlu1 %1179  ;;  %v1186_v0 = vpop.permute.xlu0 %1185 }
 0x29f   : > { %v1203_v62 = vadd.f32 %v1180_v61, %v1163_v56  ;;  %v1206_v15 = vadd.f32 %v1186_v0, %v1166_v7 }
 0x2a1   : > { %1230 = vrot.lane.b32.xlu1 %v1203_v62, %s2540_s18  ;;  %v2215_v62 = vld [vmem:[%s665_s28] ss:$0 sm:$0xff]  ;;  %s683_s28 = scalar_lea.vmem %s3061_s4, %s2842_s19 }
 0x2a2   : > { %v1184_v5 = vpop.permute.xlu1 %1183  ;;  %v1190_v13 = vpop.permute.xlu0 %1189 }
 0x2a3   : > { %v1205_v8 = vadd.f32 %v1184_v5, %v1165_v2  ;;  %v1208_v21 = vadd.f32 %v1190_v13, %v1168_v17  ;;  %v727_v2 = vsub.s32 1, %v2800_v26 }
 0x2a5   : > { %1417 = vrot.lane.b32.xlu1 %v2834_v6, %s2537_s23  ;;  %1234 = vrot.lane.b32.xlu0 %v1205_v8, %s2540_s18  ;;  %v741_v8 = vsub.s32 3, %v2800_v26 }
 0x2a6   : > { %v1188_v14 = vpop.permute.xlu1 %1187  ;;  %v1194_v23 = vpop.permute.xlu0 %1193 }
 0x2a7   : > { %v1207_v16 = vadd.f32 %v1188_v14, %v1167_v11  ;;  %v1210_v29 = vadd.f32 %v1194_v23, %v1170_v27 }
 0x2a9   : > { %1236 = vrot.lane.b32.xlu1 %v1206_v15, %s2540_s18  ;;  %1238 = vrot.lane.b32.xlu0 %v1207_v16, %s2540_s18  ;;  %v1665_v16 = vld [vmem:[%s3072_s15] sm:$0xf] }
 0x2aa   : > { %v1192_v20 = vpop.permute.xlu1 %1191  ;;  %2390 = vmatprep.subr.msk.mxu1 %vm1690_vm1, %v1665_v16 }
 0x2ab   : > { %v1209_v22 = vadd.f32 %v1192_v20, %v1169_v19 }
 0x2ad   : > { %1242 = vrot.lane.b32.xlu0 %v1209_v22, %s2540_s18  ;;  %1240 = vrot.lane.b32.xlu1 %v1208_v21, %s2540_s18 }
 0x2b1   : > { %1244 = vrot.lane.b32.xlu1 %v1210_v29, %s2540_s18  ;;  %708 = vperm.xlu0 %2477, %v704_v28  }
 0x30f   : > { %v1233_v30 = vpop.permute.xlu0 %1232 }
 0x310   : > { %v1409_v35 = vmul.f32 %v1233_v30, %v2824_v44 }
 0x313   : > { %v1231_v31 = vpop.permute.xlu1 %1230 }
 0x314   : > { %2358 = vmatprep.mubr.msk.f32.mxu1 %vm793_vm0, %v1231_v31  ;;  %v1408_v36 = vmul.f32 %v1231_v31, %v1122_v49 }
 0x315   : > { %2359 = vmatmul.mubr.msk.f32.vlgmr.msra.gmra.mrb[0].mxu1 %vm793_vm0, %v1233_v30 }
 0x316   : > { %2391 = vmatpush3.msk.msra.mxu1 %vm1690_vm1, %v1665_v16  ;;  %vm1884_vm1 = vcmask 1044484  }
 0x317   : > { %v1418_v38 = vpop.permute.xlu1 %1417  ;;  %v1235_v39 = vpop.permute.xlu0 %1234 }
 0x318   : > { %v1410_v24 = vmul.f32 %v1235_v39, %v1130_v60  ;;  %2361 = vmatprep.mubr.msk.f32.mxu1 %vm793_vm0, %v1235_v39  ;;  %v1420_v40 = vmul.f32 %v1418_v38, %v1408_v36  ;;  %v1421_v41 = vmul.f32 %v1418_v38, %v1409_v35 }
 0x31a   : > { %v1422_v46 = vmul.f32 %v1418_v38, %v1410_v24  ;;  %2378 = vmatprep.mubr.msk.f32.mxu0 %vm793_vm0, %v1420_v40 }
 0x31b   : > { %2379 = vmatmul.mubr.msk.f32.vlgmr.msra.gmra.mrb[8].mxu0 %vm793_vm0, %v1421_v41  ;;  %v1237_v48 = vpop.permute.xlu1 %1236  ;;  %v1239_v32 = vpop.permute.xlu0 %1238 }
 0x31c   : > { %v1411_v25 = vmul.f32 %v1237_v48, %v1134_v63  ;;  %v1412_v50 = vmul.f32 %v1239_v32, %v1138_v3  ;;  %2362 = vmatmul.mubr.msk.f32.gmra.mrb[2].mxu1 %vm793_vm0, %v1237_v48  ;;  %2381 = vmatprep.mubr.msk.f32.mxu0 %vm793_vm0, %v1422_v46  ;;  %v734_v63 = vsub.s32 2, %v2800_v26  ;;  %v748_v3 = vsub.s32 4, %v2800_v26 }
 0x31d   : > { %2364 = vmatprep.mubr.msk.f32.mxu1 %vm793_vm0, %v1239_v32 }
 0x31e   : > { %v1423_v44 = vmul.f32 %v1418_v38, %v1411_v25  ;;  %v1424_v49 = vmul.f32 %v1418_v38, %v1412_v50 }
 0x31f   : > { %v1243_v54 = vpop.permute.xlu0 %1242  ;;  %v1241_v42 = vpop.permute.xlu1 %1240 }
 0x320   : > { %v1414_v55 = vmul.f32 %v1243_v54, %v1146_v12  ;;  %v1413_v56 = vmul.f32 %v1241_v42, %v1142_v10  ;;  %2365 = vmatmul.mubr.msk.f32.gmra.mrb[4].mxu1 %vm793_vm0, %v1241_v42  ;;  %2382 = vmatmul.mubr.msk.f32.gmra.mrb[10].mxu0 %vm793_vm0, %v1423_v44  ;;  %v762_v10 = vsub.s32 6, %v2800_v26  ;;  %v755_v12 = vsub.s32 5, %v2800_v26 }
 0x321   : > { %2367 = vmatprep.mubr.msk.f32.mxu1 %vm793_vm0, %v1243_v54  ;;  %2384 = vmatprep.mubr.msk.f32.mxu0 %vm793_vm0, %v1424_v49 }
 0x322   : > { %v1426_v57 = vmul.f32 %v1418_v38, %v1414_v55  ;;  %v1425_v59 = vmul.f32 %v1418_v38, %v1413_v56 }
 0x323   : > { %v1245_v60 = vpop.permute.xlu1 %1244 }
 0x324   : > { %v1415_v53 = vmul.f32 %v1245_v60, %v1150_v18  ;;  %2368 = vmatmul.mubr.msk.f32.gmra.mrb[6].mxu1 %vm793_vm0, %v1245_v60  ;;  %2385 = vmatmul.mubr.msk.f32.gmra.mrb[12].mxu0 %vm793_vm0, %v1425_v59 }
 0x325   : > { %2387 = vmatprep.mubr.msk.f32.mxu0 %vm793_vm0, %v1426_v57 }
 0x326   : > { %v1427_v61 = vmul.f32 %v1418_v38, %v1415_v53 }
 0x328   : > { %2388 = vmatmul.mubr.msk.f32.gmra.mrb[14].mxu0 %vm793_vm0, %v1427_v61 }
 0x330   : > { %v2876_v0 = vpop.permute.xlu0 %708 }
 0x331   : > { %v717_v1 = vmul.f32 %v2215_v62, %v2876_v0 }
 0x333   : > { %v721_v4 = vrot.slane %v717_v1, %v2809_v34  ;;  %v735_v5 = vrot.slane %v717_v1, %v734_v63  ;;  %v728_v7 = vrot.slane %v717_v1, %v727_v2  ;;  %v749_v9 = vrot.slane %v717_v1, %v748_v3 }
 0x334   : > { %v742_v11 = vrot.slane %v717_v1, %v741_v8  ;;  %v763_v13 = vrot.slane %v717_v1, %v762_v10  ;;  %v756_v14 = vrot.slane %v717_v1, %v755_v12  ;;  %v769_v34 = vsub.s32 7, %v2800_v26  ;;  %v2899_v26 = vld [vmem:[%s3068_s11] ss:$0 sm:$0xff] }
 0x335   : > { %723 = vbcast.lane.b32.xlu1 %v721_v4, 256  ;;  %737 = vbcast.lane.b32.xlu0 %v735_v5, 256 }
 0x336   : > { %v770_v15 = vrot.slane %v717_v1, %v769_v34 }
 0x339   : > { %730 = vbcast.lane.b32.xlu1 %v728_v7, 256  ;;  %751 = vbcast.lane.b32.xlu0 %v749_v9, 256 }
 0x33d   : > { %744 = vbcast.lane.b32.xlu1 %v742_v11, 256  ;;  %765 = vbcast.lane.b32.xlu0 %v763_v13, 256 }
 0x341   : > { %758 = vbcast.lane.b32.xlu1 %v756_v14, 256  ;;  %1799 = vrot.lane.b32.xlu0 %v2834_v6, %s2541_s22  ;;  %s695_s22 = scalar_lea.vmem %s3073_s16, %s2842_s19 }
 0x345   : > { %772 = vbcast.lane.b32.xlu1 %v770_v15, 256 }
 0x3a7   : > { %v2890_v17 = vpop.permute.xlu1 %723  ;;  %v2904_v6 = vpop.permute.xlu0 %737 }
 0x3a8   : > { %vm1561_vm5 = vcmp.gt.f32.partialorder %v2890_v17, 0.0  ;;  %vm1563_vm6 = vcmp.gt.f32.partialorder %v2904_v6, 0.0 }
 0x3ab   : > { %v2892_v18 = vpop.permute.xlu1 %730  ;;  %v2922_v46 = vpop.permute.xlu0 %751 }
 0x3ac   : > { %vm1562_vm4 = vcmp.gt.f32.partialorder %v2892_v18, 0.0  ;;  %vm1565_vm8 = vcmp.gt.f32.partialorder %v2922_v46, 0.0 }
 0x3af   : > { %v2894_v19 = vpop.permute.xlu1 %744  ;;  %v2955_v9 = vpop.permute.xlu0 %765 }
 0x3b0   : > { %vm1564_vm7 = vcmp.gt.f32.partialorder %v2894_v19, 0.0  ;;  %vm1567_vm11 = vcmp.gt.f32.partialorder %v2955_v9, 0.0 }
 0x3b3   : > { %v2906_v28 = vpop.permute.xlu1 %758 }
 0x3b4   : > { %vm1566_vm9 = vcmp.gt.f32.partialorder %v2906_v28, 0.0 }
 0x3b7   : > { %v2926_v48 = vpop.permute.xlu1 %772 }
 0x3b8   : > { %vm1568_vm10 = vcmp.gt.f32.partialorder %v2926_v48, 0.0 }
 0x3e8   : > { %v2360_v20 = vpop.f32.mrb[0].mxu1 }
 0x3e9   : > { %v1334_v21 = vadd.f32 %v2360_v20, %v2899_v26  ;;  %v1328_v22 = vpop.f32.mrb[1].mxu1 }
 0x3ea   : > { %v1329_v23 = vadd.f32 %v2899_v26, %v1328_v22 }
 0x3eb   : > { %v1368_v27 = vmul.f32 %v1334_v21, %v2892_v18 }
 0x3ec   : > { %v1367_v29 = vmul.f32 %v1329_v23, %v2890_v17 }
 0x3ed   : > { %v1376_v30 = vadd.f32 %v1368_v27, %v2734_v45 }
 0x3ee   : > { %v1375_v31 = vadd.f32 %v1367_v29, %v2728_v37  ;;  %v2380_v35 = vpop.f32.mrb[8].mxu0 }
 0x3ef   : > { %v1384_v36 = vpack.c.bf16 %v1376_v30, %v1376_v30  ;;  %v2363_v38 = vpop.f32.mrb[2].mxu1  ;;  %v1522_v39 = vpop.f32.mrb[9].mxu0  ;;  %v2933_v44 = vsel %vm1562_vm4, %v2380_v35, -1e+09  ;;  %vm1890_vm4 = vcmask 1047559  }
 0x3f0   : > { %v1383_v24 = vpack.c.bf16 %v1375_v31, %v1375_v31  ;;  %v1344_v40 = vadd.f32 %v2363_v38, %v2899_v26  ;;  %v1338_v41 = vpop.f32.mrb[3].mxu1  ;;  %v2936_v54 = vsel %vm1561_vm5, %v1522_v39, -1e+09 }
 0x3f1   : > { %1393 = vst.msk [vmem:[%s2915_s1 + $0x4] sm:$0xf] %vm1391_vm2, %v1384_v36  ;;  %v1339_v45 = vadd.f32 %v2899_v26, %v1338_v41 }
 0x3f2   : > { %1392 = vst.msk [vmem:[%s2915_s1] sm:$0xf] %vm1391_vm2, %v1383_v24  ;;  %v1370_v37 = vmul.f32 %v1344_v40, %v2894_v19 }
 0x3f3   : > { %v1369_v32 = vmul.f32 %v1339_v45, %v2904_v6  ;;  %v2366_v25 = vpop.f32.mrb[4].mxu1  ;;  %v2383_v50 = vpop.f32.mrb[10].mxu0 }
 0x3f4   : > { %v1378_v49 = vadd.f32 %v1370_v37, %v2744_v51  ;;  %v1354_v42 = vadd.f32 %v2366_v25, %v2899_v26  ;;  %v1348_v55 = vpop.f32.mrb[5].mxu1  ;;  %v1532_v56 = vpop.f32.mrb[11].mxu0  ;;  %v1595_v51 = vsel %vm1593_vm3, %v2933_v44, -inf  ;;  %v1588_v3 = vsel %vm1564_vm7, %v2383_v50, -1e+09 }
 0x3f5   : > { %v1377_v57 = vadd.f32 %v1369_v32, %v2737_v47  ;;  %v1349_v59 = vadd.f32 %v2899_v26, %v1348_v55  ;;  %v1594_v47 = vsel %vm1593_vm3, %v2936_v54, -inf  ;;  %v1587_v20 = vsel %vm1563_vm6, %v1532_v56, -1e+09 }
 0x3f6   : > { %v1386_v60 = vpack.c.bf16 %v1378_v49, %v1378_v49  ;;  %v1372_v53 = vmul.f32 %v1354_v42, %v2906_v28  ;;  %v1596_v38 = vsel %vm1593_vm3, %v1587_v20, -inf }
 0x3f7   : > { %v1385_v61 = vpack.c.bf16 %v1377_v57, %v1377_v57  ;;  %v1371_v62 = vmul.f32 %v1349_v59, %v2922_v46  ;;  %v2369_v63 = vpop.f32.mrb[6].mxu1  ;;  %v2386_v1 = vpop.f32.mrb[12].mxu0 }
 0x3f8   : > { %1395 = vst.msk [vmem:[%s2915_s1 + $0xc] sm:$0xf] %vm1391_vm2, %v1386_v60  ;;  %v1380_v2 = vadd.f32 %v1372_v53, %v2754_v58  ;;  %v1364_v4 = vadd.f32 %v2369_v63, %v2899_v26  ;;  %v1590_v5 = vsel %vm1566_vm9, %v2386_v1, -1e+09  ;;  %v1358_v7 = vpop.f32.mrb[7].mxu1  ;;  %v1542_v8 = vpop.f32.mrb[13].mxu0 }
 0x3f9   : > { %1394 = vst.msk [vmem:[%s2915_s1 + $0x8] sm:$0xf] %vm1391_vm2, %v1385_v61  ;;  %v1379_v10 = vadd.f32 %v1371_v62, %v2747_v33  ;;  %v1600_v11 = vsel %vm1593_vm3, %v1590_v5, -inf  ;;  %v1359_v12 = vadd.f32 %v2899_v26, %v1358_v7  ;;  %v1589_v58 = vsel %vm1565_vm8, %v1542_v8, -1e+09 }
 0x3fa   : > { %v1388_v13 = vpack.c.bf16 %v1380_v2, %v1380_v2  ;;  %v1374_v14 = vmul.f32 %v1364_v4, %v2926_v48  ;;  %v1601_v34 = vmax.f32 %v1595_v51, %v1600_v11  ;;  %v1598_v15 = vsel %vm1593_vm3, %v1589_v58, -inf }
 0x3fb   : > { %v1387_v16 = vpack.c.bf16 %v1379_v10, %v1379_v10  ;;  %v1373_v33 = vmul.f32 %v1359_v12, %v2955_v9  ;;  %v1599_v21 = vmax.f32 %v1594_v47, %v1598_v15  ;;  %v2389_v22 = vpop.f32.mrb[14].mxu0  ;;  %v1597_v26 = vsel %vm1593_vm3, %v1588_v3, -inf }
 0x3fc   : > { %1397 = vst.msk [vmem:[%s2915_s1 + $0x14] sm:$0xf] %vm1391_vm2, %v1388_v13  ;;  %v1382_v23 = vadd.f32 %v1374_v14, %v2763_v52  ;;  %v1592_v27 = vsel %vm1568_vm10, %v2389_v22, -1e+09  ;;  %v1552_v29 = vpop.f32.mrb[15].mxu0 }
 0x3fd   : > { %1396 = vst.msk [vmem:[%s2915_s1 + $0x10] sm:$0xf] %vm1391_vm2, %v1387_v16  ;;  %v1381_v30 = vadd.f32 %v1373_v33, %v2757_v43  ;;  %v1606_v31 = vmax.f32 %v1599_v21, %v1601_v34  ;;  %v1604_v35 = vsel %vm1593_vm3, %v1592_v27, -inf  ;;  %v1591_v36 = vsel %vm1567_vm11, %v1552_v29, -1e+09 }
 0x3fe   : > { %v1390_v39 = vpack.c.bf16 %v1382_v23, %v1382_v23  ;;  %v1605_v24 = vmax.f32 %v1597_v26, %v1604_v35  ;;  %v1602_v52 = vsel %vm1593_vm3, %v1591_v36, -inf }
 0x3ff   : > { %v1389_v40 = vpack.c.bf16 %v1381_v30, %v1381_v30  ;;  %v1603_v41 = vmax.f32 %v1596_v38, %v1602_v52 }
 0x400   : > { %1399 = vst.msk [vmem:[%s2915_s1 + $0x1c] sm:$0xf] %vm1391_vm2, %v1390_v39 }
 0x401   : > { %1398 = vst.msk [vmem:[%s2915_s1 + $0x18] sm:$0xf] %vm1391_vm2, %v1389_v40  ;;  %v1607_v45 = vmax.f32 %v1603_v41, %v1605_v24  ;;  %vm1886_vm2 = vcmask 1045509  }
 0x403   : > { %v1608_v37 = vmax.f32 %v1606_v31, %v1607_v45 }
 0x405   : > { %v1609_v43 = vsub.f32 %v2936_v54, %v1608_v37  ;;  %v1610_v32 = vsub.f32 %v2933_v44, %v1608_v37  ;;  %v1611_v25 = vsub.f32 %v1587_v20, %v1608_v37  ;;  %v1612_v50 = vsub.f32 %v1588_v3, %v1608_v37 }
 0x406   : > { %v1613_v49 = vsub.f32 %v1589_v58, %v1608_v37  ;;  %v1614_v42 = vsub.f32 %v1590_v5, %v1608_v37  ;;  %v1615_v55 = vsub.f32 %v1591_v36, %v1608_v37  ;;  %v1616_v56 = vsub.f32 %v1592_v27, %v1608_v37 }
 0x407   : > { %v1617_v57 = vmul.f32 1.442695, %v1609_v43  ;;  %v1619_v59 = vmul.f32 1.442695, %v1610_v32  ;;  %v1621_v60 = vmul.f32 1.442695, %v1611_v25  ;;  %v1800_v32 = vpop.permute.xlu0 %1799 }
 0x408   : > { %v1623_v53 = vmul.f32 1.442695, %v1612_v50  ;;  %v1625_v51 = vmul.f32 1.442695, %v1613_v49  ;;  %v1627_v47 = vmul.f32 1.442695, %v1614_v42 }
 0x409   : > { %2495 = vpow2.f32 %v1617_v57  ;;  %v1629_v54 = vmul.f32 1.442695, %v1615_v55  ;;  %v1631_v44 = vmul.f32 1.442695, %v1616_v56  ;;  %v2544_v37 = vmov 0.0  }
 0x40a   : > { %2497 = vpow2.f32 %v1619_v59  ;;  %2412 = vmatprep.mubr.msk.f32.mxu0 %vm2543_vm12, %v2544_v37 }
 0x40b   : > { %2499 = vpow2.f32 %v1621_v60 }
 0x40c   : > { %2501 = vpow2.f32 %v1623_v53 }
 0x40d   : > { %2503 = vpow2.f32 %v1625_v51 }
 0x40e   : > { %2505 = vpow2.f32 %v1627_v47 }
 0x40f   : > { %2507 = vpow2.f32 %v1629_v54 }
 0x410   : > { %2509 = vpow2.f32 %v1631_v44 }
 0x413   : > { %v2496_v61 = vpop.eup %2495 }
 0x414   : > { %v2498_v62 = vpop.eup %2497  ;;  %v1633_v63 = vsel %vm1593_vm3, %v2496_v61, 0.0 }
 0x415   : > { %v2500_v1 = vpop.eup %2499  ;;  %v1634_v2 = vsel %vm1593_vm3, %v2498_v62, 0.0 }
 0x416   : > { %v2502_v3 = vpop.eup %2501  ;;  %v1635_v4 = vadd.f32 %v1634_v2, %v1633_v63  ;;  %v1636_v5 = vsel %vm1593_vm3, %v2500_v1, 0.0 }
 0x417   : > { %v2504_v7 = vpop.eup %2503  ;;  %v1638_v10 = vsel %vm1593_vm3, %v2502_v3, 0.0 }
 0x418   : > { %v1637_v8 = vadd.f32 %v1636_v5, %v1635_v4  ;;  %v2506_v11 = vpop.eup %2505  ;;  %v1640_v58 = vsel %vm1593_vm3, %v2504_v7, 0.0 }
 0x419   : > { %v2508_v13 = vpop.eup %2507  ;;  %v1642_v34 = vsel %vm1593_vm3, %v2506_v11, 0.0 }
 0x41a   : > { %v1639_v12 = vadd.f32 %v1638_v10, %v1637_v8  ;;  %v2510_v15 = vpop.eup %2509  ;;  %v1644_v20 = vsel %vm1593_vm3, %v2508_v13, 0.0 }
 0x41b   : > { %v1646_v21 = vsel %vm1593_vm3, %v2510_v15, 0.0 }
 0x41c   : > { %v1641_v14 = vadd.f32 %v1640_v58, %v1639_v12 }
 0x41e   : > { %v1643_v16 = vadd.f32 %v1642_v34, %v1641_v14 }
 0x420   : > { %v1645_v33 = vadd.f32 %v1644_v20, %v1643_v16 }
 0x422   : > { %v1647_v22 = vadd.f32 %v1646_v21, %v1645_v33 }
 0x424   : > { %2511 = vrcp.f32 %v1647_v22 }
 0x42e   : > { %v2512_v26 = vpop.eup %2511 }
 0x42f   : > { %v1649_v23 = vmul.f32 %v2512_v26, %v2496_v61  ;;  %v1650_v27 = vmul.f32 %v2512_v26, %v2498_v62  ;;  %v1651_v29 = vmul.f32 %v2512_v26, %v2500_v1  ;;  %v1652_v30 = vmul.f32 %v2512_v26, %v2502_v3 }
 0x430   : > { %v1653_v31 = vmul.f32 %v2512_v26, %v2504_v7  ;;  %v1654_v35 = vmul.f32 %v2512_v26, %v2506_v11  ;;  %v1655_v36 = vmul.f32 %v2512_v26, %v2508_v13  ;;  %v1656_v38 = vmul.f32 %v2512_v26, %v2510_v15 }
 0x431   : > { %v1657_v39 = vmul.f32 %v1649_v23, %v2890_v17  ;;  %v1658_v24 = vmul.f32 %v1650_v27, %v2892_v18  ;;  %v1659_v52 = vmul.f32 %v1651_v29, %v2904_v6  ;;  %v1660_v41 = vmul.f32 %v1652_v30, %v2894_v19  ;;  %v1928_v19 = vld [vmem:[%s3069_s12] sm:$0xff] }
 0x432   : > { %v1661_v40 = vmul.f32 %v1653_v31, %v2922_v46  ;;  %v1662_v17 = vmul.f32 %v1654_v35, %v2906_v28  ;;  %v1663_v18 = vmul.f32 %v1655_v36, %v2955_v9  ;;  %v1664_v6 = vmul.f32 %v1656_v38, %v2926_v48  ;;  %v1929_v46 = vld [vmem:[%s3069_s12 + $0x8] sm:$0xff]  ;;  %v1930_v28 = vld [vmem:[%s3069_s12 + $0x10] sm:$0xff]  ;;  %v1931_v48 = vld [vmem:[%s3069_s12 + $0x18] sm:$0xff] }
 0x433   : > { %2392 = vmatprep.mubr.msk.f32.mxu1 %vm1593_vm3, %v1657_v39  ;;  %v2542_v9 = vmov 0.0|0.0   ;;  %v2440_v45 = vpack.c.bf16 %v1929_v46, %v1928_v19  ;;  %v2443_v43 = vpack.c.bf16 %v1931_v48, %v1930_v28 }
 0x434   : > { %2393 = vmatmul.mubr.msk.f32.vlgmr.msra.gmra.mrb[8].mxu1 %vm1593_vm3, %v1658_v24  ;;  %2439 = vmatprep.subr.bf16.mxu0 %v2542_v9 }
 0x435   : > { %2395 = vmatprep.mubr.msk.f32.mxu1 %vm1593_vm3, %v1659_v52  ;;  %2441 = vmatpush3.bf16.msra.mxu0 %v2440_v45 }
 0x436   : > { %2442 = vmatprep.subr.bf16.mxu0 %v2542_v9 }
 0x438   : > { %2396 = vmatmul.mubr.msk.f32.gmra.mrb[10].mxu1 %vm1593_vm3, %v1660_v41 }
 0x439   : > { %2398 = vmatprep.mubr.msk.f32.mxu1 %vm1593_vm3, %v1661_v40  ;;  %2444 = vmatpush3.bf16.msra.mxu0 %v2443_v43 }
 0x43c   : > { %2399 = vmatmul.mubr.msk.f32.gmra.mrb[12].mxu1 %vm1593_vm3, %v1662_v17 }
 0x43d   : > { %2401 = vmatprep.mubr.msk.f32.mxu1 %vm1593_vm3, %v1663_v18 }
 0x440   : > { %2402 = vmatmul.mubr.msk.f32.gmra.mrb[14].mxu1 %vm1593_vm3, %v1664_v6  ;;  %vm1888_vm3 = vcmask 1046534  }
 0x507   : > { %v2394_v25 = vpop.f32.mrb[8].mxu1 }
 0x508   : > { %v1803_v50 = vmul.f32 %v2394_v25, %v1800_v32  ;;  %v1760_v49 = vpop.f32.mrb[9].mxu1 }
 0x509   : > { %v1802_v42 = vmul.f32 %v1800_v32, %v1760_v49 }
 0x50a   : > { %v1817_v55 = vsel %vm793_vm0, %v1803_v50, 0.0 }
 0x50b   : > { %v1818_v56 = vrot.slane %v1817_v55, 4  ;;  %v1810_v57 = vsel %vm793_vm0, %v1802_v42, 0.0  ;;  %v2397_v59 = vpop.f32.mrb[10].mxu1 }
 0x50c   : > { %v1811_v60 = vrot.slane %v1810_v57, 4  ;;  %v1805_v53 = vmul.f32 %v2397_v59, %v1800_v32  ;;  %v1770_v51 = vpop.f32.mrb[11].mxu1 }
 0x50d   : > { %v1819_v47 = vadd.f32 %v1818_v56, %v1817_v55  ;;  %v1804_v54 = vmul.f32 %v1800_v32, %v1770_v51 }
 0x50e   : > { %v1812_v44 = vadd.f32 %v1811_v60, %v1810_v57  ;;  %v1831_v61 = vsel %vm793_vm0, %v1805_v53, 0.0 }
 0x50f   : > { %v1820_v62 = vrot.slane %v1819_v47, 2  ;;  %v1832_v63 = vrot.slane %v1831_v61, 4  ;;  %v1824_v1 = vsel %vm793_vm0, %v1804_v54, 0.0  ;;  %v2400_v2 = vpop.f32.mrb[12].mxu1 }
 0x510   : > { %v1813_v3 = vrot.slane %v1812_v44, 2  ;;  %v1825_v4 = vrot.slane %v1824_v1, 4  ;;  %v1807_v5 = vmul.f32 %v2400_v2, %v1800_v32  ;;  %v1780_v7 = vpop.f32.mrb[13].mxu1 }
 0x511   : > { %v1821_v8 = vadd.f32 %v1820_v62, %v1819_v47  ;;  %v1833_v10 = vadd.f32 %v1832_v63, %v1831_v61  ;;  %v1806_v11 = vmul.f32 %v1800_v32, %v1780_v7 }
 0x512   : > { %v1814_v12 = vadd.f32 %v1813_v3, %v1812_v44  ;;  %v1826_v58 = vadd.f32 %v1825_v4, %v1824_v1  ;;  %v1845_v13 = vsel %vm793_vm0, %v1807_v5, 0.0  ;;  %v2253_v1 = vld [vmem:[%s3070_s13] ss:$0 sm:$0xff] }
 0x513   : > { %v1822_v14 = vrot.slane %v1821_v8, 1  ;;  %v1834_v34 = vrot.slane %v1833_v10, 2  ;;  %v1846_v15 = vrot.slane %v1845_v13, 4  ;;  %v1838_v16 = vsel %vm793_vm0, %v1806_v11, 0.0  ;;  %v2403_v20 = vpop.f32.mrb[14].mxu1  ;;  %v2012_v5 = vld [vmem:[%s683_s28] sm:$0xff] }
 0x514   : > { %v1815_v33 = vrot.slane %v1814_v12, 1  ;;  %v1827_v21 = vrot.slane %v1826_v58, 2  ;;  %v1839_v22 = vrot.slane %v1838_v16, 4  ;;  %v1809_v26 = vmul.f32 %v2403_v20, %v1800_v32  ;;  %v1790_v23 = vpop.f32.mrb[15].mxu1 }
 0x515   : > { %v1823_v27 = vadd.f32 %v1822_v14, %v1821_v8  ;;  %v1835_v29 = vadd.f32 %v1834_v34, %v1833_v10  ;;  %v1847_v30 = vadd.f32 %v1846_v15, %v1845_v13  ;;  %v1808_v31 = vmul.f32 %v1800_v32, %v1790_v23 }
 0x516   : > { %v1816_v35 = vadd.f32 %v1815_v33, %v1814_v12  ;;  %v1828_v36 = vadd.f32 %v1827_v21, %v1826_v58  ;;  %v1840_v38 = vadd.f32 %v1839_v22, %v1838_v16  ;;  %v1859_v39 = vsel %vm793_vm0, %v1809_v26, 0.0 }
 0x517   : > { %v1836_v24 = vrot.slane %v1835_v29, 1  ;;  %v1848_v52 = vrot.slane %v1847_v30, 2  ;;  %v1860_v40 = vrot.slane %v1859_v39, 4  ;;  %v1852_v41 = vsel %vm793_vm0, %v1808_v31, 0.0 }
 0x518   : > { %v1879_v17 = vsel %vm1878_vm13, %v1823_v27, %v1816_v35  ;;  %v1829_v18 = vrot.slane %v1828_v36, 1  ;;  %v1841_v6 = vrot.slane %v1840_v38, 2  ;;  %v1853_v19 = vrot.slane %v1852_v41, 4 }
 0x519   : > { %v1849_v46 = vadd.f32 %v1848_v52, %v1847_v30  ;;  %v1861_v28 = vadd.f32 %v1860_v40, %v1859_v39  ;;  %v1837_v37 = vadd.f32 %v1836_v24, %v1835_v29 }
 0x51a   : > { %v1830_v9 = vadd.f32 %v1829_v18, %v1828_v36  ;;  %v1842_v45 = vadd.f32 %v1841_v6, %v1840_v38  ;;  %v1854_v48 = vadd.f32 %v1853_v19, %v1852_v41 }
 0x51b   : > { %v1850_v43 = vrot.slane %v1849_v46, 1  ;;  %v1862_v32 = vrot.slane %v1861_v28, 2 }
 0x51c   : > { %v1881_v25 = vsel %vm1880_vm14, %v1830_v9, %v1879_v17  ;;  %v1843_v50 = vrot.slane %v1842_v45, 1  ;;  %v1855_v49 = vrot.slane %v1854_v48, 2 }
 0x51d   : > { %v1883_v42 = vsel %vm1882_vm15, %v1837_v37, %v1881_v25  ;;  %v1863_v55 = vadd.f32 %v1862_v32, %v1861_v28  ;;  %v1851_v59 = vadd.f32 %v1850_v43, %v1849_v46 }
 0x51e   : > { %v1844_v56 = vadd.f32 %v1843_v50, %v1842_v45  ;;  %v1856_v57 = vadd.f32 %v1855_v49, %v1854_v48 }
 0x51f   : > { %v1864_v60 = vrot.slane %v1863_v55, 1 }
 0x520   : > { %v1885_v53 = vsel %vm1884_vm1, %v1844_v56, %v1883_v42  ;;  %v1857_v51 = vrot.slane %v1856_v57, 1 }
 0x521   : > { %v1887_v47 = vsel %vm1886_vm2, %v1851_v59, %v1885_v53  ;;  %v1865_v44 = vadd.f32 %v1864_v60, %v1863_v55 }
 0x522   : > { %v1858_v54 = vadd.f32 %v1857_v51, %v1856_v57 }
 0x524   : > { %v1889_v61 = vsel %vm1888_vm3, %v1858_v54, %v1887_v47 }
 0x525   : > { %v1891_v62 = vsel %vm1890_vm4, %v1865_v44, %v1889_v61 }
 0x526   : > { %1893 = vst.msk [vmem:[#allocation2] sm:$0xff] %vm793_vm0, %v1891_v62 }
 0x52d   : > { %v1927_v63 = vld [vmem:[#allocation2] sm:$0xff] }
 0x52e   : > { %2413 = vmatmul.mubr.msk.f32.vlgmr.msra.gmra.mrb[16].mxu0 %vm793_vm0, %v1927_v63 }
 0x601   : > { %v2008_v2 = vpop.f32.mrb[16].mxu0 }
 0x602   : > { %v2009_v3 = vadd.f32 %v2253_v1, %v2008_v2  ;;  %v2414_v4 = vpop.f32.mrb[17].mxu0 }
 0x604   : > { %v2013_v7 = vmul.f32 %v2009_v3, %v2876_v0 }
 0x606   : > { %v2014_v8 = vadd.f32 %v2013_v7, %v2012_v5 }
 0x608   : > { %2015 = vst.msk [vmem:[%s695_s22] sm:$0xff] %vm793_vm0, %v2014_v8 }
 0x609 PF: > { %s28_s26 = sadd.s32 1, %s2535_s26   ;;  %s3081_s24 = smov %s2531_s25 }
 0x60a   : > { %p25_p5 = scmp.ge.s32.totalorder %s28_s26, 4   ;;  %s3082_s25 = smov %s3084_s27 }
 0x60c   :  { %27 = sbr.rel (!%p25_p5) target bundleno = 3 (0x3), region = 153 }

// kernel: _lambda_.20
= control target key start
LH: loop header
LB: loop body
LE: loop exit
PB: predicated region body
PF: predicated region fallthrough
CT: control target
= control target key end

     0   :  { %vm61_vm0 = vcmask 261120   ;;  %s1842_s0 = inlined_call_operand.vmem [shape: bf16[128,32], index: 0, kind: input, shape index: {}]   ;;  %s1843_s3 = inlined_call_operand.vmem [shape: f32[32,128], index: 3, kind: input, shape index: {}]   ;;  %s1844_s5 = inlined_call_operand.vmem [shape: f32[128,32], index: 5, kind: input, shape index: {}]   ;;  %s1845_s1 = inlined_call_operand.vmem [shape: f32[1,32], index: 1, kind: input, shape index: {}]   ;;  %s1846_s2 = inlined_call_operand.vmem [shape: f32[1,32], index: 2, kind: input, shape index: {}]   ;;  %s1847_s7 = inlined_call_operand.vmem [shape: f32[128,1], index: 7, kind: input, shape index: {}]   ;;  %s1848_s4 = inlined_call_operand.vmem [shape: f32[1,128], index: 4, kind: input, shape index: {}]   ;;  %s1849_s6 = inlined_call_operand.vmem [shape: f32[1,32], index: 6, kind: input, shape index: {}]   ;;  %s1850_s8 = inlined_call_operand.vmem [shape: bf16[128,32], index: 8, kind: output, shape index: {}]  }
   0x1   :  { %v1003_v0 = vld [vmem:[%s1842_s0] sm:$0xff]   ;;  %v1034_v1 = vld [vmem:[%s1842_s0 + $0x8] sm:$0xff]   ;;  %v1035_v6 = vld [vmem:[%s1842_s0 + $0x10] sm:$0xff]  }
   0x2   :  { %v1324_v2 = vunpack.c.l.bf16 %v1003_v0  ;;  %v1326_v3 = vunpack.c.l.bf16 %v1034_v1  ;;  %v1328_v4 = vunpack.c.h.bf16 %v1003_v0  ;;  %v1330_v5 = vunpack.c.h.bf16 %v1034_v1  ;;  %v1036_v13 = vld [vmem:[%s1842_s0 + $0x18] sm:$0xff]   ;;  %v1037_v18 = vld [vmem:[%s1842_s0 + $0x20] sm:$0xff]   ;;  %v1038_v23 = vld [vmem:[%s1842_s0 + $0x28] sm:$0xff]  }
   0x3   :  { %v1343_v11 = vunpack.c.l.bf16 %v1035_v6  ;;  %v1345_v12 = vunpack.c.h.bf16 %v1035_v6  ;;  %v1354_v16 = vunpack.c.l.bf16 %v1036_v13  ;;  %v1356_v17 = vunpack.c.h.bf16 %v1036_v13  ;;  %v1039_v28 = vld [vmem:[%s1842_s0 + $0x30] sm:$0xff]   ;;  %v1040_v33 = vld [vmem:[%s1842_s0 + $0x38] sm:$0xff]  }
   0x4   :  { %v62_v7 = vsel %vm61_vm0, %v1324_v2, 0.0  ;;  %v68_v8 = vsel %vm61_vm0, %v1326_v3, 0.0  ;;  %v65_v9 = vsel %vm61_vm0, %v1328_v4, 0.0  ;;  %v71_v10 = vsel %vm61_vm0, %v1330_v5, 0.0 }
   0x5   :  { %63 = vadd.xlane.f32.xlu0 %v62_v7  ;;  %69 = vadd.xlane.f32.xlu1 %v68_v8  ;;  %v74_v14 = vsel %vm61_vm0, %v1343_v11, 0.0  ;;  %v77_v15 = vsel %vm61_vm0, %v1345_v12, 0.0  ;;  %v80_v19 = vsel %vm61_vm0, %v1354_v16, 0.0  ;;  %v83_v20 = vsel %vm61_vm0, %v1356_v17, 0.0 }
   0x6   :  { %v1365_v21 = vunpack.c.l.bf16 %v1037_v18  ;;  %v1367_v22 = vunpack.c.h.bf16 %v1037_v18  ;;  %v1376_v26 = vunpack.c.l.bf16 %v1038_v23  ;;  %v1378_v27 = vunpack.c.h.bf16 %v1038_v23 }
   0x7   :  { %v1387_v31 = vunpack.c.l.bf16 %v1039_v28  ;;  %v1389_v32 = vunpack.c.h.bf16 %v1039_v28  ;;  %v1398_v36 = vunpack.c.l.bf16 %v1040_v33  ;;  %v1400_v37 = vunpack.c.h.bf16 %v1040_v33 }
   0x8   :  { %v86_v24 = vsel %vm61_vm0, %v1365_v21, 0.0  ;;  %v89_v25 = vsel %vm61_vm0, %v1367_v22, 0.0  ;;  %v92_v29 = vsel %vm61_vm0, %v1376_v26, 0.0  ;;  %v95_v30 = vsel %vm61_vm0, %v1378_v27, 0.0 }
   0x9   :  { %66 = vadd.xlane.f32.xlu0 %v65_v9  ;;  %72 = vadd.xlane.f32.xlu1 %v71_v10  ;;  %v98_v34 = vsel %vm61_vm0, %v1387_v31, 0.0  ;;  %v101_v35 = vsel %vm61_vm0, %v1389_v32, 0.0  ;;  %v104_v38 = vsel %vm61_vm0, %v1398_v36, 0.0  ;;  %v107_v39 = vsel %vm61_vm0, %v1400_v37, 0.0 }
   0xd   :  { %75 = vadd.xlane.f32.xlu0 %v74_v14  ;;  %78 = vadd.xlane.f32.xlu1 %v77_v15 }
  0x11   :  { %81 = vadd.xlane.f32.xlu0 %v80_v19  ;;  %84 = vadd.xlane.f32.xlu1 %v83_v20 }
  0x15   :  { %87 = vadd.xlane.f32.xlu0 %v86_v24  ;;  %90 = vadd.xlane.f32.xlu1 %v89_v25 }
  0x19   :  { %93 = vadd.xlane.f32.xlu0 %v92_v29  ;;  %96 = vadd.xlane.f32.xlu1 %v95_v30 }
  0x1d   :  { %99 = vadd.xlane.f32.xlu0 %v98_v34  ;;  %102 = vadd.xlane.f32.xlu1 %v101_v35 }
  0x21   :  { %105 = vadd.xlane.f32.xlu0 %v104_v38  ;;  %108 = vadd.xlane.f32.xlu1 %v107_v39 }
  0x92   :  { %v64_v40 = vpop.xlane.xlu0 %63  ;;  %v70_v41 = vpop.xlane.xlu1 %69 }
  0x93   :  { %v111_v42 = vmul.f32 0.03125, %v64_v40  ;;  %v113_v43 = vmul.f32 0.03125, %v70_v41 }
  0x95   :  { %v1407_v44 = vsub.f32 %v1324_v2, %v111_v42  ;;  %v1410_v45 = vsub.f32 %v1326_v3, %v113_v43 }
  0x96   :  { %v67_v46 = vpop.xlane.xlu0 %66  ;;  %v73_v47 = vpop.xlane.xlu1 %72 }
  0x97   :  { %v112_v48 = vmul.f32 0.03125, %v67_v46  ;;  %v114_v49 = vmul.f32 0.03125, %v73_v47  ;;  %v143_v50 = vmul.f32 %v1407_v44, %v1407_v44  ;;  %v145_v51 = vmul.f32 %v1410_v45, %v1410_v45 }
  0x99   :  { %v1417_v52 = vsub.f32 %v1328_v4, %v112_v48  ;;  %v1420_v53 = vsub.f32 %v1330_v5, %v114_v49  ;;  %v159_v54 = vsel %vm61_vm0, %v143_v50, 0.0  ;;  %v165_v57 = vsel %vm61_vm0, %v145_v51, 0.0 }
  0x9a   :  { %160 = vadd.xlane.f32.xlu0 %v159_v54  ;;  %v76_v55 = vpop.xlane.xlu0 %75  ;;  %v79_v56 = vpop.xlane.xlu1 %78 }
  0x9b   :  { %v115_v58 = vmul.f32 0.03125, %v76_v55  ;;  %v116_v59 = vmul.f32 0.03125, %v79_v56  ;;  %v144_v60 = vmul.f32 %v1417_v52, %v1417_v52  ;;  %v146_v61 = vmul.f32 %v1420_v53, %v1420_v53 }
  0x9d   :  { %v1429_v62 = vsub.f32 %v1343_v11, %v115_v58  ;;  %v1432_v63 = vsub.f32 %v1345_v12, %v116_v59  ;;  %v162_v0 = vsel %vm61_vm0, %v144_v60, 0.0  ;;  %v168_v7 = vsel %vm61_vm0, %v146_v61, 0.0 }
  0x9e   :  { %166 = vadd.xlane.f32.xlu0 %v165_v57  ;;  %163 = vadd.xlane.f32.xlu1 %v162_v0  ;;  %v82_v1 = vpop.xlane.xlu0 %81  ;;  %v85_v6 = vpop.xlane.xlu1 %84 }
  0x9f   :  { %v117_v8 = vmul.f32 0.03125, %v82_v1  ;;  %v118_v9 = vmul.f32 0.03125, %v85_v6  ;;  %v147_v10 = vmul.f32 %v1429_v62, %v1429_v62  ;;  %v148_v13 = vmul.f32 %v1432_v63, %v1432_v63 }
  0xa1   :  { %v1441_v14 = vsub.f32 %v1354_v16, %v117_v8  ;;  %v1444_v15 = vsub.f32 %v1356_v17, %v118_v9  ;;  %v171_v18 = vsel %vm61_vm0, %v147_v10, 0.0  ;;  %v174_v23 = vsel %vm61_vm0, %v148_v13, 0.0 }
  0xa2   :  { %169 = vadd.xlane.f32.xlu1 %v168_v7  ;;  %172 = vadd.xlane.f32.xlu0 %v171_v18  ;;  %v88_v19 = vpop.xlane.xlu0 %87  ;;  %v91_v20 = vpop.xlane.xlu1 %90 }
  0xa3   :  { %v119_v24 = vmul.f32 0.03125, %v88_v19  ;;  %v120_v25 = vmul.f32 0.03125, %v91_v20  ;;  %v149_v28 = vmul.f32 %v1441_v14, %v1441_v14  ;;  %v150_v29 = vmul.f32 %v1444_v15, %v1444_v15 }
  0xa5   :  { %v1453_v30 = vsub.f32 %v1365_v21, %v119_v24  ;;  %v1456_v33 = vsub.f32 %v1367_v22, %v120_v25  ;;  %v177_v34 = vsel %vm61_vm0, %v149_v28, 0.0  ;;  %v180_v39 = vsel %vm61_vm0, %v150_v29, 0.0  ;;  %v317_v28 = vld [vmem:[%s1843_s3] sm:$0xff]  ;;  %v318_v29 = vld [vmem:[%s1843_s3 + $0x8] sm:$0xff] }
  0xa6   :  { %175 = vadd.xlane.f32.xlu1 %v174_v23  ;;  %178 = vadd.xlane.f32.xlu0 %v177_v34  ;;  %v94_v35 = vpop.xlane.xlu0 %93  ;;  %v97_v38 = vpop.xlane.xlu1 %96  ;;  %v1181_v34 = vpack.c.bf16 %v318_v29, %v317_v28 }
  0xa7   :  { %v121_v40 = vmul.f32 0.03125, %v94_v35  ;;  %v122_v41 = vmul.f32 0.03125, %v97_v38  ;;  %v151_v42 = vmul.f32 %v1453_v30, %v1453_v30  ;;  %v152_v43 = vmul.f32 %v1456_v33, %v1456_v33  ;;  %v319_v35 = vld [vmem:[%s1843_s3 + $0x10] sm:$0xff]  ;;  %v320_v38 = vld [vmem:[%s1843_s3 + $0x18] sm:$0xff] }
  0xa8   :  { %1182 = vmatprep.subr.bf16.mxu0 %v1181_v34 }
  0xa9   :  { %v1465_v46 = vsub.f32 %v1376_v26, %v121_v40  ;;  %v1468_v47 = vsub.f32 %v1378_v27, %v122_v41  ;;  %v183_v48 = vsel %vm61_vm0, %v151_v42, 0.0  ;;  %v186_v51 = vsel %vm61_vm0, %v152_v43, 0.0  ;;  %1184 = vmatpush3.bf16.msra.mxu0 %v1181_v34  ;;  %v569_v40 = vld [vmem:[%s1844_s5] sm:$0xff]  ;;  %v570_v41 = vld [vmem:[%s1844_s5 + $0x8] sm:$0xff]  ;;  %v571_v42 = vld [vmem:[%s1844_s5 + $0x10] sm:$0xff] }
  0xaa   :  { %181 = vadd.xlane.f32.xlu1 %v180_v39  ;;  %184 = vadd.xlane.f32.xlu0 %v183_v48  ;;  %v100_v49 = vpop.xlane.xlu0 %99  ;;  %v103_v50 = vpop.xlane.xlu1 %102  ;;  %v1185_v39 = vpack.c.bf16 %v320_v38, %v319_v35  ;;  %v1523_v43 = vpack.c.bf16 %v570_v41, %v569_v40  ;;  %v572_v48 = vld [vmem:[%s1844_s5 + $0x18] sm:$0xff] }
  0xab   :  { %v123_v54 = vmul.f32 0.03125, %v100_v49  ;;  %v124_v55 = vmul.f32 0.03125, %v103_v50  ;;  %v153_v56 = vmul.f32 %v1465_v46, %v1465_v46  ;;  %v154_v57 = vmul.f32 %v1468_v47, %v1468_v47  ;;  %v573_v50 = vld [vmem:[%s1844_s5 + $0x20] sm:$0xff] }
  0xac   :  { %1186 = vmatprep.subr.bf16.mxu0 %v1185_v39  ;;  %v1529_v49 = vpack.c.bf16 %v572_v48, %v571_v42  ;;  %1221 = vmatprep.subr.bf16.mxu1 %v1523_v43 }
  0xad   :  { %v1477_v58 = vsub.f32 %v1387_v31, %v123_v54  ;;  %v1480_v59 = vsub.f32 %v1389_v32, %v124_v55  ;;  %v189_v60 = vsel %vm61_vm0, %v153_v56, 0.0  ;;  %v192_v1 = vsel %vm61_vm0, %v154_v57, 0.0  ;;  %1188 = vmatpush3.bf16.msra.mxu0 %v1185_v39  ;;  %1229 = vmatpush3.bf16.msra.mxu1 %v1523_v43  ;;  %v575_v55 = vld [vmem:[%s1844_s5 + $0x30] sm:$0xff]  ;;  %v576_v56 = vld [vmem:[%s1844_s5 + $0x38] sm:$0xff] }
  0xae   :  { %187 = vadd.xlane.f32.xlu1 %v186_v51  ;;  %190 = vadd.xlane.f32.xlu0 %v189_v60  ;;  %v106_v61 = vpop.xlane.xlu0 %105  ;;  %v109_v0 = vpop.xlane.xlu1 %108  ;;  %v574_v51 = vld [vmem:[%s1844_s5 + $0x28] sm:$0xff]  ;;  %v1550_v57 = vpack.c.bf16 %v576_v56, %v575_v55  ;;  %v577_v60 = vld [vmem:[%s1844_s5 + $0x40] sm:$0xff] }
  0xaf   :  { %v125_v6 = vmul.f32 0.03125, %v106_v61  ;;  %v126_v7 = vmul.f32 0.03125, %v109_v0  ;;  %v155_v8 = vmul.f32 %v1477_v58, %v1477_v58  ;;  %v156_v9 = vmul.f32 %v1480_v59, %v1480_v59  ;;  %1190 = vmatprep.subr.bf16.mxu0 %v1523_v43  ;;  %1222 = vmatprep.subr.bf16.mxu1 %v1529_v49  ;;  %v578_v61 = vld [vmem:[%s1844_s5 + $0x48] sm:$0xff] }
  0xb0   :  { %v1540_v54 = vpack.c.bf16 %v574_v51, %v573_v50  ;;  %v1560_v0 = vpack.c.bf16 %v578_v61, %v577_v60  ;;  %v1578_v60 = vld [vmem:[%s1845_s1] ss:$0 sm:$0xff] }
  0xb1   :  { %v1489_v10 = vsub.f32 %v1398_v36, %v125_v6  ;;  %v1492_v13 = vsub.f32 %v1400_v37, %v126_v7  ;;  %v195_v18 = vsel %vm61_vm0, %v155_v8, 0.0  ;;  %v198_v19 = vsel %vm61_vm0, %v156_v9, 0.0  ;;  %1230 = vmatpush3.bf16.msra.mxu1 %v1529_v49  ;;  %v580_v6 = vld [vmem:[%s1844_s5 + $0x58] sm:$0xff] }
  0xb2   :  { %193 = vadd.xlane.f32.xlu1 %v192_v1  ;;  %196 = vadd.xlane.f32.xlu0 %v195_v18  ;;  %v579_v1 = vld [vmem:[%s1844_s5 + $0x50] sm:$0xff] }
  0xb3   :  { %v157_v20 = vmul.f32 %v1489_v10, %v1489_v10  ;;  %v158_v23 = vmul.f32 %v1492_v13, %v1492_v13  ;;  %1223 = vmatprep.subr.bf16.mxu1 %v1540_v54  ;;  %v1570_v7 = vpack.c.bf16 %v580_v6, %v579_v1 }
  0xb5   :  { %v201_v24 = vsel %vm61_vm0, %v157_v20, 0.0  ;;  %v204_v25 = vsel %vm61_vm0, %v158_v23, 0.0  ;;  %1231 = vmatpush3.bf16.msra.mxu1 %v1540_v54 }
  0xb6   :  { %199 = vadd.xlane.f32.xlu1 %v198_v19  ;;  %202 = vadd.xlane.f32.xlu0 %v201_v24 }
  0xb7   :  { %1224 = vmatprep.subr.bf16.mxu1 %v1550_v57 }
  0xb9   :  { %1232 = vmatpush3.bf16.msra.mxu1 %v1550_v57 }
  0xba   :  { %205 = vadd.xlane.f32.xlu1 %v204_v25  ;;  %1225 = vmatprep.subr.bf16.mxu1 %v1560_v0 }
  0xbd   :  { %1233 = vmatpush3.bf16.msra.mxu1 %v1560_v0 }
  0xbe   :  { %1226 = vmatprep.subr.bf16.mxu1 %v1570_v7 }
  0xc1   :  { %1234 = vmatpush3.bf16.msra.mxu1 %v1570_v7 }
 0x127   :  { %v161_v8 = vpop.xlane.xlu0 %160 }
 0x128   :  { %v207_v9 = vmul.f32 0.03125, %v161_v8 }
 0x12a   :  { %v223_v18 = vadd.f32 1e-05, %v207_v9 }
 0x12b   :  { %v164_v19 = vpop.xlane.xlu1 %163  ;;  %v167_v20 = vpop.xlane.xlu0 %166 }
 0x12c   :  { %1240 = vrsqrt.f32 %v223_v18  ;;  %v208_v23 = vmul.f32 0.03125, %v164_v19  ;;  %v209_v24 = vmul.f32 0.03125, %v167_v20  ;;  %v1584_v18 = vld [vmem:[%s1846_s2] ss:$0 sm:$0xff] }
 0x12e   :  { %v224_v25 = vadd.f32 1e-05, %v208_v23  ;;  %v225_v28 = vadd.f32 1e-05, %v209_v24 }
 0x12f   :  { %v170_v29 = vpop.xlane.xlu1 %169  ;;  %v173_v34 = vpop.xlane.xlu0 %172 }
 0x130   :  { %1242 = vrsqrt.f32 %v224_v25  ;;  %v210_v35 = vmul.f32 0.03125, %v170_v29  ;;  %v211_v38 = vmul.f32 0.03125, %v173_v34 }
 0x131   :  { %1244 = vrsqrt.f32 %v225_v28 }
 0x132   :  { %v226_v39 = vadd.f32 1e-05, %v210_v35  ;;  %v227_v40 = vadd.f32 1e-05, %v211_v38 }
 0x133   :  { %v176_v41 = vpop.xlane.xlu1 %175  ;;  %v179_v42 = vpop.xlane.xlu0 %178 }
 0x134   :  { %1246 = vrsqrt.f32 %v226_v39  ;;  %v212_v48 = vmul.f32 0.03125, %v176_v41  ;;  %v213_v50 = vmul.f32 0.03125, %v179_v42 }
 0x135   :  { %1248 = vrsqrt.f32 %v227_v40 }
 0x136   :  { %v1241_v51 = vpop.eup %1240  ;;  %v228_v55 = vadd.f32 1e-05, %v212_v48  ;;  %v229_v56 = vadd.f32 1e-05, %v213_v50 }
 0x137   :  { %v182_v61 = vpop.xlane.xlu1 %181  ;;  %v185_v1 = vpop.xlane.xlu0 %184  ;;  %v255_v6 = vmul.f32 %v1241_v51, %v1407_v44 }
 0x138   :  { %1250 = vrsqrt.f32 %v228_v55  ;;  %v214_v8 = vmul.f32 0.03125, %v182_v61  ;;  %v215_v9 = vmul.f32 0.03125, %v185_v1 }
 0x139   :  { %1252 = vrsqrt.f32 %v229_v56  ;;  %v278_v19 = vmul.f32 %v1578_v60, %v255_v6 }
 0x13a   :  { %v1243_v20 = vpop.eup %1242  ;;  %v230_v23 = vadd.f32 1e-05, %v214_v8  ;;  %v231_v24 = vadd.f32 1e-05, %v215_v9 }
 0x13b   :  { %v1245_v25 = vpop.eup %1244  ;;  %v188_v28 = vpop.xlane.xlu1 %187  ;;  %v301_v34 = vadd.f32 %v1584_v18, %v278_v19  ;;  %v256_v44 = vmul.f32 %v1243_v20, %v1417_v52 }
 0x13c   :  { %v191_v29 = vpop.xlane.xlu0 %190  ;;  %1254 = vrsqrt.f32 %v230_v23  ;;  %v216_v35 = vmul.f32 0.03125, %v188_v28  ;;  %v257_v39 = vmul.f32 %v1245_v25, %v1410_v45 }
 0x13d   :  { %v217_v38 = vmul.f32 0.03125, %v191_v29  ;;  %1256 = vrsqrt.f32 %v231_v24  ;;  %1101 = vmatprep.mubr.msk.f32.mxu0 %vm61_vm0, %v301_v34  ;;  %v279_v40 = vmul.f32 %v1578_v60, %v256_v44 }
 0x13e   :  { %v1247_v41 = vpop.eup %1246  ;;  %v232_v42 = vadd.f32 1e-05, %v216_v35  ;;  %v280_v50 = vmul.f32 %v1578_v60, %v257_v39 }
 0x13f   :  { %v233_v48 = vadd.f32 1e-05, %v217_v38  ;;  %v1249_v51 = vpop.eup %1248  ;;  %v194_v55 = vpop.xlane.xlu1 %193  ;;  %v302_v52 = vadd.f32 %v1584_v18, %v279_v40  ;;  %v258_v61 = vmul.f32 %v1247_v41, %v1420_v53 }
 0x140   :  { %v197_v56 = vpop.xlane.xlu0 %196  ;;  %1258 = vrsqrt.f32 %v232_v42  ;;  %v218_v1 = vmul.f32 0.03125, %v194_v55  ;;  %v303_v6 = vadd.f32 %v1584_v18, %v280_v50  ;;  %v259_v9 = vmul.f32 %v1249_v51, %v1429_v62 }
 0x141   :  { %v219_v45 = vmul.f32 0.03125, %v197_v56  ;;  %1260 = vrsqrt.f32 %v233_v48  ;;  %1102 = vmatmul.mubr.msk.f32.vlgmr.msra.gmra.mrb[0].mxu0 %vm61_vm0, %v302_v52  ;;  %v281_v8 = vmul.f32 %v1578_v60, %v258_v61 }
 0x142   :  { %v1251_v19 = vpop.eup %1250  ;;  %v234_v20 = vadd.f32 1e-05, %v218_v1  ;;  %1104 = vmatprep.mubr.msk.f32.mxu0 %vm61_vm0, %v303_v6  ;;  %1192 = vmatpush3.bf16.msra.mxu0 %v1523_v43  ;;  %v282_v29 = vmul.f32 %v1578_v60, %v259_v9 }
 0x143   :  { %v235_v23 = vadd.f32 1e-05, %v219_v45  ;;  %v1253_v53 = vpop.eup %1252  ;;  %v200_v24 = vpop.xlane.xlu1 %199  ;;  %v304_v28 = vadd.f32 %v1584_v18, %v281_v8  ;;  %v260_v34 = vmul.f32 %v1251_v19, %v1432_v63  ;;  %1194 = vmatprep.subr.bf16.mxu0 %v1529_v49 }
 0x144   :  { %v203_v25 = vpop.xlane.xlu0 %202  ;;  %1262 = vrsqrt.f32 %v234_v20  ;;  %v220_v62 = vmul.f32 0.03125, %v200_v24  ;;  %v261_v35 = vmul.f32 %v1253_v53, %v1441_v14  ;;  %v305_v43 = vadd.f32 %v1584_v18, %v282_v29 }
 0x145   :  { %v221_v44 = vmul.f32 0.03125, %v203_v25  ;;  %1264 = vrsqrt.f32 %v235_v23  ;;  %1105 = vmatmul.mubr.msk.f32.gmra.mrb[2].mxu0 %vm61_vm0, %v304_v28  ;;  %v283_v38 = vmul.f32 %v1578_v60, %v260_v34 }
 0x146   :  { %v1255_v39 = vpop.eup %1254  ;;  %v236_v40 = vadd.f32 1e-05, %v220_v62  ;;  %v284_v42 = vmul.f32 %v1578_v60, %v261_v35  ;;  %1196 = vmatpush3.bf16.msra.mxu0 %v1529_v49  ;;  %1107 = vmatprep.mubr.msk.f32.mxu0 %vm61_vm0, %v305_v43 }
 0x147   :  { %v237_v41 = vadd.f32 1e-05, %v221_v44  ;;  %v1257_v63 = vpop.eup %1256  ;;  %v206_v48 = vpop.xlane.xlu1 %205  ;;  %v306_v14 = vadd.f32 %v1584_v18, %v283_v38  ;;  %v262_v50 = vmul.f32 %v1255_v39, %v1444_v15  ;;  %1198 = vmatprep.subr.bf16.mxu0 %v1540_v54 }
 0x148   :  { %1266 = vrsqrt.f32 %v236_v40  ;;  %v222_v51 = vmul.f32 0.03125, %v206_v48  ;;  %v307_v55 = vadd.f32 %v1584_v18, %v284_v42  ;;  %v263_v56 = vmul.f32 %v1257_v63, %v1453_v30  ;;  %v738_v42 = vld [vmem:[%s1847_s7 + $0x8] sm:$0xff]  ;;  %v739_v63 = vld [vmem:[%s1847_s7 + $0x10] sm:$0xff]  ;;  %v737_v48 = vld [vmem:[%s1847_s7] sm:$0xff] }
 0x149   :  { %1268 = vrsqrt.f32 %v237_v41  ;;  %1108 = vmatmul.mubr.msk.f32.gmra.mrb[4].mxu0 %vm61_vm0, %v306_v14  ;;  %v285_v49 = vmul.f32 %v1578_v60, %v262_v50  ;;  %v1272_v41 = vmov 0   ;;  %v746_v14 = vld [vmem:[%s1847_s7 + $0x48] sm:$0xff]  ;;  %v740_v50 = vld [vmem:[%s1847_s7 + $0x18] sm:$0xff] }
 0x14a   :  { %v1259_v52 = vpop.eup %1258  ;;  %v238_v61 = vadd.f32 1e-05, %v222_v51  ;;  %1110 = vmatprep.mubr.msk.f32.mxu0 %vm61_vm0, %v307_v55  ;;  %v286_v1 = vmul.f32 %v1578_v60, %v263_v56  ;;  %1200 = vmatpush3.bf16.msra.mxu0 %v1540_v54  ;;  %v748_v51 = vld [vmem:[%s1847_s7 + $0x58] sm:$0xff]  ;;  %v741_v55 = vld [vmem:[%s1847_s7 + $0x20] sm:$0xff]  ;;  %v750_v56 = vld [vmem:[%s1847_s7 + $0x68] sm:$0xff] }
 0x14b   :  { %v1261_v15 = vpop.eup %1260  ;;  %v308_v45 = vadd.f32 %v1584_v18, %v285_v49  ;;  %v264_v6 = vmul.f32 %v1259_v52, %v1456_v33  ;;  %1202 = vmatprep.subr.bf16.mxu0 %v1550_v57  ;;  %1239 = vset.pattern.permute.xlu1 %v1272_v41  ;;  %v742_v49 = vld [vmem:[%s1847_s7 + $0x28] sm:$0xff]  ;;  %v752_v52 = vld [vmem:[%s1847_s7 + $0x78] sm:$0xff] }
 0x14c   :  { %1270 = vrsqrt.f32 %v238_v61  ;;  %v309_v30 = vadd.f32 %v1584_v18, %v286_v1  ;;  %v265_v8 = vmul.f32 %v1261_v15, %v1465_v46  ;;  %1238 = vset.pattern.permute.xlu0 %v1272_v41  ;;  %760 = vperm.xlu1 %1239, %v738_v42   ;;  %v743_v61 = vld [vmem:[%s1847_s7 + $0x30] sm:$0xff]  ;;  %v744_v1 = vld [vmem:[%s1847_s7 + $0x38] sm:$0xff]  ;;  %v745_v15 = vld [vmem:[%s1847_s7 + $0x40] sm:$0xff] }
 0x14d   :  { %1111 = vmatmul.mubr.msk.f32.gmra.mrb[6].mxu0 %vm61_vm0, %v308_v45  ;;  %v287_v9 = vmul.f32 %v1578_v60, %v264_v6  ;;  %755 = vperm.xlu0 %1238, %v737_v48   ;;  %v747_v45 = vld [vmem:[%s1847_s7 + $0x50] sm:$0xff]  ;;  %v749_v6 = vld [vmem:[%s1847_s7 + $0x60] sm:$0xff] }
 0x14e   :  { %v1263_v19 = vpop.eup %1262  ;;  %1113 = vmatprep.mubr.msk.f32.mxu0 %vm61_vm0, %v309_v30  ;;  %v288_v54 = vmul.f32 %v1578_v60, %v265_v8  ;;  %1204 = vmatpush3.bf16.msra.mxu0 %v1550_v57  ;;  %v751_v30 = vld [vmem:[%s1847_s7 + $0x70] sm:$0xff]  ;;  %v1723_v8 = vld [vmem:[%s1848_s4] ss:$0 sm:$0xff] }
 0x14f   :  { %v1265_v20 = vpop.eup %1264  ;;  %v310_v33 = vadd.f32 %v1584_v18, %v287_v9  ;;  %v266_v23 = vmul.f32 %v1263_v19, %v1468_v47  ;;  %1206 = vmatprep.subr.bf16.mxu0 %v1560_v0 }
 0x150   :  { %v311_v46 = vadd.f32 %v1584_v18, %v288_v54  ;;  %v267_v53 = vmul.f32 %v1265_v20, %v1477_v58  ;;  %765 = vperm.xlu1 %1239, %v739_v63  }
 0x151   :  { %1114 = vmatmul.mubr.msk.f32.gmra.mrb[8].mxu0 %vm61_vm0, %v310_v33  ;;  %v289_v24 = vmul.f32 %v1578_v60, %v266_v23  ;;  %800 = vperm.xlu0 %1238, %v746_v14  }
 0x152   :  { %v1267_v25 = vpop.eup %1266  ;;  %1116 = vmatprep.mubr.msk.f32.mxu0 %vm61_vm0, %v311_v46  ;;  %v290_v57 = vmul.f32 %v1578_v60, %v267_v53  ;;  %1208 = vmatpush3.bf16.msra.mxu0 %v1560_v0 }
 0x153   :  { %v1269_v28 = vpop.eup %1268  ;;  %v312_v47 = vadd.f32 %v1584_v18, %v289_v24  ;;  %v268_v29 = vmul.f32 %v1267_v25, %v1480_v59  ;;  %1210 = vmatprep.subr.bf16.mxu0 %v1570_v7 }
 0x154   :  { %v313_v58 = vadd.f32 %v1584_v18, %v290_v57  ;;  %v269_v34 = vmul.f32 %v1269_v28, %v1489_v10  ;;  %770 = vperm.xlu1 %1239, %v740_v50  }
 0x155   :  { %1117 = vmatmul.mubr.msk.f32.gmra.mrb[10].mxu0 %vm61_vm0, %v312_v47  ;;  %v291_v62 = vmul.f32 %v1578_v60, %v268_v29  ;;  %810 = vperm.xlu0 %1238, %v748_v51  }
 0x156   :  { %v1271_v44 = vpop.eup %1270  ;;  %1119 = vmatprep.mubr.msk.f32.mxu0 %vm61_vm0, %v313_v58  ;;  %v292_v0 = vmul.f32 %v1578_v60, %v269_v34  ;;  %1212 = vmatpush3.bf16.msra.mxu0 %v1570_v7  ;;  %v581_v7 = vld [vmem:[%s1844_s5 + $0x60] sm:$0xff] }
 0x157   :  { %v314_v35 = vadd.f32 %v1584_v18, %v291_v62  ;;  %v270_v59 = vmul.f32 %v1271_v44, %v1492_v13  ;;  %v582_v13 = vld [vmem:[%s1844_s5 + $0x68] sm:$0xff] }
 0x158   :  { %v315_v43 = vadd.f32 %v1584_v18, %v292_v0  ;;  %v1213_v39 = vpack.c.bf16 %v582_v13, %v581_v7  ;;  %775 = vperm.xlu1 %1239, %v741_v55  }
 0x159   :  { %1120 = vmatmul.mubr.msk.f32.gmra.mrb[12].mxu0 %vm61_vm0, %v314_v35  ;;  %v293_v10 = vmul.f32 %v1578_v60, %v270_v59  ;;  %v583_v60 = vld [vmem:[%s1844_s5 + $0x70] sm:$0xff]  ;;  %820 = vperm.xlu0 %1238, %v750_v56  }
 0x15a   :  { %1122 = vmatprep.mubr.msk.f32.mxu0 %vm61_vm0, %v315_v43  ;;  %1214 = vmatprep.subr.bf16.mxu0 %v1213_v39 }
 0x15b   :  { %v316_v38 = vadd.f32 %v1584_v18, %v293_v10  ;;  %1227 = vmatprep.subr.bf16.mxu1 %v1213_v39  ;;  %1216 = vmatpush3.bf16.msra.mxu0 %v1213_v39  ;;  %v584_v18 = vld [vmem:[%s1844_s5 + $0x78] sm:$0xff] }
 0x15c   :  { %1235 = vmatpush3.bf16.msra.mxu1 %v1213_v39  ;;  %v1217_v40 = vpack.c.bf16 %v584_v18, %v583_v60  ;;  %780 = vperm.xlu1 %1239, %v742_v49  }
 0x15d   :  { %1123 = vmatmul.mubr.msk.f32.gmra.mrb[14].mxu0 %vm61_vm0, %v316_v38  ;;  %830 = vperm.xlu0 %1238, %v752_v52  }
 0x15e   :  { %1218 = vmatprep.subr.bf16.mxu0 %v1217_v40  ;;  %1228 = vmatprep.subr.bf16.mxu1 %v1217_v40 }
 0x15f   :  { %1220 = vmatpush3.bf16.msra.mxu0 %v1217_v40 }
 0x160   :  { %1236 = vmatpush3.bf16.msra.mxu1 %v1217_v40  ;;  %785 = vperm.xlu1 %1239, %v743_v61  }
 0x164   :  { %790 = vperm.xlu1 %1239, %v744_v1  }
 0x168   :  { %795 = vperm.xlu1 %1239, %v745_v15  }
 0x16c   :  { %805 = vperm.xlu1 %1239, %v747_v45  }
 0x170   :  { %815 = vperm.xlu1 %1239, %v749_v6  }
 0x174   :  { %825 = vperm.xlu1 %1239, %v751_v30  }
 0x214   :  { %v1103_v9 = vpop.f32.mrb[0].mxu0 }
 0x215   :  { %v448_v19 = vadd.f32 %v1103_v9, %v1723_v8  ;;  %v442_v54 = vpop.f32.mrb[1].mxu0 }
 0x216   :  { %v443_v20 = vadd.f32 %v1723_v8, %v442_v54 }
 0x217   :  { %v538_v33 = vmul.f32 0.01, %v448_v19  ;;  %vm522_vm1 = vcmp.ge.f32.partialorder %v448_v19, 0.0 }
 0x218   :  { %v537_v23 = vmul.f32 0.01, %v443_v20  ;;  %v1106_v46 = vpop.f32.mrb[2].mxu0  ;;  %vm521_vm2 = vcmp.ge.f32.partialorder %v443_v20, 0.0 }
 0x219   :  { %v458_v53 = vadd.f32 %v1106_v46, %v1723_v8  ;;  %v452_v24 = vpop.f32.mrb[3].mxu0  ;;  %v554_v28 = vsel %vm522_vm1, %v448_v19, %v538_v33  ;;  %vm929_vm1 = vcmask 257024  }
 0x21a   :  { %v453_v25 = vadd.f32 %v1723_v8, %v452_v24  ;;  %v553_v57 = vsel %vm521_vm2, %v443_v20, %v537_v23 }
 0x21b   :  { %v540_v47 = vmul.f32 0.01, %v458_v53  ;;  %1157 = vmatprep.mubr.f32.mxu0 %v553_v57  ;;  %vm524_vm4 = vcmp.ge.f32.partialorder %v458_v53, 0.0 }
 0x21c   :  { %v539_v29 = vmul.f32 0.01, %v453_v25  ;;  %v1109_v58 = vpop.f32.mrb[4].mxu0  ;;  %1158 = vmatmul.mubr.f32.vlgmr.msra.gmra.mrb[16].mxu0 %v554_v28  ;;  %vm523_vm3 = vcmp.ge.f32.partialorder %v453_v25, 0.0 }
 0x21d   :  { %v468_v34 = vadd.f32 %v1109_v58, %v1723_v8  ;;  %v462_v62 = vpop.f32.mrb[5].mxu0  ;;  %v556_v59 = vsel %vm524_vm4, %v458_v53, %v540_v47 }
 0x21e   :  { %v463_v44 = vadd.f32 %v1723_v8, %v462_v62  ;;  %v555_v0 = vsel %vm523_vm3, %v453_v25, %v539_v29 }
 0x21f   :  { %v542_v35 = vmul.f32 0.01, %v468_v34  ;;  %1160 = vmatprep.mubr.f32.mxu0 %v555_v0  ;;  %vm526_vm6 = vcmp.ge.f32.partialorder %v468_v34, 0.0 }
 0x220   :  { %v541_v43 = vmul.f32 0.01, %v463_v44  ;;  %v1112_v10 = vpop.f32.mrb[6].mxu0  ;;  %1161 = vmatmul.mubr.f32.gmra.mrb[18].mxu0 %v556_v59  ;;  %vm525_vm5 = vcmp.ge.f32.partialorder %v463_v44, 0.0 }
 0x221   :  { %v478_v38 = vadd.f32 %v1112_v10, %v1723_v8  ;;  %v472_v7 = vpop.f32.mrb[7].mxu0  ;;  %v558_v18 = vsel %vm526_vm6, %v468_v34, %v542_v35 }
 0x222   :  { %v473_v13 = vadd.f32 %v1723_v8, %v472_v7  ;;  %v557_v39 = vsel %vm525_vm5, %v463_v44, %v541_v43  ;;  %v761_v44 = vpop.permute.xlu1 %760 }
 0x223   :  { %v544_v60 = vmul.f32 0.01, %v478_v38  ;;  %1163 = vmatprep.mubr.f32.mxu0 %v557_v39  ;;  %vm528_vm8 = vcmp.ge.f32.partialorder %v478_v38, 0.0 }
 0x224   :  { %v1115_v40 = vpop.f32.mrb[8].mxu0  ;;  %1164 = vmatmul.mubr.f32.gmra.mrb[20].mxu0 %v558_v18  ;;  %vm527_vm7 = vcmp.ge.f32.partialorder %v473_v13, 0.0  ;;  %v543_v41 = vmul.f32 0.01, %v473_v13 }
 0x225   :  { %v488_v42 = vadd.f32 %v1115_v40, %v1723_v8  ;;  %v482_v63 = vpop.f32.mrb[9].mxu0  ;;  %v560_v51 = vsel %vm528_vm8, %v478_v38, %v544_v60  ;;  %v756_v60 = vpop.permute.xlu0 %755 }
 0x226   :  { %v483_v48 = vadd.f32 %v1723_v8, %v482_v63  ;;  %v559_v14 = vsel %vm527_vm7, %v473_v13, %v543_v41  ;;  %v766_v0 = vpop.permute.xlu1 %765 }
 0x227   :  { %v546_v50 = vmul.f32 0.01, %v488_v42  ;;  %1166 = vmatprep.mubr.f32.mxu1 %v559_v14  ;;  %vm530_vm10 = vcmp.ge.f32.partialorder %v488_v42, 0.0 }
 0x228   :  { %v545_v55 = vmul.f32 0.01, %v483_v48  ;;  %v1118_v56 = vpop.f32.mrb[10].mxu0  ;;  %1167 = vmatmul.mubr.f32.vlgmr.msra.gmra.mrb[0].mxu1 %v560_v51  ;;  %vm529_vm9 = vcmp.ge.f32.partialorder %v483_v48, 0.0 }
 0x229   :  { %v498_v49 = vadd.f32 %v1118_v56, %v1723_v8  ;;  %v492_v52 = vpop.f32.mrb[11].mxu0  ;;  %v562_v45 = vsel %vm530_vm10, %v488_v42, %v546_v50 }
 0x22a   :  { %v493_v61 = vadd.f32 %v1723_v8, %v492_v52  ;;  %v561_v1 = vsel %vm529_vm9, %v483_v48, %v545_v55  ;;  %v771_v35 = vpop.permute.xlu1 %770 }
 0x22b   :  { %v548_v15 = vmul.f32 0.01, %v498_v49  ;;  %1169 = vmatprep.mubr.f32.mxu1 %v561_v1  ;;  %vm532_vm12 = vcmp.ge.f32.partialorder %v498_v49, 0.0 }
 0x22c   :  { %v547_v6 = vmul.f32 0.01, %v493_v61  ;;  %v1121_v30 = vpop.f32.mrb[12].mxu0  ;;  %1170 = vmatmul.mubr.f32.gmra.mrb[2].mxu1 %v562_v45  ;;  %vm531_vm11 = vcmp.ge.f32.partialorder %v493_v61, 0.0 }
 0x22d   :  { %v508_v9 = vadd.f32 %v1121_v30, %v1723_v8  ;;  %v502_v19 = vpop.f32.mrb[13].mxu0  ;;  %v564_v23 = vsel %vm532_vm12, %v498_v49, %v548_v15 }
 0x22e   :  { %v503_v54 = vadd.f32 %v1723_v8, %v502_v19  ;;  %v563_v20 = vsel %vm531_vm11, %v493_v61, %v547_v6  ;;  %v776_v59 = vpop.permute.xlu1 %775 }
 0x22f   :  { %v550_v33 = vmul.f32 0.01, %v508_v9  ;;  %1172 = vmatprep.mubr.f32.mxu1 %v563_v20  ;;  %vm534_vm14 = vcmp.ge.f32.partialorder %v508_v9, 0.0 }
 0x230   :  { %v549_v46 = vmul.f32 0.01, %v503_v54  ;;  %v1124_v53 = vpop.f32.mrb[14].mxu0  ;;  %1173 = vmatmul.mubr.f32.gmra.mrb[4].mxu1 %v564_v23  ;;  %vm533_vm13 = vcmp.ge.f32.partialorder %v503_v54, 0.0 }
 0x231   :  { %v518_v24 = vadd.f32 %v1124_v53, %v1723_v8  ;;  %v512_v25 = vpop.f32.mrb[15].mxu0  ;;  %v566_v29 = vsel %vm534_vm14, %v508_v9, %v550_v33  ;;  %v801_v9 = vpop.permute.xlu0 %800 }
 0x232   :  { %v513_v57 = vadd.f32 %v1723_v8, %v512_v25  ;;  %v565_v28 = vsel %vm533_vm13, %v503_v54, %v549_v46  ;;  %v781_v43 = vpop.permute.xlu1 %780  ;;  %v1744_v8 = vld [vmem:[%s1849_s6] ss:$0 sm:$0xff] }
 0x233   :  { %v552_v47 = vmul.f32 0.01, %v518_v24  ;;  %1175 = vmatprep.mubr.f32.mxu1 %v565_v28  ;;  %vm536_vm0 = vcmp.ge.f32.partialorder %v518_v24, 0.0 }
 0x234   :  { %v551_v58 = vmul.f32 0.01, %v513_v57  ;;  %1176 = vmatmul.mubr.f32.gmra.mrb[6].mxu1 %v566_v29  ;;  %vm535_vm15 = vcmp.ge.f32.partialorder %v513_v57, 0.0 }
 0x235   :  { %v568_v62 = vsel %vm536_vm0, %v518_v24, %v552_v47 }
 0x236   :  { %v567_v34 = vsel %vm535_vm15, %v513_v57, %v551_v58  ;;  %v786_v38 = vpop.permute.xlu1 %785 }
 0x237   :  { %1178 = vmatprep.mubr.f32.mxu1 %v567_v34  ;;  %v811_v34 = vpop.permute.xlu0 %810 }
 0x238   :  { %1179 = vmatmul.mubr.f32.gmra.mrb[8].mxu1 %v568_v62 }
 0x23a   :  { %v791_v51 = vpop.permute.xlu1 %790 }
 0x23e   :  { %v796_v33 = vpop.permute.xlu1 %795 }
 0x2ef   :  { %v1159_v10 = vpop.f32.mrb[16].mxu0 }
 0x2f0   :  { %v664_v7 = vadd.f32 %v1159_v10, %v1744_v8  ;;  %v658_v13 = vpop.f32.mrb[17].mxu0 }
 0x2f1   :  { %v659_v39 = vadd.f32 %v1744_v8, %v658_v13 }
 0x2f2   :  { %v834_v18 = vmul.f32 %v761_v44, %v664_v7  ;;  %v806_v44 = vpop.permute.xlu1 %805 }
 0x2f3   :  { %v833_v40 = vmul.f32 %v756_v60, %v659_v39  ;;  %v1162_v41 = vpop.f32.mrb[18].mxu0 }
 0x2f4   :  { %v850_v42 = vadd.f32 %v1328_v4, %v834_v18  ;;  %v674_v63 = vadd.f32 %v1162_v41, %v1744_v8  ;;  %v668_v48 = vpop.f32.mrb[19].mxu0  ;;  %v821_v18 = vpop.permute.xlu0 %820 }
 0x2f5   :  { %v849_v14 = vadd.f32 %v1324_v2, %v833_v40  ;;  %v669_v50 = vadd.f32 %v1744_v8, %v668_v48 }
 0x2f6   :  { %v987_v55 = vpack.c.bf16 %v850_v42, %v850_v42  ;;  %v836_v56 = vmul.f32 %v771_v35, %v674_v63  ;;  %v816_v63 = vpop.permute.xlu1 %815 }
 0x2f7   :  { %v986_v49 = vpack.c.bf16 %v849_v14, %v849_v14  ;;  %v835_v52 = vmul.f32 %v766_v0, %v669_v50  ;;  %v1165_v61 = vpop.f32.mrb[20].mxu0 }
 0x2f8   :  { %931 = vst.msk [vmem:[%s1850_s8 + $0x4] sm:$0xf] %vm929_vm1, %v987_v55  ;;  %v852_v4 = vadd.f32 %v1330_v5, %v836_v56  ;;  %v684_v1 = vadd.f32 %v1165_v61, %v1744_v8  ;;  %v678_v15 = vpop.f32.mrb[21].mxu0 }
 0x2f9   :  { %930 = vst.msk [vmem:[%s1850_s8] sm:$0xf] %vm929_vm1, %v986_v49  ;;  %v851_v2 = vadd.f32 %v1326_v3, %v835_v52  ;;  %v679_v45 = vadd.f32 %v1744_v8, %v678_v15 }
 0x2fa   :  { %v989_v6 = vpack.c.bf16 %v852_v4, %v852_v4  ;;  %v838_v30 = vmul.f32 %v781_v43, %v684_v1  ;;  %v831_v1 = vpop.permute.xlu0 %830 }
 0x2fb   :  { %v988_v19 = vpack.c.bf16 %v851_v2, %v851_v2  ;;  %v837_v54 = vmul.f32 %v776_v59, %v679_v45  ;;  %v1168_v20 = vpop.f32.mrb[0].mxu1  ;;  %v826_v2 = vpop.permute.xlu1 %825 }
 0x2fc   :  { %933 = vst.msk [vmem:[%s1850_s8 + $0xc] sm:$0xf] %vm929_vm1, %v989_v6  ;;  %v854_v5 = vadd.f32 %v1345_v12, %v838_v30  ;;  %v694_v23 = vadd.f32 %v1168_v20, %v1744_v8  ;;  %v688_v46 = vpop.f32.mrb[1].mxu1 }
 0x2fd   :  { %932 = vst.msk [vmem:[%s1850_s8 + $0x8] sm:$0xf] %vm929_vm1, %v988_v19  ;;  %v853_v3 = vadd.f32 %v1343_v11, %v837_v54  ;;  %v689_v53 = vadd.f32 %v1744_v8, %v688_v46 }
 0x2fe   :  { %v991_v24 = vpack.c.bf16 %v854_v5, %v854_v5  ;;  %v840_v25 = vmul.f32 %v791_v51, %v694_v23 }
 0x2ff   :  { %v990_v57 = vpack.c.bf16 %v853_v3, %v853_v3  ;;  %v839_v28 = vmul.f32 %v786_v38, %v689_v53  ;;  %v1171_v47 = vpop.f32.mrb[2].mxu1 }
 0x300   :  { %935 = vst.msk [vmem:[%s1850_s8 + $0x14] sm:$0xf] %vm929_vm1, %v991_v24  ;;  %v856_v12 = vadd.f32 %v1356_v17, %v840_v25  ;;  %v704_v29 = vadd.f32 %v1171_v47, %v1744_v8  ;;  %v698_v58 = vpop.f32.mrb[3].mxu1 }
 0x301   :  { %934 = vst.msk [vmem:[%s1850_s8 + $0x10] sm:$0xf] %vm929_vm1, %v990_v57  ;;  %v855_v11 = vadd.f32 %v1354_v16, %v839_v28  ;;  %v699_v62 = vadd.f32 %v1744_v8, %v698_v58 }
 0x302   :  { %v993_v0 = vpack.c.bf16 %v856_v12, %v856_v12  ;;  %v842_v35 = vmul.f32 %v801_v9, %v704_v29 }
 0x303   :  { %v992_v59 = vpack.c.bf16 %v855_v11, %v855_v11  ;;  %v841_v43 = vmul.f32 %v796_v33, %v699_v62  ;;  %v1174_v10 = vpop.f32.mrb[4].mxu1 }
 0x304   :  { %937 = vst.msk [vmem:[%s1850_s8 + $0x1c] sm:$0xf] %vm929_vm1, %v993_v0  ;;  %v858_v17 = vadd.f32 %v1367_v22, %v842_v35  ;;  %v714_v38 = vadd.f32 %v1174_v10, %v1744_v8  ;;  %v708_v7 = vpop.f32.mrb[5].mxu1 }
 0x305   :  { %936 = vst.msk [vmem:[%s1850_s8 + $0x18] sm:$0xf] %vm929_vm1, %v992_v59  ;;  %v857_v16 = vadd.f32 %v1365_v21, %v841_v43  ;;  %v709_v13 = vadd.f32 %v1744_v8, %v708_v7 }
 0x306   :  { %v995_v39 = vpack.c.bf16 %v858_v17, %v858_v17  ;;  %v844_v60 = vmul.f32 %v811_v34, %v714_v38 }
 0x307   :  { %v994_v40 = vpack.c.bf16 %v857_v16, %v857_v16  ;;  %v843_v41 = vmul.f32 %v806_v44, %v709_v13  ;;  %v1177_v42 = vpop.f32.mrb[6].mxu1 }
 0x308   :  { %939 = vst.msk [vmem:[%s1850_s8 + $0x24] sm:$0xf] %vm929_vm1, %v995_v39  ;;  %v860_v22 = vadd.f32 %v1378_v27, %v844_v60  ;;  %v724_v48 = vadd.f32 %v1177_v42, %v1744_v8  ;;  %v718_v14 = vpop.f32.mrb[7].mxu1 }
 0x309   :  { %938 = vst.msk [vmem:[%s1850_s8 + $0x20] sm:$0xf] %vm929_vm1, %v994_v40  ;;  %v859_v21 = vadd.f32 %v1376_v26, %v843_v41  ;;  %v719_v50 = vadd.f32 %v1744_v8, %v718_v14 }
 0x30a   :  { %v997_v51 = vpack.c.bf16 %v860_v22, %v860_v22  ;;  %v846_v55 = vmul.f32 %v821_v18, %v724_v48 }
 0x30b   :  { %v996_v56 = vpack.c.bf16 %v859_v21, %v859_v21  ;;  %v845_v49 = vmul.f32 %v816_v63, %v719_v50  ;;  %v1180_v52 = vpop.f32.mrb[8].mxu1 }
 0x30c   :  { %941 = vst.msk [vmem:[%s1850_s8 + $0x2c] sm:$0xf] %vm929_vm1, %v997_v51  ;;  %v862_v27 = vadd.f32 %v1389_v32, %v846_v55  ;;  %v734_v61 = vadd.f32 %v1180_v52, %v1744_v8  ;;  %v728_v4 = vpop.f32.mrb[9].mxu1 }
 0x30d   :  { %940 = vst.msk [vmem:[%s1850_s8 + $0x28] sm:$0xf] %vm929_vm1, %v996_v56  ;;  %v861_v26 = vadd.f32 %v1387_v31, %v845_v49  ;;  %v729_v15 = vadd.f32 %v1744_v8, %v728_v4 }
 0x30e   :  { %v999_v45 = vpack.c.bf16 %v862_v27, %v862_v27  ;;  %v848_v6 = vmul.f32 %v831_v1, %v734_v61 }
 0x30f   :  { %v998_v30 = vpack.c.bf16 %v861_v26, %v861_v26  ;;  %v847_v9 = vmul.f32 %v826_v2, %v729_v15 }
 0x310   :  { %943 = vst.msk [vmem:[%s1850_s8 + $0x34] sm:$0xf] %vm929_vm1, %v999_v45  ;;  %v864_v32 = vadd.f32 %v1400_v37, %v848_v6 }
 0x311   :  { %942 = vst.msk [vmem:[%s1850_s8 + $0x30] sm:$0xf] %vm929_vm1, %v998_v30  ;;  %v863_v31 = vadd.f32 %v1398_v36, %v847_v9 }
 0x312   :  { %v1001_v8 = vpack.c.bf16 %v864_v32, %v864_v32 }
 0x313   :  { %v1000_v19 = vpack.c.bf16 %v863_v31, %v863_v31 }
 0x314   :  { %945 = vst.msk [vmem:[%s1850_s8 + $0x3c] sm:$0xf] %vm929_vm1, %v1001_v8 }
 0x315   :  { %944 = vst.msk [vmem:[%s1850_s8 + $0x38] sm:$0xf] %vm929_vm1, %v1000_v19 }

// kernel: _lambda_.25
= control target key start
LH: loop header
LB: loop body
LE: loop exit
PB: predicated region body
PF: predicated region fallthrough
CT: control target
= control target key end

     0   :  { %vm33_vm0 = vcmask 261120   ;;  %vm126_vm1 = vcmask 130048   ;;  %vm208_vm2 = vcmask 48128   ;;  %s327_s1 = inlined_call_operand.vmem [shape: f32[32,16], index: 1, kind: input, shape index: {}]   ;;  %s328_s0 = inlined_call_operand.vmem [shape: f32[16,32], index: 0, kind: input, shape index: {}]   ;;  %s329_s3 = inlined_call_operand.vmem [shape: f32[16,6], index: 3, kind: input, shape index: {}]   ;;  %s330_s2 = inlined_call_operand.vmem [shape: f32[1,16], index: 2, kind: input, shape index: {}]   ;;  %s331_s4 = inlined_call_operand.vmem [shape: f32[1,6], index: 4, kind: input, shape index: {}]   ;;  %s332_s5 = inlined_call_operand.vmem [shape: f32[16,6], index: 5, kind: output, shape index: {}]  }
   0x1   :  { %v22_v0 = vld [vmem:[%s327_s1] sm:$0xff]  ;;  %v23_v1 = vld [vmem:[%s327_s1 + $0x8] sm:$0xff]  ;;  %v24_v2 = vld [vmem:[%s327_s1 + $0x10] sm:$0xff] }
   0x2   :  { %v249_v3 = vpack.c.bf16 %v23_v1, %v22_v0  ;;  %v25_v4 = vld [vmem:[%s327_s1 + $0x18] sm:$0xff]  ;;  %v20_v5 = vld [vmem:[%s328_s0] sm:$0xff]  ;;  %v21_v7 = vld [vmem:[%s328_s0 + $0x8] sm:$0xff] }
   0x3   :  { %v253_v6 = vpack.c.bf16 %v25_v4, %v24_v2  ;;  %239 = vmatprep.mubr.msk.f32.mxu0 %vm33_vm0, %v20_v5  ;;  %v117_v8 = vld [vmem:[%s329_s3] sm:$0xff]  ;;  %v118_v9 = vld [vmem:[%s329_s3 + $0x8] sm:$0xff] }
   0x4   :  { %250 = vmatprep.subr.bf16.mxu0 %v249_v3  ;;  %v257_v10 = vpack.c.bf16 %v118_v9, %v117_v8  ;;  %v215_v11 = vld [vmem:[%s330_s2] ss:$0 sm:$0xff] }
   0x5   :  { %252 = vmatpush3.bf16.msra.mxu0 %v249_v3  ;;  %v218_v18 = vld [vmem:[%s331_s4] ss:$0 sm:$0xff] }
   0x6   :  { %254 = vmatprep.subr.bf16.mxu0 %v253_v6  ;;  %258 = vmatprep.subr.bf16.mxu1 %v257_v10 }
   0x7   :  { %260 = vmatpush3.bf16.msra.mxu1 %v257_v10 }
   0x9   :  { %256 = vmatpush3.bf16.msra.mxu0 %v253_v6 }
   0xc   :  { %240 = vmatmul.mubr.msk.f32.vlgmr.msra.gmra.mrb[0].mxu0 %vm33_vm0, %v21_v7 }
  0xdf   :  { %v241_v12 = vpop.f32.mrb[0].mxu0 }
  0xe0   :  { %v112_v13 = vadd.f32 %v241_v12, %v215_v11  ;;  %v106_v14 = vpop.f32.mrb[1].mxu0 }
  0xe1   :  { %v107_v15 = vadd.f32 %v215_v11, %v106_v14 }
  0xe2   :  { %v116_v17 = vmax.f32 %v112_v13, 0.0 }
  0xe3   :  { %v115_v16 = vmax.f32 %v107_v15, 0.0 }
  0xe5   :  { %246 = vmatprep.mubr.msk.f32.mxu1 %vm126_vm1, %v115_v16 }
  0xe6   :  { %247 = vmatmul.mubr.msk.f32.vlgmr.msra.gmra.mrb[0].mxu1 %vm126_vm1, %v116_v17 }
 0x1b9   :  { %v248_v19 = vpop.f32.mrb[0].mxu1 }
 0x1ba   :  { %v205_v20 = vadd.f32 %v248_v19, %v218_v18  ;;  %v199_v21 = vpop.f32.mrb[1].mxu1 }
 0x1bb   :  { %v200_v22 = vadd.f32 %v218_v18, %v199_v21 }
 0x1bc   :  { %210 = vst.msk [vmem:[%s332_s5 + $0x8] sm:$0xff] %vm208_vm2, %v205_v20 }
 0x1bd   :  { %209 = vst.msk [vmem:[%s332_s5] sm:$0xff] %vm208_vm2, %v200_v22 }

// kernel: _lambda_.16
= control target key start
LH: loop header
LB: loop body
LE: loop exit
PB: predicated region body
PF: predicated region fallthrough
CT: control target
= control target key end

     0   :  { %vm33_vm0 = vcmask 1042432   ;;  %vm29_vm1 = vcmask 23552   ;;  %v226_v0 = vmov 0.0   ;;  %vm227_vm2 = vmmov 0   ;;  %s280_s1 = inlined_call_operand.vmem [shape: f32[3,16], index: 1, kind: input, shape index: {}]   ;;  %s281_s0 = inlined_call_operand.vmem [shape: f32[2,3], index: 0, kind: input, shape index: {}]   ;;  %s282_s3 = inlined_call_operand.vmem [shape: f32[16,16], index: 3, kind: input, shape index: {}]   ;;  %s283_s2 = inlined_call_operand.vmem [shape: f32[1,16], index: 2, kind: input, shape index: {}]   ;;  %s284_s4 = inlined_call_operand.vmem [shape: f32[1,16], index: 4, kind: input, shape index: {}]   ;;  %s285_s5 = inlined_call_operand.vmem [shape: f32[2,16], index: 5, kind: output, shape index: {}]  }
   0x1   :  { %208 = vmatprep.subr.mxu0 %v226_v0  ;;  %v21_v1 = vld [vmem:[%s280_s1] sm:$0x7]  ;;  %210 = vmatprep.mubr.msk.f32.mxu0 %vm227_vm2, %v226_v0  ;;  %v109_v4 = vld [vmem:[%s282_s3 + $0x8] sm:$0xff]  ;;  %v228_v6 = vmov 0.0|0.0   ;;  %vm117_vm3 = vcmask 130048   ;;  %vm192_vm4 = vcmask 123904  }
   0x2   :  { %v20_v2 = vld [vmem:[%s281_s0] sm:$0x3]  ;;  %209 = vmatpush3.msk.msra.mxu0 %vm33_vm0, %v21_v1  ;;  %217 = vmatprep.mubr.msk.f32.mxu1 %vm227_vm2, %v226_v0 }
   0x3   :  { %211 = vmatmul.mubr.msk.f32.vlgmr.msra.gmra.mrb[0].mxu0 %vm29_vm1, %v20_v2  ;;  %v108_v3 = vld [vmem:[%s282_s3] sm:$0xff]  ;;  %220 = vmatprep.subr.bf16.mxu1 %v228_v6 }
   0x4   :  { %v221_v5 = vpack.c.bf16 %v109_v4, %v108_v3  ;;  %v198_v7 = vld [vmem:[%s283_s2] ss:$0 sm:$0xff] }
   0x5   :  { %v201_v12 = vld [vmem:[%s284_s4] ss:$0 sm:$0xff] }
   0x6   :  { %222 = vmatpush3.bf16.msra.mxu1 %v221_v5 }
  0xd6   :  { %v103_v8 = vpop.f32.mrb[0].mxu0 }
  0xd7   :  { %v104_v9 = vadd.f32 %v198_v7, %v103_v8  ;;  %v212_v10 = vpop.f32.mrb[1].mxu0 }
  0xd9   :  { %v107_v11 = vmax.f32 %v104_v9, 0.0 }
  0xdb   :  { %218 = vmatmul.mubr.msk.f32.vlgmr.msra.gmra.mrb[0].mxu1 %vm117_vm3, %v107_v11 }
 0x1ae   :  { %v187_v13 = vpop.f32.mrb[0].mxu1 }
 0x1af   :  { %v188_v14 = vadd.f32 %v201_v12, %v187_v13  ;;  %v219_v15 = vpop.f32.mrb[1].mxu1 }
 0x1b1   :  { %v191_v16 = vmax.f32 %v188_v14, 0.0 }
 0x1b3   :  { %193 = vst.msk [vmem:[%s285_s5] sm:$0x3] %vm192_vm4, %v191_v16 }

// kernel: _lambda_.27
= control target key start
LH: loop header
LB: loop body
LE: loop exit
PB: predicated region body
PF: predicated region fallthrough
CT: control target
= control target key end

     0   :  { %v226_v0 = vmov 0.0|0.0   ;;  %vm227_vm0 = vmmov 0   ;;  %v228_v3 = vmov 0.0   ;;  %vm30_vm1 = vcmask 130048   ;;  %s283_s1 = inlined_call_operand.vmem [shape: f32[16,16], index: 1, kind: input, shape index: {}]   ;;  %s284_s0 = inlined_call_operand.vmem [shape: f32[2,16], index: 0, kind: input, shape index: {}]   ;;  %s285_s3 = inlined_call_operand.vmem [shape: f32[16,3], index: 3, kind: input, shape index: {}]   ;;  %s286_s2 = inlined_call_operand.vmem [shape: f32[1,16], index: 2, kind: input, shape index: {}]   ;;  %s287_s4 = inlined_call_operand.vmem [shape: f32[1,3], index: 4, kind: input, shape index: {}]   ;;  %s288_s5 = inlined_call_operand.vmem [shape: f32[2,3], index: 5, kind: output, shape index: {}]  }
   0x1   :  { %217 = vmatprep.subr.bf16.mxu0 %v226_v0  ;;  %v21_v1 = vld [vmem:[%s283_s1] sm:$0xff]  ;;  %v22_v2 = vld [vmem:[%s283_s1 + $0x8] sm:$0xff]  ;;  %207 = vmatprep.mubr.msk.f32.mxu0 %vm227_vm0, %v228_v3  ;;  %vm187_vm2 = vcmask 17408  }
   0x2   :  { %v218_v4 = vpack.c.bf16 %v22_v2, %v21_v1  ;;  %220 = vmatprep.subr.bf16.mxu1 %v226_v0  ;;  %214 = vmatprep.mubr.msk.f32.mxu1 %vm227_vm0, %v228_v3  ;;  %v20_v5 = vld [vmem:[%s284_s0] sm:$0x3]  ;;  %v106_v7 = vld [vmem:[%s285_s3 + $0x8] sm:$0xff] }
   0x3   :  { %v105_v6 = vld [vmem:[%s285_s3] sm:$0xff] }
   0x4   :  { %219 = vmatpush3.bf16.msra.mxu0 %v218_v4  ;;  %v221_v8 = vpack.c.bf16 %v106_v7, %v105_v6  ;;  %v193_v9 = vld [vmem:[%s286_s2] ss:$0 sm:$0xff] }
   0x5   :  { %v195_v14 = vld [vmem:[%s287_s4] ss:$0 sm:$0xff] }
   0x6   :  { %222 = vmatpush3.bf16.msra.mxu1 %v221_v8 }
   0x7   :  { %208 = vmatmul.mubr.msk.f32.vlgmr.msra.gmra.mrb[0].mxu0 %vm30_vm1, %v20_v5 }
  0xda   :  { %v100_v10 = vpop.f32.mrb[0].mxu0 }
  0xdb   :  { %v101_v11 = vadd.f32 %v193_v9, %v100_v10  ;;  %v209_v12 = vpop.f32.mrb[1].mxu0 }
  0xdd   :  { %v104_v13 = vmax.f32 %v101_v11, 0.0 }
  0xdf   :  { %215 = vmatmul.mubr.msk.f32.vlgmr.msra.gmra.mrb[0].mxu1 %vm30_vm1, %v104_v13 }
 0x1b2   :  { %v183_v15 = vpop.f32.mrb[0].mxu1 }
 0x1b3   :  { %v184_v16 = vadd.f32 %v195_v14, %v183_v15  ;;  %v216_v17 = vpop.f32.mrb[1].mxu1 }
 0x1b5   :  { %188 = vst.msk [vmem:[%s288_s5] sm:$0x3] %vm187_vm2, %v184_v16 }

</bundles_post_ra>
